<compile_context>
chip_gen: v5e
topology: v5e:2x2
jax: 0.10.0
libtpu: 0.0.40
codegen_flags: <defaults>
</compile_context>

<pallas_src>
import functools

import jax
import jax.numpy as jnp
import numpy as np
from jax.experimental import pallas as pl
from jax.experimental.pallas import tpu as pltpu

_LANE = 128


def _round_up(x, m):
    return (x + m - 1) // m * m


# ----------------------------------------------------------------------------
# Kernel
# ----------------------------------------------------------------------------
def _fused_refine_kernel(x_ref, xt_ref, xb_ref, w1_ref, b1_ref, w2_ref, b2_ref,
                         o_ref, pad1_ref, pad2_ref):
    """Fused conv3x3 -> conv3x3 for one (batch, row-block) grid step.

    x_ref:    (1, R, W, C)   input rows [j*R, j*R+R)
    xt_ref:   (1, 2, W, C)   input rows [j*R-2, j*R)      (ignored when j == 0)
    xb_ref:   (1, 2, W, C)   input rows [j*R+R, j*R+R+2)  (ignored when j == last)
    w{1,2}:   (9, Cp, Cp)    per-tap weight matrices, tap k = dy*3 + dx
    b{1,2}:   (1, Cp)        f32 biases
    o_ref:    (1, R, W, C)   output rows [j*R, j*R+R)
    pad1_ref: VMEM (R+4, W+2, Cp) zero-haloed conv1 input (stage dtype)
    pad2_ref: VMEM (R+2, W+2, Cp) zero-haloed conv1 output = conv2 input
    """
    j = pl.program_id(1)
    n_row_blocks = pl.num_programs(1)
    R, W, C = o_ref.shape[1], o_ref.shape[2], o_ref.shape[3]
    Cp = pad1_ref.shape[2]
    sdt = pad1_ref.dtype

    # ---- stage conv1 input (1-px W halo, 2-row H halo) into pad1 -----------
    if C < Cp:
        # Channel-padded lanes must be zero everywhere; one full zero is the
        # cheapest safe option (only taken for non-lane-dense channel counts).
        pad1_ref[...] = jnp.zeros_like(pad1_ref)
    else:
        # Lane-dense case: zero only the halo ring; the interior is fully
        # overwritten below (this is the per-step vst saving from the review).
        pad1_ref[0:2, :, :] = jnp.zeros((2, W + 2, Cp), sdt)
        pad1_ref[R + 2:R + 4, :, :] = jnp.zeros((2, W + 2, Cp), sdt)
        pad1_ref[:, 0:1, :] = jnp.zeros((R + 4, 1, Cp), sdt)
        pad1_ref[:, W + 1:W + 2, :] = jnp.zeros((R + 4, 1, Cp), sdt)

    pad1_ref[2:R + 2, 1:W + 1, 0:C] = x_ref[0].astype(sdt)

    @pl.when(j > 0)
    def _():  # rows above this block are real image rows
        pad1_ref[0:2, 1:W + 1, 0:C] = xt_ref[0].astype(sdt)

    @pl.when(j < n_row_blocks - 1)
    def _():  # rows below this block are real image rows
        pad1_ref[R + 2:R + 4, 1:W + 1, 0:C] = xb_ref[0].astype(sdt)

    # ---- conv helper: 9 accumulated per-tap MXU matmuls, f32 accumulation --
    # TODO(synk): replace the unaligned dy/dx slab slices with pltpu.roll-based
    # shifts (XLU) + edge masks to cut vector load/store traffic further.
    def conv3x3(src_ref, rows, w_ref, b_ref):
        acc = None
        for dy in range(3):
            for dx in range(3):
                k = dy * 3 + dx
                lhs = src_ref[dy:dy + rows, dx:dx + W, :].reshape(rows * W, Cp)
                part = jnp.dot(lhs, w_ref[k],
                               preferred_element_type=jnp.float32)
                acc = part if acc is None else acc + part
        return acc + b_ref[...]                       # (rows*W, Cp) f32

    # conv1 over R+2 rows: one extra row each side feeds conv2's row halo.
    y1 = conv3x3(pad1_ref, R + 2, w1_ref, b1_ref)

    # ---- stage conv2 input (conv1 output never leaves VMEM) ----------------
    pad2_ref[:, 0:1, :] = jnp.zeros((R + 2, 1, Cp), sdt)
    pad2_ref[:, W + 1:W + 2, :] = jnp.zeros((R + 2, 1, Cp), sdt)
    pad2_ref[0:R + 2, 1:W + 1, :] = y1.reshape(R + 2, W, Cp).astype(sdt)

    # conv2's own zero padding at the image top/bottom: the extra conv1 rows
    # computed past the image boundary must be replaced by zeros.
    @pl.when(j == 0)
    def _():
        pad2_ref[0:1, :, :] = jnp.zeros((1, W + 2, Cp), sdt)

    @pl.when(j == n_row_blocks - 1)
    def _():
        pad2_ref[R + 1:R + 2, :, :] = jnp.zeros((1, W + 2, Cp), sdt)

    y2 = conv3x3(pad2_ref, R, w2_ref, b2_ref)
    o_ref[0] = y2[:, 0:C].reshape(R, W, C).astype(o_ref.dtype)


# ----------------------------------------------------------------------------
# VMEM sizing helpers (generation aware)
# ----------------------------------------------------------------------------
def _estimate_vmem_bytes(R, W, C, Cp, in_bytes, stage_bytes):
    pad1 = (R + 4) * (W + 2) * Cp * stage_bytes
    pad2 = (R + 2) * (W + 2) * Cp * stage_bytes
    io_blocks = 2 * 2 * R * W * C * in_bytes          # in + out, double-buffered
    halo_blocks = 2 * 2 * 2 * W * C * in_bytes
    weights = 2 * 2 * (9 * Cp * Cp + Cp) * stage_bytes
    live_acc = 2 * (R + 2) * W * Cp * 4               # y1 + running accumulator
    return pad1 + pad2 + io_blocks + halo_blocks + weights + live_acc


def _vmem_limit_bytes():
    cap = 64 * 1024 * 1024                            # conservative (v7x) default
    try:
        cap = int(pltpu.get_tpu_info().vmem_capacity_bytes)
    except Exception:
        pass
    return int(min(cap * 3 // 4, 100 * 1024 * 1024))


def _choose_row_block(H, W, C, Cp, in_bytes, stage_bytes, budget):
    if _estimate_vmem_bytes(H, W, C, Cp, in_bytes, stage_bytes) <= budget:
        return H                                       # whole image fits
    even_divs = [d for d in range(H - 1, 1, -1) if H % d == 0 and d % 2 == 0]
    for d in even_divs:
        if _estimate_vmem_bytes(d, W, C, Cp, in_bytes, stage_bytes) <= budget:
            return d
    # TODO(synk): support ragged row blocks when H has no small even divisor.
    return even_divs[-1] if even_divs else H


# ----------------------------------------------------------------------------
# pallas_call wrapper
# ----------------------------------------------------------------------------
def _refine_pallas(x_nhwc, w1m, b1m, w2m, b2m, row_block=None):
    B, H, W, C = x_nhwc.shape
    Cp = w1m.shape[-1]
    sdt = w1m.dtype
    stage_bytes = jnp.dtype(sdt).itemsize
    in_bytes = jnp.dtype(x_nhwc.dtype).itemsize

    vmem_limit = _vmem_limit_bytes()
    if row_block is None:
        R = _choose_row_block(H, W, C, Cp, in_bytes, stage_bytes,
                              budget=int(vmem_limit * 0.6))
    else:
        R = int(row_block)
    if H % R != 0:
        # TODO(synk): ragged last row block; fall back to a single block.
        R = H
    n_row_blocks = H // R
    if n_row_blocks > 1 and R % 2 != 0:
        R, n_row_blocks = H, 1                        # halo indexing needs even R

    Rh = max(R // 2, 1)
    hb_max = (H + 1) // 2 - 1                         # last valid 2-row halo block

    def top_map(b, j):   # rows [j*R-2, j*R)  -> 2-row block index, clamped
        return (b, jnp.maximum(j * Rh - 1, 0), 0, 0)

    def bot_map(b, j):   # rows [j*R+R, j*R+R+2) -> 2-row block index, clamped
        return (b, jnp.minimum((j + 1) * Rh, hb_max), 0, 0)

    flops = 2 * 2 * 9 * Cp * Cp * H * W * B
    bytes_accessed = (2 * B * H * W * C * in_bytes
                      + 2 * (9 * Cp * Cp + Cp) * stage_bytes)

    return pl.pallas_call(
        _fused_refine_kernel,
        out_shape=jax.ShapeDtypeStruct((B, H, W, C), x_nhwc.dtype),
        grid_spec=pltpu.PrefetchScalarGridSpec(
            num_scalar_prefetch=0,
            grid=(B, n_row_blocks),
            in_specs=[
                pl.BlockSpec((1, R, W, C), lambda b, j: (b, j, 0, 0)),
                pl.BlockSpec((1, 2, W, C), top_map),
                pl.BlockSpec((1, 2, W, C), bot_map),
                # TODO(synk): weights/biases are grid-invariant; single-buffer
                # them (pipeline_mode=pl.Buffered(1)) if VMEM headroom on v7x
                # becomes load-bearing.
                pl.BlockSpec((9, Cp, Cp), lambda b, j: (0, 0, 0)),
                pl.BlockSpec((1, Cp), lambda b, j: (0, 0)),
                pl.BlockSpec((9, Cp, Cp), lambda b, j: (0, 0, 0)),
                pl.BlockSpec((1, Cp), lambda b, j: (0, 0)),
            ],
            out_specs=pl.BlockSpec((1, R, W, C), lambda b, j: (b, j, 0, 0)),
            scratch_shapes=[
                pltpu.VMEM((R + 4, W + 2, Cp), sdt),   # conv1 zero-haloed input
                pltpu.VMEM((R + 2, W + 2, Cp), sdt),   # conv2 zero-haloed input
            ],
        ),
        compiler_params=pltpu.CompilerParams(
            dimension_semantics=("parallel", "parallel"),
            vmem_limit_bytes=vmem_limit,
        ),
        cost_estimate=pl.CostEstimate(flops=flops, transcendentals=0,
                                      bytes_accessed=bytes_accessed),
    )(x_nhwc, x_nhwc, x_nhwc, w1m, b1m, w2m, b2m)


# ----------------------------------------------------------------------------
# Parameter packing (hoisted out of the jitted forward)
# ----------------------------------------------------------------------------
def pack_refine_params(params, stage_dtype=jnp.float32):
    """Pad/flatten conv weights once, outside the per-call jit path.

    Invariant (the kernel relies on it): padded input AND output channels of
    the weights, and padded output channels of the biases, are exactly zero,
    so channels [C:Cp] of the inter-conv activation stay zero.
    Pass stage_dtype=jnp.bfloat16 for bf16 MXU staging (f32 accumulation kept).
    """
    C = params["w1"].shape[2]
    Cp = _round_up(C, _LANE)

    def pack_w(w):
        wp = jnp.zeros((3, 3, Cp, Cp), stage_dtype)
        wp = wp.at[:, :, :C, :C].set(w.astype(stage_dtype))
        return wp.reshape(9, Cp, Cp)                  # tap k = dy*3 + dx

    def pack_b(b):
        return jnp.zeros((1, Cp), jnp.float32).at[0, :C].set(b.astype(jnp.float32))

    return {"w1": pack_w(params["w1"]), "b1": pack_b(params["b1"]),
            "w2": pack_w(params["w2"]), "b2": pack_b(params["b2"])}


def init_refine_params(key, chan, dtype=jnp.float32):
    """Deterministic init mimicking nn.Conv2d default (uniform +/- 1/sqrt(fan_in))."""
    k1, k2, k3, k4 = jax.random.split(key, 4)
    fan_in = chan * 3 * 3
    bound = 1.0 / np.sqrt(fan_in)
    w1 = jax.random.uniform(k1, (3, 3, chan, chan), dtype, -bound, bound)  # HWIO
    b1 = jax.random.uniform(k2, (chan,), dtype, -bound, bound)
    w2 = jax.random.uniform(k3, (3, 3, chan, chan), dtype, -bound, bound)
    b2 = jax.random.uniform(k4, (chan,), dtype, -bound, bound)
    return {"w1": w1, "b1": b1, "w2": w2, "b2": b2}


@functools.partial(jax.jit, static_argnames=("row_block",))
def refine_forward(x_nchw, packed, row_block=None):
    """ReFine.forward: x -> conv1(x) -> conv2(.).  Input/output NCHW."""
    # TODO(synk): for small channel counts (C << 128) a W-on-lanes layout with
    # shifted multiply-adds avoids the (Cp/C)^2 MXU-FLOP inflation; the padded
    # channels-on-lanes path below is tuned for C >= 128.
    x = jnp.transpose(x_nchw, (0, 2, 3, 1))           # NCHW -> NHWC (channels on lanes)
    y = _refine_pallas(x, packed["w1"], packed["b1"], packed["w2"], packed["b2"],
                       row_block=row_block)
    return jnp.transpose(y, (0, 3, 1, 2))             # NHWC -> NCHW


def _reference_forward(x_nchw, params):
    """Pure-JAX reference (lax conv) for correctness checking."""
    dn = jax.lax.conv_dimension_numbers(
        x_nchw.shape, (3, 3, 1, 1), ("NCHW", "HWIO", "NCHW"))

    def conv(x, w, b):
        y = jax.lax.conv_general_dilated(
            x, w, window_strides=(1, 1), padding="SAME", dimension_numbers=dn)
        return y + b[None, :, None, None]

    x = conv(x_nchw, params["w1"], params["b1"])
    x = conv(x, params["w2"], params["b2"])
    return x


if __name__ == "__main__":
    key = jax.random.PRNGKey(0)
    k_param, k_input, k_input2 = jax.random.split(key, 3)

    B, C, H, W = 2, 4, 16, 16
    params = init_refine_params(k_param, C)
    packed = pack_refine_params(params)               # hoisted out of the jit path
    x = jax.random.normal(k_input, (B, C, H, W), jnp.float32)

    out = jax.block_until_ready(refine_forward(x, packed))
    ref = _reference_forward(x, params)
    np.testing.assert_allclose(np.asarray(out), np.asarray(ref),
                               rtol=1e-4, atol=1e-4)

    # Exercise the row-blocked path (grid=(B, H//R)) with a forced small block.
    x2 = jax.random.normal(k_input2, (1, C, 32, 16), jnp.float32)
    out2 = jax.block_until_ready(refine_forward(x2, packed, row_block=8))
    ref2 = _reference_forward(x2, params)
    np.testing.assert_allclose(np.asarray(out2), np.asarray(ref2),
                               rtol=1e-4, atol=1e-4)

    print("KERNEL_OK")
</pallas_src>

<mosaic_0001>
module attributes {stable_mosaic.version = 11 : i64} {
  func.func @_fused_refine_kernel(%arg0: i32, %arg1: i32, %arg2: memref<1x16x16x4xf32, #tpu.memory_space<vmem>>, %arg3: memref<1x2x16x4xf32, #tpu.memory_space<vmem>>, %arg4: memref<1x2x16x4xf32, #tpu.memory_space<vmem>>, %arg5: memref<9x128x128xf32, #tpu.memory_space<vmem>>, %arg6: memref<1x128xf32, #tpu.memory_space<vmem>>, %arg7: memref<9x128x128xf32, #tpu.memory_space<vmem>>, %arg8: memref<1x128xf32, #tpu.memory_space<vmem>>, %arg9: memref<1x16x16x4xf32, #tpu.memory_space<vmem>>, %arg10: memref<20x18x128xf32, #tpu.memory_space<vmem>>, %arg11: memref<18x18x128xf32, #tpu.memory_space<vmem>>) attributes {dimension_semantics = [#tpu.dimension_semantics<parallel>, #tpu.dimension_semantics<parallel>], iteration_bounds = array<i64: 2, 1>, scalar_prefetch = 0 : i64, scratch_operands = 2 : i64, tpu.core_type = #tpu.core_type<tc>, window_params = [{transform_indices = @transform_0, window_bounds = array<i64: 1, 16, 16, 4>}, {transform_indices = @transform_1, window_bounds = array<i64: 1, 2, 16, 4>}, {transform_indices = @transform_2, window_bounds = array<i64: 1, 2, 16, 4>}, {pipeline_mode = #tpu.pipeline_mode<synchronous>, transform_indices = @transform_3, window_bounds = array<i64: 9, 128, 128>}, {pipeline_mode = #tpu.pipeline_mode<synchronous>, transform_indices = @transform_4, window_bounds = array<i64: 1, 128>}, {pipeline_mode = #tpu.pipeline_mode<synchronous>, transform_indices = @transform_5, window_bounds = array<i64: 9, 128, 128>}, {pipeline_mode = #tpu.pipeline_mode<synchronous>, transform_indices = @transform_6, window_bounds = array<i64: 1, 128>}, {transform_indices = @transform_7, window_bounds = array<i64: 1, 16, 16, 4>}]} {
    %cst = arith.constant 0.000000e+00 : f32
    %0 = vector.broadcast %cst : f32 to vector<20x18x128xf32>
    %c0 = arith.constant 0 : index
    %c0_0 = arith.constant 0 : index
    %c0_1 = arith.constant 0 : index
    %1 = vector.load %arg10[%c0, %c0_0, %c0_1] : memref<20x18x128xf32, #tpu.memory_space<vmem>>, vector<20x18x128xf32>
    tpu.vector_store %arg10[%c0, %c0_0, %c0_1], %0 {strides = array<i32>} : memref<20x18x128xf32, #tpu.memory_space<vmem>>, vector<20x18x128xf32>,
    %c0_2 = arith.constant 0 : index
    %c0_3 = arith.constant 0 : index
    %c0_4 = arith.constant 0 : index
    %c0_5 = arith.constant 0 : index
    %2 = vector.load %arg2[%c0_2, %c0_3, %c0_4, %c0_5] : memref<1x16x16x4xf32, #tpu.memory_space<vmem>>, vector<1x16x16x4xf32>
    %3 = vector.shape_cast %2 : vector<1x16x16x4xf32> to vector<16x16x4xf32>
    %c2 = arith.constant 2 : index
    %c1 = arith.constant 1 : index
    %c0_6 = arith.constant 0 : index
    %4 = vector.load %arg10[%c2, %c1, %c0_6] : memref<20x18x128xf32, #tpu.memory_space<vmem>>, vector<16x16x4xf32>
    tpu.vector_store %arg10[%c2, %c1, %c0_6], %3 {strides = array<i32>} : memref<20x18x128xf32, #tpu.memory_space<vmem>>, vector<16x16x4xf32>,
    %c0_i32 = arith.constant 0 : i32
    %5 = arith.cmpi sgt, %arg1, %c0_i32 : i32
    %6 = arith.extui %5 : i1 to i32
    %c0_i32_7 = arith.constant 0 : i32
    %7 = arith.cmpi ne, %6, %c0_i32_7 : i32
    scf.if %7 {
      %c0_152 = arith.constant 0 : index
      %c0_153 = arith.constant 0 : index
      %c0_154 = arith.constant 0 : index
      %c0_155 = arith.constant 0 : index
      %140 = vector.load %arg3[%c0_152, %c0_153, %c0_154, %c0_155] : memref<1x2x16x4xf32, #tpu.memory_space<vmem>>, vector<1x2x16x4xf32>
      %141 = vector.shape_cast %140 : vector<1x2x16x4xf32> to vector<2x16x4xf32>
      %c0_156 = arith.constant 0 : index
      %c1_157 = arith.constant 1 : index
      %c0_158 = arith.constant 0 : index
      %142 = vector.load %arg10[%c0_156, %c1_157, %c0_158] : memref<20x18x128xf32, #tpu.memory_space<vmem>>, vector<2x16x4xf32>
      tpu.vector_store %arg10[%c0_156, %c1_157, %c0_158], %141 {strides = array<i32>} : memref<20x18x128xf32, #tpu.memory_space<vmem>>, vector<2x16x4xf32>,
    } else {
    }
    %c0_i32_8 = arith.constant 0 : i32
    %8 = arith.cmpi slt, %arg1, %c0_i32_8 : i32
    %9 = arith.extui %8 : i1 to i32
    %c0_i32_9 = arith.constant 0 : i32
    %10 = arith.cmpi ne, %9, %c0_i32_9 : i32
    scf.if %10 {
      %c0_152 = arith.constant 0 : index
      %c0_153 = arith.constant 0 : index
      %c0_154 = arith.constant 0 : index
      %c0_155 = arith.constant 0 : index
      %140 = vector.load %arg4[%c0_152, %c0_153, %c0_154, %c0_155] : memref<1x2x16x4xf32, #tpu.memory_space<vmem>>, vector<1x2x16x4xf32>
      %141 = vector.shape_cast %140 : vector<1x2x16x4xf32> to vector<2x16x4xf32>
      %c18 = arith.constant 18 : index
      %c1_156 = arith.constant 1 : index
      %c0_157 = arith.constant 0 : index
      %142 = vector.load %arg10[%c18, %c1_156, %c0_157] : memref<20x18x128xf32, #tpu.memory_space<vmem>>, vector<2x16x4xf32>
      tpu.vector_store %arg10[%c18, %c1_156, %c0_157], %141 {strides = array<i32>} : memref<20x18x128xf32, #tpu.memory_space<vmem>>, vector<2x16x4xf32>,
    } else {
    }
    %c0_10 = arith.constant 0 : index
    %c0_11 = arith.constant 0 : index
    %c0_12 = arith.constant 0 : index
    %11 = vector.load %arg10[%c0_10, %c0_11, %c0_12] : memref<20x18x128xf32, #tpu.memory_space<vmem>>, vector<18x16x128xf32>
    %12 = vector.shape_cast %11 : vector<18x16x128xf32> to vector<288x128xf32>
    %c0_13 = arith.constant 0 : index
    %c0_14 = arith.constant 0 : index
    %c0_15 = arith.constant 0 : index
    %13 = vector.load %arg5[%c0_13, %c0_14, %c0_15] : memref<9x128x128xf32, #tpu.memory_space<vmem>>, vector<1x128x128xf32>
    %14 = vector.shape_cast %13 : vector<1x128x128xf32> to vector<128x128xf32>
    %cst_16 = arith.constant dense<0.000000e+00> : vector<288x128xf32>
    %15 = tpu.matmul %12, %14, %cst_16 {dimension_numbers = #tpu.dot_dimension_numbers<[1], [0], [0], [1], [0, 0, 1, 1], [], []>} : vector<288x128xf32>, vector<128x128xf32>, vector<288x128xf32> -> vector<288x128xf32>
    %c0_17 = arith.constant 0 : index
    %c1_18 = arith.constant 1 : index
    %c0_19 = arith.constant 0 : index
    %16 = vector.load %arg10[%c0_17, %c1_18, %c0_19] : memref<20x18x128xf32, #tpu.memory_space<vmem>>, vector<18x16x128xf32>
    %17 = vector.shape_cast %16 : vector<18x16x128xf32> to vector<288x128xf32>
    %c1_20 = arith.constant 1 : index
    %c0_21 = arith.constant 0 : index
    %c0_22 = arith.constant 0 : index
    %18 = vector.load %arg5[%c1_20, %c0_21, %c0_22] : memref<9x128x128xf32, #tpu.memory_space<vmem>>, vector<1x128x128xf32>
    %19 = vector.shape_cast %18 : vector<1x128x128xf32> to vector<128x128xf32>
    %cst_23 = arith.constant dense<0.000000e+00> : vector<288x128xf32>
    %20 = tpu.matmul %17, %19, %cst_23 {dimension_numbers = #tpu.dot_dimension_numbers<[1], [0], [0], [1], [0, 0, 1, 1], [], []>} : vector<288x128xf32>, vector<128x128xf32>, vector<288x128xf32> -> vector<288x128xf32>
    %21 = arith.addf %15, %20 : vector<288x128xf32>
    %c0_24 = arith.constant 0 : index
    %c2_25 = arith.constant 2 : index
    %c0_26 = arith.constant 0 : index
    %22 = vector.load %arg10[%c0_24, %c2_25, %c0_26] : memref<20x18x128xf32, #tpu.memory_space<vmem>>, vector<18x16x128xf32>
    %23 = vector.shape_cast %22 : vector<18x16x128xf32> to vector<288x128xf32>
    %c2_27 = arith.constant 2 : index
    %c0_28 = arith.constant 0 : index
    %c0_29 = arith.constant 0 : index
    %24 = vector.load %arg5[%c2_27, %c0_28, %c0_29] : memref<9x128x128xf32, #tpu.memory_space<vmem>>, vector<1x128x128xf32>
    %25 = vector.shape_cast %24 : vector<1x128x128xf32> to vector<128x128xf32>
    %cst_30 = arith.constant dense<0.000000e+00> : vector<288x128xf32>
    %26 = tpu.matmul %23, %25, %cst_30 {dimension_numbers = #tpu.dot_dimension_numbers<[1], [0], [0], [1], [0, 0, 1, 1], [], []>} : vector<288x128xf32>, vector<128x128xf32>, vector<288x128xf32> -> vector<288x128xf32>
    %27 = arith.addf %21, %26 : vector<288x128xf32>
    %c1_31 = arith.constant 1 : index
    %c0_32 = arith.constant 0 : index
    %c0_33 = arith.constant 0 : index
    %28 = vector.load %arg10[%c1_31, %c0_32, %c0_33] : memref<20x18x128xf32, #tpu.memory_space<vmem>>, vector<18x16x128xf32>
    %29 = vector.shape_cast %28 : vector<18x16x128xf32> to vector<288x128xf32>
    %c3 = arith.constant 3 : index
    %c0_34 = arith.constant 0 : index
    %c0_35 = arith.constant 0 : index
    %30 = vector.load %arg5[%c3, %c0_34, %c0_35] : memref<9x128x128xf32, #tpu.memory_space<vmem>>, vector<1x128x128xf32>
    %31 = vector.shape_cast %30 : vector<1x128x128xf32> to vector<128x128xf32>
    %cst_36 = arith.constant dense<0.000000e+00> : vector<288x128xf32>
    %32 = tpu.matmul %29, %31, %cst_36 {dimension_numbers = #tpu.dot_dimension_numbers<[1], [0], [0], [1], [0, 0, 1, 1], [], []>} : vector<288x128xf32>, vector<128x128xf32>, vector<288x128xf32> -> vector<288x128xf32>
    %33 = arith.addf %27, %32 : vector<288x128xf32>
    %c1_37 = arith.constant 1 : index
    %c1_38 = arith.constant 1 : index
    %c0_39 = arith.constant 0 : index
    %34 = vector.load %arg10[%c1_37, %c1_38, %c0_39] : memref<20x18x128xf32, #tpu.memory_space<vmem>>, vector<18x16x128xf32>
    %35 = vector.shape_cast %34 : vector<18x16x128xf32> to vector<288x128xf32>
    %c4 = arith.constant 4 : index
    %c0_40 = arith.constant 0 : index
    %c0_41 = arith.constant 0 : index
    %36 = vector.load %arg5[%c4, %c0_40, %c0_41] : memref<9x128x128xf32, #tpu.memory_space<vmem>>, vector<1x128x128xf32>
    %37 = vector.shape_cast %36 : vector<1x128x128xf32> to vector<128x128xf32>
    %cst_42 = arith.constant dense<0.000000e+00> : vector<288x128xf32>
    %38 = tpu.matmul %35, %37, %cst_42 {dimension_numbers = #tpu.dot_dimension_numbers<[1], [0], [0], [1], [0, 0, 1, 1], [], []>} : vector<288x128xf32>, vector<128x128xf32>, vector<288x128xf32> -> vector<288x128xf32>
    %39 = arith.addf %33, %38 : vector<288x128xf32>
    %c1_43 = arith.constant 1 : index
    %c2_44 = arith.constant 2 : index
    %c0_45 = arith.constant 0 : index
    %40 = vector.load %arg10[%c1_43, %c2_44, %c0_45] : memref<20x18x128xf32, #tpu.memory_space<vmem>>, vector<18x16x128xf32>
    %41 = vector.shape_cast %40 : vector<18x16x128xf32> to vector<288x128xf32>
    %c5 = arith.constant 5 : index
    %c0_46 = arith.constant 0 : index
    %c0_47 = arith.constant 0 : index
    %42 = vector.load %arg5[%c5, %c0_46, %c0_47] : memref<9x128x128xf32, #tpu.memory_space<vmem>>, vector<1x128x128xf32>
    %43 = vector.shape_cast %42 : vector<1x128x128xf32> to vector<128x128xf32>
    %cst_48 = arith.constant dense<0.000000e+00> : vector<288x128xf32>
    %44 = tpu.matmul %41, %43, %cst_48 {dimension_numbers = #tpu.dot_dimension_numbers<[1], [0], [0], [1], [0, 0, 1, 1], [], []>} : vector<288x128xf32>, vector<128x128xf32>, vector<288x128xf32> -> vector<288x128xf32>
    %45 = arith.addf %39, %44 : vector<288x128xf32>
    %c2_49 = arith.constant 2 : index
    %c0_50 = arith.constant 0 : index
    %c0_51 = arith.constant 0 : index
    %46 = vector.load %arg10[%c2_49, %c0_50, %c0_51] : memref<20x18x128xf32, #tpu.memory_space<vmem>>, vector<18x16x128xf32>
    %47 = vector.shape_cast %46 : vector<18x16x128xf32> to vector<288x128xf32>
    %c6 = arith.constant 6 : index
    %c0_52 = arith.constant 0 : index
    %c0_53 = arith.constant 0 : index
    %48 = vector.load %arg5[%c6, %c0_52, %c0_53] : memref<9x128x128xf32, #tpu.memory_space<vmem>>, vector<1x128x128xf32>
    %49 = vector.shape_cast %48 : vector<1x128x128xf32> to vector<128x128xf32>
    %cst_54 = arith.constant dense<0.000000e+00> : vector<288x128xf32>
    %50 = tpu.matmul %47, %49, %cst_54 {dimension_numbers = #tpu.dot_dimension_numbers<[1], [0], [0], [1], [0, 0, 1, 1], [], []>} : vector<288x128xf32>, vector<128x128xf32>, vector<288x128xf32> -> vector<288x128xf32>
    %51 = arith.addf %45, %50 : vector<288x128xf32>
    %c2_55 = arith.constant 2 : index
    %c1_56 = arith.constant 1 : index
    %c0_57 = arith.constant 0 : index
    %52 = vector.load %arg10[%c2_55, %c1_56, %c0_57] : memref<20x18x128xf32, #tpu.memory_space<vmem>>, vector<18x16x128xf32>
    %53 = vector.shape_cast %52 : vector<18x16x128xf32> to vector<288x128xf32>
    %c7 = arith.constant 7 : index
    %c0_58 = arith.constant 0 : index
    %c0_59 = arith.constant 0 : index
    %54 = vector.load %arg5[%c7, %c0_58, %c0_59] : memref<9x128x128xf32, #tpu.memory_space<vmem>>, vector<1x128x128xf32>
    %55 = vector.shape_cast %54 : vector<1x128x128xf32> to vector<128x128xf32>
    %cst_60 = arith.constant dense<0.000000e+00> : vector<288x128xf32>
    %56 = tpu.matmul %53, %55, %cst_60 {dimension_numbers = #tpu.dot_dimension_numbers<[1], [0], [0], [1], [0, 0, 1, 1], [], []>} : vector<288x128xf32>, vector<128x128xf32>, vector<288x128xf32> -> vector<288x128xf32>
    %57 = arith.addf %51, %56 : vector<288x128xf32>
    %c2_61 = arith.constant 2 : index
    %c2_62 = arith.constant 2 : index
    %c0_63 = arith.constant 0 : index
    %58 = vector.load %arg10[%c2_61, %c2_62, %c0_63] : memref<20x18x128xf32, #tpu.memory_space<vmem>>, vector<18x16x128xf32>
    %59 = vector.shape_cast %58 : vector<18x16x128xf32> to vector<288x128xf32>
    %c8 = arith.constant 8 : index
    %c0_64 = arith.constant 0 : index
    %c0_65 = arith.constant 0 : index
    %60 = vector.load %arg5[%c8, %c0_64, %c0_65] : memref<9x128x128xf32, #tpu.memory_space<vmem>>, vector<1x128x128xf32>
    %61 = vector.shape_cast %60 : vector<1x128x128xf32> to vector<128x128xf32>
    %cst_66 = arith.constant dense<0.000000e+00> : vector<288x128xf32>
    %62 = tpu.matmul %59, %61, %cst_66 {dimension_numbers = #tpu.dot_dimension_numbers<[1], [0], [0], [1], [0, 0, 1, 1], [], []>} : vector<288x128xf32>, vector<128x128xf32>, vector<288x128xf32> -> vector<288x128xf32>
    %63 = arith.addf %57, %62 : vector<288x128xf32>
    %c0_67 = arith.constant 0 : index
    %c0_68 = arith.constant 0 : index
    %64 = vector.load %arg6[%c0_67, %c0_68] : memref<1x128xf32, #tpu.memory_space<vmem>>, vector<1x128xf32>
    %65 = vector.broadcast %64 : vector<1x128xf32> to vector<288x128xf32>
    %66 = arith.addf %63, %65 : vector<288x128xf32>
    %cst_69 = arith.constant 0.000000e+00 : f32
    %67 = vector.broadcast %cst_69 : f32 to vector<18x1x128xf32>
    %c0_70 = arith.constant 0 : index
    %c0_71 = arith.constant 0 : index
    %c0_72 = arith.constant 0 : index
    %68 = vector.load %arg11[%c0_70, %c0_71, %c0_72] : memref<18x18x128xf32, #tpu.memory_space<vmem>>, vector<18x1x128xf32>
    tpu.vector_store %arg11[%c0_70, %c0_71, %c0_72], %67 {strides = array<i32>} : memref<18x18x128xf32, #tpu.memory_space<vmem>>, vector<18x1x128xf32>,
    %cst_73 = arith.constant 0.000000e+00 : f32
    %69 = vector.broadcast %cst_73 : f32 to vector<18x1x128xf32>
    %c0_74 = arith.constant 0 : index
    %c17 = arith.constant 17 : index
    %c0_75 = arith.constant 0 : index
    %70 = vector.load %arg11[%c0_74, %c17, %c0_75] : memref<18x18x128xf32, #tpu.memory_space<vmem>>, vector<18x1x128xf32>
    tpu.vector_store %arg11[%c0_74, %c17, %c0_75], %69 {strides = array<i32>} : memref<18x18x128xf32, #tpu.memory_space<vmem>>, vector<18x1x128xf32>,
    %71 = vector.shape_cast %66 : vector<288x128xf32> to vector<18x16x128xf32>
    %c0_76 = arith.constant 0 : index
    %c1_77 = arith.constant 1 : index
    %c0_78 = arith.constant 0 : index
    %72 = vector.load %arg11[%c0_76, %c1_77, %c0_78] : memref<18x18x128xf32, #tpu.memory_space<vmem>>, vector<18x16x128xf32>
    tpu.vector_store %arg11[%c0_76, %c1_77, %c0_78], %71 {strides = array<i32>} : memref<18x18x128xf32, #tpu.memory_space<vmem>>, vector<18x16x128xf32>,
    %c0_i32_79 = arith.constant 0 : i32
    %73 = arith.cmpi eq, %arg1, %c0_i32_79 : i32
    %74 = arith.extui %73 : i1 to i32
    %c0_i32_80 = arith.constant 0 : i32
    %75 = arith.cmpi ne, %74, %c0_i32_80 : i32
    scf.if %75 {
      %cst_152 = arith.constant 0.000000e+00 : f32
      %140 = vector.broadcast %cst_152 : f32 to vector<1x18x128xf32>
      %c0_153 = arith.constant 0 : index
      %c0_154 = arith.constant 0 : index
      %c0_155 = arith.constant 0 : index
      %141 = vector.load %arg11[%c0_153, %c0_154, %c0_155] : memref<18x18x128xf32, #tpu.memory_space<vmem>>, vector<1x18x128xf32>
      tpu.vector_store %arg11[%c0_153, %c0_154, %c0_155], %140 {strides = array<i32>} : memref<18x18x128xf32, #tpu.memory_space<vmem>>, vector<1x18x128xf32>,
    } else {
    }
    %c0_i32_81 = arith.constant 0 : i32
    %76 = arith.cmpi eq, %arg1, %c0_i32_81 : i32
    %77 = arith.extui %76 : i1 to i32
    %c0_i32_82 = arith.constant 0 : i32
    %78 = arith.cmpi ne, %77, %c0_i32_82 : i32
    scf.if %78 {
      %cst_152 = arith.constant 0.000000e+00 : f32
      %140 = vector.broadcast %cst_152 : f32 to vector<1x18x128xf32>
      %c17_153 = arith.constant 17 : index
      %c0_154 = arith.constant 0 : index
      %c0_155 = arith.constant 0 : index
      %141 = vector.load %arg11[%c17_153, %c0_154, %c0_155] : memref<18x18x128xf32, #tpu.memory_space<vmem>>, vector<1x18x128xf32>
      tpu.vector_store %arg11[%c17_153, %c0_154, %c0_155], %140 {strides = array<i32>} : memref<18x18x128xf32, #tpu.memory_space<vmem>>, vector<1x18x128xf32>,
    } else {
    }
    %c0_83 = arith.constant 0 : index
    %c0_84 = arith.constant 0 : index
    %c0_85 = arith.constant 0 : index
    %79 = vector.load %arg11[%c0_83, %c0_84, %c0_85] : memref<18x18x128xf32, #tpu.memory_space<vmem>>, vector<16x16x128xf32>
    %80 = vector.shape_cast %79 : vector<16x16x128xf32> to vector<256x128xf32>
    %c0_86 = arith.constant 0 : index
    %c0_87 = arith.constant 0 : index
    %c0_88 = arith.constant 0 : index
    %81 = vector.load %arg7[%c0_86, %c0_87, %c0_88] : memref<9x128x128xf32, #tpu.memory_space<vmem>>, vector<1x128x128xf32>
    %82 = vector.shape_cast %81 : vector<1x128x128xf32> to vector<128x128xf32>
    %cst_89 = arith.constant dense<0.000000e+00> : vector<256x128xf32>
    %83 = tpu.matmul %80, %82, %cst_89 {dimension_numbers = #tpu.dot_dimension_numbers<[1], [0], [0], [1], [0, 0, 1, 1], [], []>} : vector<256x128xf32>, vector<128x128xf32>, vector<256x128xf32> -> vector<256x128xf32>
    %c0_90 = arith.constant 0 : index
    %c1_91 = arith.constant 1 : index
    %c0_92 = arith.constant 0 : index
    %84 = vector.load %arg11[%c0_90, %c1_91, %c0_92] : memref<18x18x128xf32, #tpu.memory_space<vmem>>, vector<16x16x128xf32>
    %85 = vector.shape_cast %84 : vector<16x16x128xf32> to vector<256x128xf32>
    %c1_93 = arith.constant 1 : index
    %c0_94 = arith.constant 0 : index
    %c0_95 = arith.constant 0 : index
    %86 = vector.load %arg7[%c1_93, %c0_94, %c0_95] : memref<9x128x128xf32, #tpu.memory_space<vmem>>, vector<1x128x128xf32>
    %87 = vector.shape_cast %86 : vector<1x128x128xf32> to vector<128x128xf32>
    %cst_96 = arith.constant dense<0.000000e+00> : vector<256x128xf32>
    %88 = tpu.matmul %85, %87, %cst_96 {dimension_numbers = #tpu.dot_dimension_numbers<[1], [0], [0], [1], [0, 0, 1, 1], [], []>} : vector<256x128xf32>, vector<128x128xf32>, vector<256x128xf32> -> vector<256x128xf32>
    %89 = arith.addf %83, %88 : vector<256x128xf32>
    %c0_97 = arith.constant 0 : index
    %c2_98 = arith.constant 2 : index
    %c0_99 = arith.constant 0 : index
    %90 = vector.load %arg11[%c0_97, %c2_98, %c0_99] : memref<18x18x128xf32, #tpu.memory_space<vmem>>, vector<16x16x128xf32>
    %91 = vector.shape_cast %90 : vector<16x16x128xf32> to vector<256x128xf32>
    %c2_100 = arith.constant 2 : index
    %c0_101 = arith.constant 0 : index
    %c0_102 = arith.constant 0 : index
    %92 = vector.load %arg7[%c2_100, %c0_101, %c0_102] : memref<9x128x128xf32, #tpu.memory_space<vmem>>, vector<1x128x128xf32>
    %93 = vector.shape_cast %92 : vector<1x128x128xf32> to vector<128x128xf32>
    %cst_103 = arith.constant dense<0.000000e+00> : vector<256x128xf32>
    %94 = tpu.matmul %91, %93, %cst_103 {dimension_numbers = #tpu.dot_dimension_numbers<[1], [0], [0], [1], [0, 0, 1, 1], [], []>} : vector<256x128xf32>, vector<128x128xf32>, vector<256x128xf32> -> vector<256x128xf32>
    %95 = arith.addf %89, %94 : vector<256x128xf32>
    %c1_104 = arith.constant 1 : index
    %c0_105 = arith.constant 0 : index
    %c0_106 = arith.constant 0 : index
    %96 = vector.load %arg11[%c1_104, %c0_105, %c0_106] : memref<18x18x128xf32, #tpu.memory_space<vmem>>, vector<16x16x128xf32>
    %97 = vector.shape_cast %96 : vector<16x16x128xf32> to vector<256x128xf32>
    %c3_107 = arith.constant 3 : index
    %c0_108 = arith.constant 0 : index
    %c0_109 = arith.constant 0 : index
    %98 = vector.load %arg7[%c3_107, %c0_108, %c0_109] : memref<9x128x128xf32, #tpu.memory_space<vmem>>, vector<1x128x128xf32>
    %99 = vector.shape_cast %98 : vector<1x128x128xf32> to vector<128x128xf32>
    %cst_110 = arith.constant dense<0.000000e+00> : vector<256x128xf32>
    %100 = tpu.matmul %97, %99, %cst_110 {dimension_numbers = #tpu.dot_dimension_numbers<[1], [0], [0], [1], [0, 0, 1, 1], [], []>} : vector<256x128xf32>, vector<128x128xf32>, vector<256x128xf32> -> vector<256x128xf32>
    %101 = arith.addf %95, %100 : vector<256x128xf32>
    %c1_111 = arith.constant 1 : index
    %c1_112 = arith.constant 1 : index
    %c0_113 = arith.constant 0 : index
    %102 = vector.load %arg11[%c1_111, %c1_112, %c0_113] : memref<18x18x128xf32, #tpu.memory_space<vmem>>, vector<16x16x128xf32>
    %103 = vector.shape_cast %102 : vector<16x16x128xf32> to vector<256x128xf32>
    %c4_114 = arith.constant 4 : index
    %c0_115 = arith.constant 0 : index
    %c0_116 = arith.constant 0 : index
    %104 = vector.load %arg7[%c4_114, %c0_115, %c0_116] : memref<9x128x128xf32, #tpu.memory_space<vmem>>, vector<1x128x128xf32>
    %105 = vector.shape_cast %104 : vector<1x128x128xf32> to vector<128x128xf32>
    %cst_117 = arith.constant dense<0.000000e+00> : vector<256x128xf32>
    %106 = tpu.matmul %103, %105, %cst_117 {dimension_numbers = #tpu.dot_dimension_numbers<[1], [0], [0], [1], [0, 0, 1, 1], [], []>} : vector<256x128xf32>, vector<128x128xf32>, vector<256x128xf32> -> vector<256x128xf32>
    %107 = arith.addf %101, %106 : vector<256x128xf32>
    %c1_118 = arith.constant 1 : index
    %c2_119 = arith.constant 2 : index
    %c0_120 = arith.constant 0 : index
    %108 = vector.load %arg11[%c1_118, %c2_119, %c0_120] : memref<18x18x128xf32, #tpu.memory_space<vmem>>, vector<16x16x128xf32>
    %109 = vector.shape_cast %108 : vector<16x16x128xf32> to vector<256x128xf32>
    %c5_121 = arith.constant 5 : index
    %c0_122 = arith.constant 0 : index
    %c0_123 = arith.constant 0 : index
    %110 = vector.load %arg7[%c5_121, %c0_122, %c0_123] : memref<9x128x128xf32, #tpu.memory_space<vmem>>, vector<1x128x128xf32>
    %111 = vector.shape_cast %110 : vector<1x128x128xf32> to vector<128x128xf32>
    %cst_124 = arith.constant dense<0.000000e+00> : vector<256x128xf32>
    %112 = tpu.matmul %109, %111, %cst_124 {dimension_numbers = #tpu.dot_dimension_numbers<[1], [0], [0], [1], [0, 0, 1, 1], [], []>} : vector<256x128xf32>, vector<128x128xf32>, vector<256x128xf32> -> vector<256x128xf32>
    %113 = arith.addf %107, %112 : vector<256x128xf32>
    %c2_125 = arith.constant 2 : index
    %c0_126 = arith.constant 0 : index
    %c0_127 = arith.constant 0 : index
    %114 = vector.load %arg11[%c2_125, %c0_126, %c0_127] : memref<18x18x128xf32, #tpu.memory_space<vmem>>, vector<16x16x128xf32>
    %115 = vector.shape_cast %114 : vector<16x16x128xf32> to vector<256x128xf32>
    %c6_128 = arith.constant 6 : index
    %c0_129 = arith.constant 0 : index
    %c0_130 = arith.constant 0 : index
    %116 = vector.load %arg7[%c6_128, %c0_129, %c0_130] : memref<9x128x128xf32, #tpu.memory_space<vmem>>, vector<1x128x128xf32>
    %117 = vector.shape_cast %116 : vector<1x128x128xf32> to vector<128x128xf32>
    %cst_131 = arith.constant dense<0.000000e+00> : vector<256x128xf32>
    %118 = tpu.matmul %115, %117, %cst_131 {dimension_numbers = #tpu.dot_dimension_numbers<[1], [0], [0], [1], [0, 0, 1, 1], [], []>} : vector<256x128xf32>, vector<128x128xf32>, vector<256x128xf32> -> vector<256x128xf32>
    %119 = arith.addf %113, %118 : vector<256x128xf32>
    %c2_132 = arith.constant 2 : index
    %c1_133 = arith.constant 1 : index
    %c0_134 = arith.constant 0 : index
    %120 = vector.load %arg11[%c2_132, %c1_133, %c0_134] : memref<18x18x128xf32, #tpu.memory_space<vmem>>, vector<16x16x128xf32>
    %121 = vector.shape_cast %120 : vector<16x16x128xf32> to vector<256x128xf32>
    %c7_135 = arith.constant 7 : index
    %c0_136 = arith.constant 0 : index
    %c0_137 = arith.constant 0 : index
    %122 = vector.load %arg7[%c7_135, %c0_136, %c0_137] : memref<9x128x128xf32, #tpu.memory_space<vmem>>, vector<1x128x128xf32>
    %123 = vector.shape_cast %122 : vector<1x128x128xf32> to vector<128x128xf32>
    %cst_138 = arith.constant dense<0.000000e+00> : vector<256x128xf32>
    %124 = tpu.matmul %121, %123, %cst_138 {dimension_numbers = #tpu.dot_dimension_numbers<[1], [0], [0], [1], [0, 0, 1, 1], [], []>} : vector<256x128xf32>, vector<128x128xf32>, vector<256x128xf32> -> vector<256x128xf32>
    %125 = arith.addf %119, %124 : vector<256x128xf32>
    %c2_139 = arith.constant 2 : index
    %c2_140 = arith.constant 2 : index
    %c0_141 = arith.constant 0 : index
    %126 = vector.load %arg11[%c2_139, %c2_140, %c0_141] : memref<18x18x128xf32, #tpu.memory_space<vmem>>, vector<16x16x128xf32>
    %127 = vector.shape_cast %126 : vector<16x16x128xf32> to vector<256x128xf32>
    %c8_142 = arith.constant 8 : index
    %c0_143 = arith.constant 0 : index
    %c0_144 = arith.constant 0 : index
    %128 = vector.load %arg7[%c8_142, %c0_143, %c0_144] : memref<9x128x128xf32, #tpu.memory_space<vmem>>, vector<1x128x128xf32>
    %129 = vector.shape_cast %128 : vector<1x128x128xf32> to vector<128x128xf32>
    %cst_145 = arith.constant dense<0.000000e+00> : vector<256x128xf32>
    %130 = tpu.matmul %127, %129, %cst_145 {dimension_numbers = #tpu.dot_dimension_numbers<[1], [0], [0], [1], [0, 0, 1, 1], [], []>} : vector<256x128xf32>, vector<128x128xf32>, vector<256x128xf32> -> vector<256x128xf32>
    %131 = arith.addf %125, %130 : vector<256x128xf32>
    %c0_146 = arith.constant 0 : index
    %c0_147 = arith.constant 0 : index
    %132 = vector.load %arg8[%c0_146, %c0_147] : memref<1x128xf32, #tpu.memory_space<vmem>>, vector<1x128xf32>
    %133 = vector.broadcast %132 : vector<1x128xf32> to vector<256x128xf32>
    %134 = arith.addf %131, %133 : vector<256x128xf32>
    %135 = vector.extract_strided_slice %134 {offsets = [0, 0], sizes = [256, 4], strides = [1, 1]} : vector<256x128xf32> to vector<256x4xf32>
    %136 = vector.shape_cast %135 : vector<256x4xf32> to vector<16x16x4xf32>
    %c0_148 = arith.constant 0 : index
    %c0_149 = arith.constant 0 : index
    %c0_150 = arith.constant 0 : index
    %c0_151 = arith.constant 0 : index
    %137 = vector.load %arg9[%c0_148, %c0_149, %c0_150, %c0_151] : memref<1x16x16x4xf32, #tpu.memory_space<vmem>>, vector<1x16x16x4xf32>
    %138 = vector.shape_cast %137 : vector<1x16x16x4xf32> to vector<16x16x4xf32>
    %139 = vector.shape_cast %136 : vector<16x16x4xf32> to vector<1x16x16x4xf32>
    tpu.vector_store %arg9[%c0_148, %c0_149, %c0_150, %c0_151], %139 {strides = array<i32>} : memref<1x16x16x4xf32, #tpu.memory_space<vmem>>, vector<1x16x16x4xf32>,
    return
  }
  func.func @transform_0(%arg0: i32, %arg1: i32) -> (i32, i32, i32, i32) {
    %c0_i32 = arith.constant 0 : i32
    %c0_i32_0 = arith.constant 0 : i32
    %c0_i32_1 = arith.constant 0 : i32
    return %arg0, %arg1, %c0_i32, %c0_i32_0 : i32, i32, i32, i32
  }
  func.func @transform_1(%arg0: i32, %arg1: i32) -> (i32, i32, i32, i32) {
    %c8_i32 = arith.constant 8 : i32
    %0 = arith.muli %arg1, %c8_i32 : i32
    %c1_i32 = arith.constant 1 : i32
    %1 = arith.subi %0, %c1_i32 : i32
    %c0_i32 = arith.constant 0 : i32
    %2 = arith.maxsi %1, %c0_i32 : i32
    %c0_i32_0 = arith.constant 0 : i32
    %c0_i32_1 = arith.constant 0 : i32
    %c0_i32_2 = arith.constant 0 : i32
    return %arg0, %2, %c0_i32_0, %c0_i32_1 : i32, i32, i32, i32
  }
  func.func @transform_2(%arg0: i32, %arg1: i32) -> (i32, i32, i32, i32) {
    %c1_i32 = arith.constant 1 : i32
    %0 = arith.addi %arg1, %c1_i32 : i32
    %c8_i32 = arith.constant 8 : i32
    %1 = arith.muli %0, %c8_i32 : i32
    %c7_i32 = arith.constant 7 : i32
    %2 = arith.minsi %1, %c7_i32 : i32
    %c0_i32 = arith.constant 0 : i32
    %c0_i32_0 = arith.constant 0 : i32
    %c0_i32_1 = arith.constant 0 : i32
    return %arg0, %2, %c0_i32, %c0_i32_0 : i32, i32, i32, i32
  }
  func.func @transform_3(%arg0: i32, %arg1: i32) -> (i32, i32, i32) {
    %c0_i32 = arith.constant 0 : i32
    %c0_i32_0 = arith.constant 0 : i32
    %c0_i32_1 = arith.constant 0 : i32
    %c0_i32_2 = arith.constant 0 : i32
    return %c0_i32, %c0_i32_0, %c0_i32_1 : i32, i32, i32
  }
  func.func @transform_4(%arg0: i32, %arg1: i32) -> (i32, i32) {
    %c0_i32 = arith.constant 0 : i32
    %c0_i32_0 = arith.constant 0 : i32
    %c0_i32_1 = arith.constant 0 : i32
    return %c0_i32, %c0_i32_0 : i32, i32
  }
  func.func @transform_5(%arg0: i32, %arg1: i32) -> (i32, i32, i32) {
    %c0_i32 = arith.constant 0 : i32
    %c0_i32_0 = arith.constant 0 : i32
    %c0_i32_1 = arith.constant 0 : i32
    %c0_i32_2 = arith.constant 0 : i32
    return %c0_i32, %c0_i32_0, %c0_i32_1 : i32, i32, i32
  }
  func.func @transform_6(%arg0: i32, %arg1: i32) -> (i32, i32) {
    %c0_i32 = arith.constant 0 : i32
    %c0_i32_0 = arith.constant 0 : i32
    %c0_i32_1 = arith.constant 0 : i32
    return %c0_i32, %c0_i32_0 : i32, i32
  }
  func.func @transform_7(%arg0: i32, %arg1: i32) -> (i32, i32, i32, i32) {
    %c0_i32 = arith.constant 0 : i32
    %c0_i32_0 = arith.constant 0 : i32
    %c0_i32_1 = arith.constant 0 : i32
    return %arg0, %arg1, %c0_i32, %c0_i32_0 : i32, i32, i32, i32
  }
}

</mosaic_0001>

<bundles_post_ra>
// kernel: refine_forward.1
= control target key start
LH: loop header
LB: loop body
LE: loop exit
PB: predicated region body
PF: predicated region fallthrough
CT: control target
= control target key end

     0   :  { %12 = vsyncpa [#allocation5], 0  ;;  %s6902_s0 = inlined_call_operand.vmem [shape: f32[2,16,16,4], index: 0, kind: input, shape index: {}, may-alias: {0,1,2}]   ;;  %s6903_s1 = inlined_call_operand.vmem [shape: f32[2,16,16,4], index: 1, kind: input, shape index: {}, may-alias: {0,1,2}]   ;;  %s6904_s2 = inlined_call_operand.vmem [shape: f32[2,16,16,4], index: 2, kind: input, shape index: {}, may-alias: {0,1,2}]   ;;  %s6905_s3 = inlined_call_operand.hbm [shape: f32[9,128,128], index: 3, kind: input, shape index: {}]   ;;  %s6906_s4 = inlined_call_operand.vmem [shape: f32[1,128], index: 4, kind: input, shape index: {}]   ;;  %s6907_s5 = inlined_call_operand.hbm [shape: f32[9,128,128], index: 5, kind: input, shape index: {}]   ;;  %s6908_s6 = inlined_call_operand.vmem [shape: f32[1,128], index: 6, kind: input, shape index: {}]   ;;  %s6909_s7 = inlined_call_operand.vmem [shape: f32[2,16,16,4], index: 7, kind: output, shape index: {}]  }
   0x1   :  { %13 = vsyncpa [#allocation7], 0  ;;  %s4793_s1 = smov 0   ;;  %s4795_s2 = smov 0  }
   0x2   :  { %s4797_s24 = smov 0  }
   0x3 LB: > { %s4530_s25 = sadd.s32 4294967295, %s4746_s24   ;;  %s31_s26 = sadd.s32 1, %s4742_s2  ;;  %s4746_s24 = sphi %s4797_s24, %s19_s24   ;;  %s4742_s2 = sphi %s4795_s2, %s7369_s2   ;;  %s4738_s1 = sphi %s4793_s1, %s7368_s1  }
   0x4   : > { %p33_p0 = scmp.ge.s32.totalorder %s31_s26, 2  ;;  %p4532_p1 = scmp.ge.s32.totalorder %s4746_s24, 1 }
   0x5   : > { %p248_p2 = scmp.lt.s32.totalorder %s4746_s24, 3  ;;  %p4818_p4 = scmp.eq.s32.totalorder %s4530_s25, 0 }
   0x6   : > { %s7371_s26 = smov (%p33_p0, %s31_s26), 0  ;;  %s259_s8 = sshll.u32 %s6905_s3, 4  ;;  %s260_s8 = int_to_ptr.hbm [resolvable:$true] %s259_s8 }
   0x7   : > { %p4814_p3 = pnand %p4532_p1, %p248_p2  ;;  %s4748_s9 = smov [#allocation4]  }
   0x8   : > { %s261_s10 = sshll.u32 %s4748_s9, 4  ;;  %s276_s13 = sshll.u32 %s6907_s5, 4  ;;  %s262_s10 = int_to_ptr.vmem [resolvable:$true] %s261_s10  ;;  %s277_s13 = int_to_ptr.hbm [resolvable:$true] %s276_s13 }
   0x9   : > { %p4610_p5 = pneg %p4814_p3  ;;  %s4749_s14 = smov 128  }
   0xa   : > { %s4750_s15 = smov 8   ;;  %s4751_s16 = smov [#allocation6]  }
   0xb   : > { %p4611_p6 = pnand %p4818_p4, %p4610_p5  ;;  %s278_s17 = sshll.u32 %s4751_s16, 4  ;;  %s279_s17 = int_to_ptr.vmem [resolvable:$true] %s278_s17 }
   0xc   : > { %355 = sbr.rel (%p4814_p3) target bundleno = 1833 (0x729), region = 48 }
   0xd   : > { %4613 = dma.hbm_to_vmem [thread:$0]  (!%p4611_p6), %s260_s8, 18432, %s262_s10, [#allocation5], %s4749_s14, %s4749_s14, %s4750_s15  }
   0xe   : > { %4616 = dma.hbm_to_vmem [thread:$0]  (!%p4611_p6), %s277_s13, 18432, %s279_s17, [#allocation7], %s4749_s14, %s4749_s14, %s4750_s15  }
  0x11   : > { %4729 = dma.done.wait (%p4818_p4), [#allocation5], 18432  }
  0x12   : > { %4731 = vsyncadd (%p4818_p4), [#allocation5], 4294948864 }
  0x13   : > { %4733 = dma.done.wait (%p4818_p4), [#allocation7], 18432  }
  0x14   : > { %4735 = vsyncadd (%p4818_p4), [#allocation7], 4294948864  ;;  %v4752_v0 = vmov 0.0   ;;  %v746_v1 = vld [vmem:[#allocation4 + $0xf8] sm:$0xff]  ;;  %v745_v3 = vld [vmem:[#allocation4 + $0xf0] sm:$0xff]  ;;  %p432_p7 = scmp.lt.s32.totalorder %s4738_s1, 1 }
  0x15   : > { %491 = vst [vmem:[#allocation2] sm:$0xff] %v4752_v0  ;;  %v693_v2 = vld [vmem:[#allocation4 + $0x78] sm:$0xff]  ;;  %747 = vmatpush.msra.mxu0 %v746_v1  ;;  %v692_v4 = vld [vmem:[#allocation4 + $0x70] sm:$0xff]  ;;  %v744_v5 = vld [vmem:[#allocation4 + $0xe8] sm:$0xff]  ;;  %vm584_vm0 = vcmask 31744  }
  0x16   : > { %492 = vst [vmem:[#allocation2 + $0x8] sm:$0xff] %v4752_v0  ;;  %872 = vmatpush.msra.mxu1 %v693_v2  ;;  %4554 = vmatpush.msra.mxu3 %v693_v2  ;;  %v691_v6 = vld [vmem:[#allocation4 + $0x68] sm:$0xff]  ;;  %v743_v7 = vld [vmem:[#allocation4 + $0xe0] sm:$0xff]  ;;  %v742_v9 = vld [vmem:[#allocation4 + $0xd8] sm:$0xff]  ;;  %s7373_s1 = smov (!%p432_p7, %s4738_s1), 1 }
  0x17   : > { %493 = vst [vmem:[#allocation2 + $0x10] sm:$0x3] %v4752_v0  ;;  %748 = vmatpush.msra.mxu0 %v745_v3  ;;  %v690_v8 = vld [vmem:[#allocation4 + $0x60] sm:$0xff]  ;;  %v689_v10 = vld [vmem:[#allocation4 + $0x58] sm:$0xff]  ;;  %v741_v11 = vld [vmem:[#allocation4 + $0xd0] sm:$0xff]  ;;  %s4549_s18 = sshll.u32 %s7373_s1, 8 }
  0x18   : > { %494 = vst [vmem:[#allocation2 + $0x18] sm:$0xff] %v4752_v0  ;;  %873 = vmatpush.msra.mxu1 %v692_v4  ;;  %4555 = vmatpush.msra.mxu3 %v692_v4  ;;  %v688_v12 = vld [vmem:[#allocation4 + $0x50] sm:$0xff]  ;;  %v740_v13 = vld [vmem:[#allocation4 + $0xc8] sm:$0xff]  ;;  %v739_v15 = vld [vmem:[#allocation4 + $0xc0] sm:$0xff]  ;;  %s4945_s21 = scalar_lea.vmem %s6902_s0, %s4549_s18  ;;  %s6709_s9 = scalar_lea.vmem %s6909_s7, %s4549_s18 }
  0x19   : > { %495 = vst [vmem:[#allocation2 + $0x20] sm:$0xff] %v4752_v0  ;;  %749 = vmatpush.msra.mxu0 %v744_v5  ;;  %v687_v14 = vld [vmem:[#allocation4 + $0x48] sm:$0xff]  ;;  %v686_v16 = vld [vmem:[#allocation4 + $0x40] sm:$0xff]  ;;  %v738_v17 = vld [vmem:[#allocation4 + $0xb8] sm:$0xff] }
  0x1a   : > { %496 = vst [vmem:[#allocation2 + $0x28] sm:$0x3] %v4752_v0  ;;  %874 = vmatpush.msra.mxu1 %v691_v6  ;;  %4556 = vmatpush.msra.mxu3 %v691_v6  ;;  %v685_v18 = vld [vmem:[#allocation4 + $0x38] sm:$0xff]  ;;  %v737_v19 = vld [vmem:[#allocation4 + $0xb0] sm:$0xff]  ;;  %v736_v21 = vld [vmem:[#allocation4 + $0xa8] sm:$0xff] }
  0x1b   : > { %497 = vst [vmem:[#allocation2 + $0x30] sm:$0xff] %v4752_v0  ;;  %750 = vmatpush.msra.mxu0 %v743_v7  ;;  %v684_v20 = vld [vmem:[#allocation4 + $0x30] sm:$0xff]  ;;  %v683_v22 = vld [vmem:[#allocation4 + $0x28] sm:$0xff]  ;;  %v735_v23 = vld [vmem:[#allocation4 + $0xa0] sm:$0xff] }
  0x1c   : > { %498 = vst [vmem:[#allocation2 + $0x38] sm:$0xff] %v4752_v0  ;;  %875 = vmatpush.msra.mxu1 %v690_v8  ;;  %4557 = vmatpush.msra.mxu3 %v690_v8  ;;  %v682_v24 = vld [vmem:[#allocation4 + $0x20] sm:$0xff]  ;;  %v734_v25 = vld [vmem:[#allocation4 + $0x98] sm:$0xff]  ;;  %v733_v27 = vld [vmem:[#allocation4 + $0x90] sm:$0xff] }
  0x1d   : > { %499 = vst [vmem:[#allocation2 + $0x40] sm:$0x3] %v4752_v0  ;;  %751 = vmatpush.msra.mxu0 %v742_v9  ;;  %v681_v26 = vld [vmem:[#allocation4 + $0x18] sm:$0xff]  ;;  %v680_v28 = vld [vmem:[#allocation4 + $0x10] sm:$0xff]  ;;  %v732_v29 = vld [vmem:[#allocation4 + $0x88] sm:$0xff] }
  0x1e   : > { %500 = vst [vmem:[#allocation2 + $0x48] sm:$0xff] %v4752_v0  ;;  %876 = vmatpush.msra.mxu1 %v689_v10  ;;  %4558 = vmatpush.msra.mxu3 %v689_v10  ;;  %v679_v30 = vld [vmem:[#allocation4 + $0x8] sm:$0xff]  ;;  %v731_v31 = vld [vmem:[#allocation4 + $0x80] sm:$0xff]  ;;  %v694_v33 = vld [vmem:[#allocation2 + $0x1] sm:$0xff] }
  0x1f   : > { %501 = vst [vmem:[#allocation2 + $0x50] sm:$0xff] %v4752_v0  ;;  %752 = vmatpush.msra.mxu0 %v741_v11  ;;  %v678_v32 = vld [vmem:[#allocation4] sm:$0xff]  ;;  %v1049_v34 = vld [vmem:[#allocation4 + $0x178] sm:$0xff]  ;;  %v1048_v37 = vld [vmem:[#allocation4 + $0x170] sm:$0xff] }
  0x20   : > { %502 = vst [vmem:[#allocation2 + $0x58] sm:$0x3] %v4752_v0  ;;  %877 = vmatpush.msra.mxu1 %v688_v12  ;;  %4559 = vmatpush.msra.mxu3 %v688_v12  ;;  %v695_v35 = vld [vmem:[#allocation2 + $0x9] sm:$0xff]  ;;  %v696_v36 = vld [vmem:[#allocation2 + $0x19] sm:$0xff] }
  0x21   : > { %503 = vst [vmem:[#allocation2 + $0x60] sm:$0xff] %v4752_v0  ;;  %753 = vmatpush.msra.mxu0 %v740_v13  ;;  %4570 = vmatpush.msra.mxu2 %v1049_v34  ;;  %v697_v38 = vld [vmem:[#allocation2 + $0x21] sm:$0xff]  ;;  %v569_v41 = vld [vmem:[%s4945_s21 + $0x90] sm:$0xff]  ;;  %v570_v42 = vld [vmem:[%s4945_s21 + $0x98] sm:$0xff] }
  0x22   : > { %504 = vst [vmem:[#allocation2 + $0x68] sm:$0xff] %v4752_v0  ;;  %878 = vmatpush.msra.mxu1 %v687_v14  ;;  %4560 = vmatpush.msra.mxu3 %v687_v14  ;;  %v567_v39 = vld [vmem:[%s4945_s21 + $0x80] sm:$0xff]  ;;  %v568_v40 = vld [vmem:[%s4945_s21 + $0x88] sm:$0xff]  ;;  %v573_v48 = vld [vmem:[%s4945_s21 + $0xb0] sm:$0xff] }
  0x23   : > { %505 = vst [vmem:[#allocation2 + $0x70] sm:$0x3] %v4752_v0  ;;  %754 = vmatpush.msra.mxu0 %v739_v15  ;;  %4571 = vmatpush.msra.mxu2 %v1048_v37  ;;  %v571_v43 = vld [vmem:[%s4945_s21 + $0xa0] sm:$0xff]  ;;  %v572_v45 = vld [vmem:[%s4945_s21 + $0xa8] sm:$0xff]  ;;  %v1047_v49 = vld [vmem:[#allocation4 + $0x168] sm:$0xff] }
  0x24   : > { %506 = vst [vmem:[#allocation2 + $0x78] sm:$0xff] %v4752_v0  ;;  %879 = vmatpush.msra.mxu1 %v686_v16  ;;  %4561 = vmatpush.msra.mxu3 %v686_v16  ;;  %v551_v44 = vld [vmem:[%s4945_s21] sm:$0xff]  ;;  %v552_v47 = vld [vmem:[%s4945_s21 + $0x8] sm:$0xff]  ;;  %v553_v53 = vld [vmem:[%s4945_s21 + $0x10] sm:$0xff] }
  0x25   : > { %507 = vst [vmem:[#allocation2 + $0x80] sm:$0xff] %v4752_v0  ;;  %755 = vmatpush.msra.mxu0 %v738_v17  ;;  %4572 = vmatpush.msra.mxu2 %v1047_v49  ;;  %v574_v54 = vld [vmem:[%s4945_s21 + $0xb8] sm:$0xff]  ;;  %v1046_v59 = vld [vmem:[#allocation4 + $0x160] sm:$0xff]  ;;  %v575_v60 = vld [vmem:[%s4945_s21 + $0xc0] sm:$0xff] }
  0x26   : > { %508 = vst [vmem:[#allocation2 + $0x88] sm:$0x3] %v4752_v0  ;;  %880 = vmatpush.msra.mxu1 %v685_v18  ;;  %4562 = vmatpush.msra.mxu3 %v685_v18  ;;  %v554_v58 = vld [vmem:[%s4945_s21 + $0x18] sm:$0xff]  ;;  %v555_v1 = vld [vmem:[%s4945_s21 + $0x20] sm:$0xff]  ;;  %v576_v2 = vld [vmem:[%s4945_s21 + $0xc8] sm:$0xff] }
  0x27   : > { %509 = vst [vmem:[#allocation2 + $0x90] sm:$0xff] %v4752_v0  ;;  %756 = vmatpush.msra.mxu0 %v737_v19  ;;  %4573 = vmatpush.msra.mxu2 %v1046_v59  ;;  %v556_v6 = vld [vmem:[%s4945_s21 + $0x28] sm:$0xff]  ;;  %v577_v7 = vld [vmem:[%s4945_s21 + $0xd0] sm:$0xff]  ;;  %v578_v13 = vld [vmem:[%s4945_s21 + $0xd8] sm:$0xff] }
  0x28   : > { %510 = vst [vmem:[#allocation2 + $0x98] sm:$0xff] %v4752_v0  ;;  %881 = vmatpush.msra.mxu1 %v684_v20  ;;  %4563 = vmatpush.msra.mxu3 %v684_v20  ;;  %v557_v11 = vld [vmem:[%s4945_s21 + $0x30] sm:$0xff]  ;;  %v1045_v12 = vld [vmem:[#allocation4 + $0x158] sm:$0xff]  ;;  %v558_v17 = vld [vmem:[%s4945_s21 + $0x38] sm:$0xff] }
  0x29   : > { %511 = vst [vmem:[#allocation2 + $0xa0] sm:$0x3] %v4752_v0  ;;  %757 = vmatpush.msra.mxu0 %v736_v21  ;;  %4574 = vmatpush.msra.mxu2 %v1045_v12  ;;  %v579_v18 = vld [vmem:[%s4945_s21 + $0xe0] sm:$0xff] }
  0x2a   : > { %512 = vst [vmem:[#allocation2 + $0xa8] sm:$0xff] %v4752_v0  ;;  %882 = vmatpush.msra.mxu1 %v683_v22  ;;  %4564 = vmatpush.msra.mxu3 %v683_v22  ;;  %v559_v22 = vld [vmem:[%s4945_s21 + $0x40] sm:$0xff] }
  0x2b   : > { %513 = vst [vmem:[#allocation2 + $0xb0] sm:$0xff] %v4752_v0  ;;  %758 = vmatpush.msra.mxu0 %v735_v23  ;;  %v1264_v23 = vld [vmem:[#allocation4 + $0x1f8] sm:$0xff] }
  0x2c   : > { %514 = vst [vmem:[#allocation2 + $0xb8] sm:$0x3] %v4752_v0  ;;  %883 = vmatpush.msra.mxu1 %v682_v24  ;;  %4565 = vmatpush.msra.mxu3 %v682_v24  ;;  %v1044_v24 = vld [vmem:[#allocation4 + $0x150] sm:$0xff] }
  0x2d   : > { %515 = vst [vmem:[#allocation2 + $0xc0] sm:$0xff] %v4752_v0  ;;  %759 = vmatpush.msra.mxu0 %v734_v25  ;;  %4575 = vmatpush.msra.mxu2 %v1044_v24 }
  0x2e   : > { %516 = vst [vmem:[#allocation2 + $0xc8] sm:$0xff] %v4752_v0  ;;  %884 = vmatpush.msra.mxu1 %v681_v26  ;;  %4566 = vmatpush.msra.mxu3 %v681_v26 }
  0x2f   : > { %517 = vst [vmem:[#allocation2 + $0xd0] sm:$0x3] %v4752_v0  ;;  %760 = vmatpush.msra.mxu0 %v733_v27  ;;  %v1263_v27 = vld [vmem:[#allocation4 + $0x1f0] sm:$0xff] }
  0x30   : > { %518 = vst [vmem:[#allocation2 + $0xd8] sm:$0xff] %v4752_v0  ;;  %885 = vmatpush.msra.mxu1 %v680_v28  ;;  %4567 = vmatpush.msra.mxu3 %v680_v28  ;;  %v1262_v28 = vld [vmem:[#allocation4 + $0x1e8] sm:$0xff] }
  0x31   : > { %519 = vst [vmem:[#allocation2 + $0xe0] sm:$0xff] %v4752_v0  ;;  %761 = vmatpush.msra.mxu0 %v732_v29  ;;  %v580_v29 = vld [vmem:[%s4945_s21 + $0xe8] sm:$0xff] }
  0x32   : > { %520 = vst [vmem:[#allocation2 + $0xe8] sm:$0x3] %v4752_v0  ;;  %886 = vmatpush.msra.mxu1 %v679_v30  ;;  %4568 = vmatpush.msra.mxu3 %v679_v30  ;;  %v1261_v30 = vld [vmem:[#allocation4 + $0x1e0] sm:$0xff] }
  0x33   : > { %521 = vst [vmem:[#allocation2 + $0xf0] sm:$0xff] %v4752_v0  ;;  %762 = vmatpush.msra.mxu0 %v731_v31 }
  0x34   : > { %522 = vst [vmem:[#allocation2 + $0xf8] sm:$0xff] %v4752_v0  ;;  %887 = vmatpush.msra.mxu1 %v678_v32  ;;  %4569 = vmatpush.msra.mxu3 %v678_v32  ;;  %v560_v32 = vld [vmem:[%s4945_s21 + $0x48] sm:$0xff] }
  0x35   : > { %523 = vst [vmem:[#allocation2 + $0x100] sm:$0x3] %v4752_v0  ;;  %763 = vmatmul.f32.vlgmr.msra.gmra.mxu0 %v694_v33  ;;  %888 = vmatmul.f32.vlgmr.msra.gmra.mxu1 %v4752_v0  ;;  %v1043_v33 = vld [vmem:[#allocation4 + $0x148] sm:$0xff] }
  0x36   : > { %524 = vst [vmem:[#allocation2 + $0x108] sm:$0xff] %v4752_v0  ;;  %1050 = vmatpush.msrb.mxu0 %v1049_v34  ;;  %1265 = vmatpush.msrb.mxu3 %v1264_v23  ;;  %v1260_v34 = vld [vmem:[#allocation4 + $0x1d8] sm:$0xff] }
  0x37   : > { %525 = vst [vmem:[#allocation2 + $0x110] sm:$0xff] %v4752_v0  ;;  %4576 = vmatpush.msra.mxu2 %v1043_v33 }
  0x38   : > { %526 = vst [vmem:[#allocation2 + $0x118] sm:$0x3] %v4752_v0  ;;  %1051 = vmatpush.msrb.mxu0 %v1048_v37  ;;  %1266 = vmatpush.msrb.mxu3 %v1263_v27 }
  0x39   : > { %527 = vst [vmem:[#allocation2 + $0x120] sm:$0xff] %v4752_v0 }
  0x3a   : > { %528 = vst [vmem:[#allocation2 + $0x128] sm:$0xff] %v4752_v0  ;;  %1052 = vmatpush.msrb.mxu0 %v1047_v49  ;;  %1267 = vmatpush.msrb.mxu3 %v1262_v28  ;;  %v1038_v49 = vld [vmem:[#allocation4 + $0x120] sm:$0xff] }
  0x3b   : > { %529 = vst [vmem:[#allocation2 + $0x130] sm:$0x3] %v4752_v0 }
  0x3c   : > { %530 = vst [vmem:[#allocation2 + $0x138] sm:$0xff] %v4752_v0  ;;  %1053 = vmatpush.msrb.mxu0 %v1046_v59  ;;  %1268 = vmatpush.msrb.mxu3 %v1261_v30  ;;  %v582_v59 = vld [vmem:[%s4945_s21 + $0xf8] sm:$0xff] }
  0x3d   : > { %531 = vst [vmem:[#allocation2 + $0x140] sm:$0xff] %v4752_v0  ;;  %891 = vmatmul.f32.gmra.mxu1 %v4752_v0  ;;  %766 = vmatmul.f32.gmra.mxu0 %v695_v35  ;;  %v1042_v35 = vld [vmem:[#allocation4 + $0x140] sm:$0xff] }
  0x3e   : > { %532 = vst [vmem:[#allocation2 + $0x148] sm:$0x3] %v4752_v0  ;;  %1054 = vmatpush.msrb.mxu0 %v1045_v12  ;;  %1269 = vmatpush.msrb.mxu3 %v1260_v34  ;;  %v1251_v12 = vld [vmem:[#allocation4 + $0x190] sm:$0xff]  ;;  %v565_v34 = vld [vmem:[%s4945_s21 + $0x70] sm:$0xff] }
  0x3f   : > { %533 = vst [vmem:[#allocation2 + $0x150] sm:$0xff] %v4752_v0  ;;  %4577 = vmatpush.msra.mxu2 %v1042_v35 }
  0x40   : > { %534 = vst [vmem:[#allocation2 + $0x158] sm:$0xff] %v4752_v0  ;;  %1055 = vmatpush.msrb.mxu0 %v1044_v24 }
  0x41   : > { %535 = vst [vmem:[#allocation2 + $0x160] sm:$0x3] %v4752_v0 }
  0x42   : > { %536 = vst [vmem:[#allocation2 + $0x168] sm:$0xff] %v4752_v0  ;;  %1056 = vmatpush.msrb.mxu0 %v1043_v33 }
  0x43   : > { %537 = vst [vmem:[#allocation2 + $0x170] sm:$0xff] %v4752_v0 }
  0x44   : > { %538 = vst [vmem:[#allocation2 + $0x178] sm:$0x3] %v4752_v0  ;;  %1057 = vmatpush.msrb.mxu0 %v1042_v35  ;;  %v566_v35 = vld [vmem:[%s4945_s21 + $0x78] sm:$0xff] }
  0x45   : > { %539 = vst [vmem:[#allocation2 + $0x180] sm:$0xff] %v4752_v0  ;;  %894 = vmatmul.f32.gmra.mxu1 %v4752_v0  ;;  %769 = vmatmul.f32.gmra.mxu0 %v696_v36 }
  0x46   : > { %540 = vst [vmem:[#allocation2 + $0x188] sm:$0xff] %v4752_v0 }
  0x47   : > { %541 = vst [vmem:[#allocation2 + $0x190] sm:$0x3] %v4752_v0 }
  0x48   : > { %542 = vst [vmem:[#allocation2 + $0x198] sm:$0xff] %v4752_v0 }
  0x49   : > { %543 = vst [vmem:[#allocation2 + $0x1a0] sm:$0xff] %v4752_v0 }
  0x4a   : > { %544 = vst [vmem:[#allocation2 + $0x1a8] sm:$0x3] %v4752_v0 }
  0x4b   : > { %545 = vst [vmem:[#allocation2 + $0x1b0] sm:$0xff] %v4752_v0 }
  0x4c   : > { %546 = vst [vmem:[#allocation2 + $0x1b8] sm:$0xff] %v4752_v0 }
  0x4d   : > { %547 = vst [vmem:[#allocation2 + $0x1c0] sm:$0x3] %v4752_v0  ;;  %897 = vmatmul.f32.gmra.mxu1 %v4752_v0  ;;  %772 = vmatmul.f32.gmra.mxu0 %v697_v38  ;;  %v1259_v38 = vld [vmem:[#allocation4 + $0x1d0] sm:$0xff] }
  0x4e   : > { %548 = vst [vmem:[#allocation2 + $0x1c8] sm:$0xff] %v4752_v0  ;;  %1270 = vmatpush.msrb.mxu3 %v1259_v38 }
  0x4f   : > { %549 = vst [vmem:[#allocation2 + $0x1d0] sm:$0xff] %v4752_v0 }
  0x50   : > { %550 = vst [vmem:[#allocation2 + $0x1d8] sm:$0x3] %v4752_v0 }
  0x51   : > { %2537 = vst [vmem:[#allocation3 + $0x18] sm:$0x1] %v4752_v0 }
  0x52   : > { %2538 = vst [vmem:[#allocation3 + $0x30] sm:$0x1] %v4752_v0 }
  0x53   : > { %2539 = vst [vmem:[#allocation3 + $0x48] sm:$0x1] %v4752_v0 }
  0x54   : > { %2540 = vst [vmem:[#allocation3 + $0x60] sm:$0x1] %v4752_v0 }
  0x55   : > { %2541 = vst [vmem:[#allocation3 + $0x78] sm:$0x1] %v4752_v0 }
  0x56   : > { %2542 = vst [vmem:[#allocation3 + $0x90] sm:$0x1] %v4752_v0 }
  0x57   : > { %2543 = vst [vmem:[#allocation3 + $0xa8] sm:$0x1] %v4752_v0 }
  0x58   : > { %2544 = vst [vmem:[#allocation3 + $0xc0] sm:$0x1] %v4752_v0 }
  0x59   : > { %2545 = vst [vmem:[#allocation3 + $0xd8] sm:$0x1] %v4752_v0 }
  0x5a   : > { %2546 = vst [vmem:[#allocation3 + $0xf0] sm:$0x1] %v4752_v0 }
  0x5b   : > { %2547 = vst [vmem:[#allocation3 + $0x108] sm:$0x1] %v4752_v0 }
  0x5c   : > { %2548 = vst [vmem:[#allocation3 + $0x120] sm:$0x1] %v4752_v0 }
  0x5d   : > { %2549 = vst [vmem:[#allocation3 + $0x138] sm:$0x1] %v4752_v0 }
  0x5e   : > { %2550 = vst [vmem:[#allocation3 + $0x150] sm:$0x1] %v4752_v0 }
  0x5f   : > { %2551 = vst [vmem:[#allocation3 + $0x168] sm:$0x1] %v4752_v0 }
  0x60   : > { %2552 = vst [vmem:[#allocation3 + $0x180] sm:$0x1] %v4752_v0 }
  0x61   : > { %2554 = vst [vmem:[#allocation3 + $0x11] sm:$0x1] %v4752_v0 }
  0x62   : > { %2555 = vst [vmem:[#allocation3 + $0x29] sm:$0x1] %v4752_v0 }
  0x63   : > { %2556 = vst [vmem:[#allocation3 + $0x41] sm:$0x1] %v4752_v0 }
  0x64   : > { %2557 = vst [vmem:[#allocation3 + $0x59] sm:$0x1] %v4752_v0 }
  0x65   : > { %2558 = vst [vmem:[#allocation3 + $0x71] sm:$0x1] %v4752_v0 }
  0x66   : > { %2559 = vst [vmem:[#allocation3 + $0x89] sm:$0x1] %v4752_v0 }
  0x67   : > { %2560 = vst [vmem:[#allocation3 + $0xa1] sm:$0x1] %v4752_v0 }
  0x68   : > { %2561 = vst [vmem:[#allocation3 + $0xb9] sm:$0x1] %v4752_v0 }
  0x69   : > { %2562 = vst [vmem:[#allocation3 + $0xd1] sm:$0x1] %v4752_v0 }
  0x6a   : > { %2563 = vst [vmem:[#allocation3 + $0xe9] sm:$0x1] %v4752_v0 }
  0x6b   : > { %2564 = vst [vmem:[#allocation3 + $0x101] sm:$0x1] %v4752_v0 }
  0x6c   : > { %2565 = vst [vmem:[#allocation3 + $0x119] sm:$0x1] %v4752_v0 }
  0x6d   : > { %2566 = vst [vmem:[#allocation3 + $0x131] sm:$0x1] %v4752_v0 }
  0x6e   : > { %2567 = vst [vmem:[#allocation3 + $0x149] sm:$0x1] %v4752_v0 }
  0x6f   : > { %2568 = vst [vmem:[#allocation3 + $0x161] sm:$0x1] %v4752_v0 }
  0x70   : > { %2569 = vst [vmem:[#allocation3 + $0x179] sm:$0x1] %v4752_v0 }
  0x71   : > { %2570 = vst [vmem:[#allocation3 + $0x191] sm:$0x1] %v4752_v0 }
  0x72   : > { %2571 = vst [vmem:[#allocation3 + $0x1a9] sm:$0x1] %v4752_v0 }
  0x73   : > { %601 = vst.msk [vmem:[#allocation2 + $0xf1] sm:$0xff] %vm584_vm0, %v567_v39  ;;  %v1041_v39 = vld [vmem:[#allocation4 + $0x138] sm:$0xff] }
  0x74   : > { %602 = vst.msk [vmem:[#allocation2 + $0xf9] sm:$0xff] %vm584_vm0, %v568_v40  ;;  %v1258_v40 = vld [vmem:[#allocation4 + $0x1c8] sm:$0xff]  ;;  %4578 = vmatpush.msra.mxu2 %v1041_v39  ;;  %1058 = vmatpush.msrb.mxu0 %v1041_v39 }
  0x75   : > { %603 = vst.msk [vmem:[#allocation2 + $0x109] sm:$0xff] %vm584_vm0, %v569_v41  ;;  %v581_v41 = vld [vmem:[%s4945_s21 + $0xf0] sm:$0xff]  ;;  %1271 = vmatpush.msrb.mxu3 %v1258_v40 }
  0x76   : > { %604 = vst.msk [vmem:[#allocation2 + $0x111] sm:$0xff] %vm584_vm0, %v570_v42  ;;  %v1040_v42 = vld [vmem:[#allocation4 + $0x130] sm:$0xff] }
  0x77   : > { %605 = vst.msk [vmem:[#allocation2 + $0x121] sm:$0xff] %vm584_vm0, %v571_v43  ;;  %v1257_v43 = vld [vmem:[#allocation4 + $0x1c0] sm:$0xff]  ;;  %4579 = vmatpush.msra.mxu2 %v1040_v42  ;;  %1059 = vmatpush.msrb.mxu0 %v1040_v42 }
  0x78   : > { %585 = vst.msk [vmem:[#allocation2 + $0x31] sm:$0xff] %vm584_vm0, %v551_v44  ;;  %1272 = vmatpush.msrb.mxu3 %v1257_v43 }
  0x79   : > { %606 = vst.msk [vmem:[#allocation2 + $0x129] sm:$0xff] %vm584_vm0, %v572_v45  ;;  %v561_v45 = vld [vmem:[%s4945_s21 + $0x50] sm:$0xff] }
  0x7a   : > { %586 = vst.msk [vmem:[#allocation2 + $0x39] sm:$0xff] %vm584_vm0, %v552_v47  ;;  %v1039_v47 = vld [vmem:[#allocation4 + $0x128] sm:$0xff] }
  0x7b   : > { %v4966_v46 = vld [vmem:[#allocation2 + $0xf8] sm:$0xff]  ;;  %607 = vst.msk [vmem:[#allocation2 + $0x139] sm:$0xff] %vm584_vm0, %v573_v48  ;;  %v1256_v48 = vld [vmem:[#allocation4 + $0x1b8] sm:$0xff]  ;;  %4580 = vmatpush.msra.mxu2 %v1039_v47  ;;  %1060 = vmatpush.msrb.mxu0 %v1039_v47 }
  0x7c   : > { %951 = vmatmul.f32.vlgmr.msra.gmra.mxu3 %v4966_v46  ;;  %v4976_v52 = vld [vmem:[#allocation2 + $0x108] sm:$0xff]  ;;  %587 = vst.msk [vmem:[#allocation2 + $0x49] sm:$0xff] %vm584_vm0, %v553_v53 }
  0x7d   : > { %608 = vst.msk [vmem:[#allocation2 + $0x141] sm:$0xff] %vm584_vm0, %v574_v54  ;;  %v4986_v57 = vld [vmem:[#allocation2 + $0x110] sm:$0xff]  ;;  %1273 = vmatpush.msrb.mxu3 %v1256_v48  ;;  %v1255_v54 = vld [vmem:[#allocation4 + $0x1b0] sm:$0xff]  ;;  %4581 = vmatpush.msra.mxu2 %v1038_v49 }
  0x7e   : > { %588 = vst.msk [vmem:[#allocation2 + $0x51] sm:$0xff] %vm584_vm0, %v554_v58  ;;  %v4996_v63 = vld [vmem:[#allocation2 + $0x120] sm:$0xff]  ;;  %v1254_v58 = vld [vmem:[#allocation4 + $0x1a8] sm:$0xff]  ;;  %1061 = vmatpush.msrb.mxu0 %v1038_v49 }
  0x7f   : > { %v698_v50 = vld [vmem:[#allocation2 + $0x31] sm:$0xff]  ;;  %609 = vst.msk [vmem:[#allocation2 + $0x151] sm:$0xff] %vm584_vm0, %v575_v60  ;;  %1274 = vmatpush.msrb.mxu3 %v1255_v54 }
  0x80   : > { %v4973_v51 = vld [vmem:[#allocation2 + $0x30] sm:$0xff]  ;;  %775 = vmatmul.f32.gmra.mxu0 %v698_v50  ;;  %589 = vst.msk [vmem:[#allocation2 + $0x61] sm:$0xff] %vm584_vm0, %v555_v1  ;;  %v5006_v5 = vld [vmem:[#allocation2 + $0x128] sm:$0xff]  ;;  %v562_v60 = vld [vmem:[%s4945_s21 + $0x58] sm:$0xff] }
  0x81   : > { %900 = vmatmul.f32.gmra.mxu1 %v4973_v51  ;;  %v699_v55 = vld [vmem:[#allocation2 + $0x39] sm:$0xff]  ;;  %610 = vst.msk [vmem:[#allocation2 + $0x159] sm:$0xff] %vm584_vm0, %v576_v2  ;;  %v1253_v1 = vld [vmem:[#allocation4 + $0x1a0] sm:$0xff]  ;;  %1275 = vmatpush.msrb.mxu3 %v1254_v58 }
  0x82   : > { %v4982_v56 = vld [vmem:[#allocation2 + $0x38] sm:$0xff]  ;;  %590 = vst.msk [vmem:[#allocation2 + $0x69] sm:$0xff] %vm584_vm0, %v556_v6  ;;  %v1252_v6 = vld [vmem:[#allocation4 + $0x198] sm:$0xff] }
  0x83   : > { %v700_v61 = vld [vmem:[#allocation2 + $0x49] sm:$0xff]  ;;  %611 = vst.msk [vmem:[#allocation2 + $0x169] sm:$0xff] %vm584_vm0, %v577_v7  ;;  %v5016_v10 = vld [vmem:[#allocation2 + $0x138] sm:$0xff]  ;;  %1276 = vmatpush.msrb.mxu3 %v1253_v1 }
  0x84   : > { %954 = vmatmul.f32.gmra.mxu3 %v4976_v52  ;;  %v4992_v62 = vld [vmem:[#allocation2 + $0x48] sm:$0xff]  ;;  %591 = vst.msk [vmem:[#allocation2 + $0x79] sm:$0xff] %vm584_vm0, %v557_v11  ;;  %v5026_v16 = vld [vmem:[#allocation2 + $0x140] sm:$0xff]  ;;  %v1034_v7 = vld [vmem:[#allocation4 + $0x100] sm:$0xff] }
  0x85   : > { %v701_v3 = vld [vmem:[#allocation2 + $0x51] sm:$0xff]  ;;  %612 = vst.msk [vmem:[#allocation2 + $0x171] sm:$0xff] %vm584_vm0, %v578_v13  ;;  %1277 = vmatpush.msrb.mxu3 %v1252_v6 }
  0x86   : > { %v5002_v4 = vld [vmem:[#allocation2 + $0x50] sm:$0xff]  ;;  %592 = vst.msk [vmem:[#allocation2 + $0x81] sm:$0xff] %vm584_vm0, %v558_v17  ;;  %v1250_v13 = vld [vmem:[#allocation4 + $0x188] sm:$0xff] }
  0x87   : > { %v702_v8 = vld [vmem:[#allocation2 + $0x61] sm:$0xff]  ;;  %613 = vst.msk [vmem:[#allocation2 + $0x181] sm:$0xff] %vm584_vm0, %v579_v18  ;;  %v5036_v21 = vld [vmem:[#allocation2 + $0x150] sm:$0xff]  ;;  %1278 = vmatpush.msrb.mxu3 %v1251_v12 }
  0x88   : > { %778 = vmatmul.f32.gmra.mxu0 %v699_v55  ;;  %v5012_v9 = vld [vmem:[#allocation2 + $0x60] sm:$0xff]  ;;  %593 = vst.msk [vmem:[#allocation2 + $0x91] sm:$0xff] %vm584_vm0, %v559_v22  ;;  %v5046_v31 = vld [vmem:[#allocation2 + $0x158] sm:$0xff]  ;;  %v1037_v55 = vld [vmem:[#allocation4 + $0x118] sm:$0xff] }
  0x89   : > { %903 = vmatmul.f32.gmra.mxu1 %v4982_v56  ;;  %v703_v14 = vld [vmem:[#allocation2 + $0x69] sm:$0xff]  ;;  %614 = vst.msk [vmem:[#allocation2 + $0x189] sm:$0xff] %vm584_vm0, %v580_v29  ;;  %4582 = vmatpush.msra.mxu2 %v1037_v55  ;;  %v563_v18 = vld [vmem:[%s4945_s21 + $0x60] sm:$0xff]  ;;  %v1017_v54 = vld [vmem:[#allocation2 + $0xf2] sm:$0xff] }
  0x8a   : > { %v5022_v15 = vld [vmem:[#allocation2 + $0x68] sm:$0xff]  ;;  %594 = vst.msk [vmem:[#allocation2 + $0x99] sm:$0xff] %vm584_vm0, %v560_v32  ;;  %1062 = vmatpush.msrb.mxu0 %v1037_v55  ;;  %v1249_v17 = vld [vmem:[#allocation4 + $0x180] sm:$0xff]  ;;  %1279 = vmatpush.msrb.mxu3 %v1250_v13 }
  0x8b   : > { %v704_v19 = vld [vmem:[#allocation2 + $0x79] sm:$0xff]  ;;  %615 = vst.msk [vmem:[#allocation2 + $0x199] sm:$0xff] %vm584_vm0, %v581_v41  ;;  %v5056_v44 = vld [vmem:[#allocation2 + $0x168] sm:$0xff]  ;;  %v714_v58 = vld [vmem:[#allocation2 + $0xf1] sm:$0xff] }
  0x8c   : > { %957 = vmatmul.f32.gmra.mxu3 %v4986_v57  ;;  %v5032_v20 = vld [vmem:[#allocation2 + $0x78] sm:$0xff]  ;;  %595 = vst.msk [vmem:[#allocation2 + $0xa9] sm:$0xff] %vm584_vm0, %v561_v45  ;;  %v5068_v2 = vld [vmem:[#allocation2 + $0x170] sm:$0xff] }
  0x8d   : > { %v705_v25 = vld [vmem:[#allocation2 + $0x81] sm:$0xff]  ;;  %616 = vst.msk [vmem:[#allocation2 + $0x1a1] sm:$0xff] %vm584_vm0, %v582_v59  ;;  %1280 = vmatpush.msrb.mxu3 %v1249_v17  ;;  %v5121_v59 = vld [vmem:[#allocation2 + $0xf0] sm:$0xff] }
  0x8e   : > { %v5041_v26 = vld [vmem:[#allocation2 + $0x80] sm:$0xff]  ;;  %596 = vst.msk [vmem:[#allocation2 + $0xb1] sm:$0xff] %vm584_vm0, %v562_v60  ;;  %v1020_v13 = vld [vmem:[#allocation2 + $0x112] sm:$0xff] }
  0x8f   : > { %v706_v36 = vld [vmem:[#allocation2 + $0x91] sm:$0xff]  ;;  %v5076_v22 = vld [vmem:[#allocation2 + $0x180] sm:$0xff]  ;;  %597 = vst.msk [vmem:[#allocation2 + $0xc1] sm:$0xff] %vm584_vm0, %v563_v18 }
  0x90   : > { %781 = vmatmul.f32.gmra.mxu0 %v700_v61  ;;  %v5051_v37 = vld [vmem:[#allocation2 + $0x90] sm:$0xff]  ;;  %v1036_v61 = vld [vmem:[#allocation4 + $0x110] sm:$0xff]  ;;  %v5086_v27 = vld [vmem:[#allocation2 + $0x188] sm:$0xff]  ;;  %599 = vst.msk [vmem:[#allocation2 + $0xd9] sm:$0xff] %vm584_vm0, %v565_v34 }
  0x91   : > { %906 = vmatmul.f32.gmra.mxu1 %v4992_v62  ;;  %v707_v50 = vld [vmem:[#allocation2 + $0x99] sm:$0xff]  ;;  %4583 = vmatpush.msra.mxu2 %v1036_v61  ;;  %600 = vst.msk [vmem:[#allocation2 + $0xe1] sm:$0xff] %vm584_vm0, %v566_v35  ;;  %v1021_v18 = vld [vmem:[#allocation2 + $0x122] sm:$0xff] }
  0x92   : > { %v5061_v53 = vld [vmem:[#allocation2 + $0x98] sm:$0xff]  ;;  %1063 = vmatpush.msrb.mxu0 %v1036_v61 }
  0x93   : > { %v5071_v11 = vld [vmem:[#allocation2 + $0xa8] sm:$0xff]  ;;  %v1018_v61 = vld [vmem:[#allocation2 + $0xfa] sm:$0xff] }
  0x94   : > { %960 = vmatmul.f32.gmra.mxu3 %v4996_v63  ;;  %v5104_v40 = vld [vmem:[#allocation2 + $0x1a0] sm:$0xff] }
  0x95   : > { %v709_v23 = vld [vmem:[#allocation2 + $0xb1] sm:$0xff]  ;;  %v1023_v34 = vld [vmem:[#allocation2 + $0x13a] sm:$0xff] }
  0x96   : > { %v5081_v24 = vld [vmem:[#allocation2 + $0xb0] sm:$0xff]  ;;  %v710_v29 = vld [vmem:[#allocation2 + $0xc1] sm:$0xff]  ;;  %v720_v35 = vld [vmem:[#allocation2 + $0x139] sm:$0xff] }
  0x97   : > { %v5089_v30 = vld [vmem:[#allocation2 + $0xc0] sm:$0xff]  ;;  %v5109_v45 = vld [vmem:[#allocation2 + $0xd8] sm:$0xff] }
  0x98   : > { %784 = vmatmul.f32.gmra.mxu0 %v701_v3  ;;  %v1035_v3 = vld [vmem:[#allocation4 + $0x108] sm:$0xff]  ;;  %v1016_v47 = vld [vmem:[#allocation2 + $0xe2] sm:$0xff] }
  0x99   : > { %909 = vmatmul.f32.gmra.mxu1 %v5002_v4  ;;  %4584 = vmatpush.msra.mxu2 %v1035_v3  ;;  %v1015_v41 = vld [vmem:[#allocation2 + $0xda] sm:$0xff] }
  0x9a   : > { %1064 = vmatpush.msrb.mxu0 %v1035_v3  ;;  %v712_v43 = vld [vmem:[#allocation2 + $0xd9] sm:$0xff]  ;;  %v713_v49 = vld [vmem:[#allocation2 + $0xe1] sm:$0xff] }
  0x9b   : > { %4585 = vmatpush.msra.mxu2 %v1034_v7  ;;  %v715_v3 = vld [vmem:[#allocation2 + $0xf9] sm:$0xff] }
  0x9c   : > { %963 = vmatmul.f32.gmra.mxu3 %v5006_v5  ;;  %1065 = vmatpush.msrb.mxu0 %v1034_v7 }
  0xa0   : > { %787 = vmatmul.f32.gmra.mxu0 %v702_v8  ;;  %v708_v8 = vld [vmem:[#allocation2 + $0xa9] sm:$0xff] }
  0xa1   : > { %912 = vmatmul.f32.gmra.mxu1 %v5012_v9 }
  0xa4   : > { %966 = vmatmul.f32.gmra.mxu3 %v5016_v10 }
  0xa8   : > { %790 = vmatmul.f32.gmra.mxu0 %v703_v14  ;;  %v1012_v14 = vld [vmem:[#allocation2 + $0xb2] sm:$0xff] }
  0xa9   : > { %915 = vmatmul.f32.gmra.mxu1 %v5022_v15  ;;  %1111 = vmatmul.f32.vlgmr.msra.gmra.mxu2 %v1012_v14  ;;  %v717_v14 = vld [vmem:[#allocation2 + $0x111] sm:$0xff] }
  0xac   : > { %969 = vmatmul.f32.gmra.mxu3 %v5026_v16 }
  0xb0   : > { %793 = vmatmul.f32.gmra.mxu0 %v704_v19  ;;  %v564_v19 = vld [vmem:[%s4945_s21 + $0x68] sm:$0xff] }
  0xb1   : > { %918 = vmatmul.f32.gmra.mxu1 %v5032_v20  ;;  %598 = vst.msk [vmem:[#allocation2 + $0xc9] sm:$0xff] %vm584_vm0, %v564_v19  ;;  %v718_v19 = vld [vmem:[#allocation2 + $0x121] sm:$0xff] }
  0xb4   : > { %972 = vmatmul.f32.gmra.mxu3 %v5036_v21 }
  0xb8   : > { %796 = vmatmul.f32.gmra.mxu0 %v705_v25  ;;  %v5083_v25 = vpop.f32.mrf.mxu0  ;;  %v1013_v28 = vld [vmem:[#allocation2 + $0xc2] sm:$0xff]  ;;  %v1014_v32 = vld [vmem:[#allocation2 + $0xca] sm:$0xff] }
  0xb9   : > { %921 = vmatmul.f32.gmra.mxu1 %v5041_v26  ;;  %1114 = vmatmul.f32.gmra.mxu2 %v1013_v28  ;;  %v711_v38 = vld [vmem:[#allocation2 + $0xc9] sm:$0xff] }
  0xba   : > { %v5101_v39 = vld [vmem:[#allocation2 + $0xc8] sm:$0xff] }
  0xbb   : > { %v1022_v28 = vld [vmem:[#allocation2 + $0x12a] sm:$0xff] }
  0xbc   : > { %975 = vmatmul.f32.gmra.mxu3 %v5046_v31 }
  0xc0   : > { %799 = vmatmul.f32.gmra.mxu0 %v706_v36  ;;  %v5091_v33 = vpop.f32.mrf.mxu0  ;;  %v5096_v36 = vld [vmem:[#allocation2 + $0x198] sm:$0xff] }
  0xc1   : > { %924 = vmatmul.f32.gmra.mxu1 %v5051_v37  ;;  %1117 = vmatmul.f32.gmra.mxu2 %v1014_v32 }
  0xc4   : > { %978 = vmatmul.f32.gmra.mxu3 %v5056_v44 }
  0xc8   : > { %802 = vmatmul.f32.gmra.mxu0 %v707_v50  ;;  %v5106_v42 = vpop.f32.mrf.mxu0  ;;  %v5115_v50 = vld [vmem:[#allocation2 + $0xe0] sm:$0xff] }
  0xc9   : > { %927 = vmatmul.f32.gmra.mxu1 %v5061_v53  ;;  %1120 = vmatmul.f32.gmra.mxu2 %v1015_v41  ;;  %v1024_v41 = vld [vmem:[#allocation2 + $0x142] sm:$0xff] }
  0xcc   : > { %981 = vmatmul.f32.gmra.mxu3 %v5068_v2 }
  0xd0   : > { %805 = vmatmul.f32.gmra.mxu0 %v708_v8  ;;  %v5112_v48 = vpop.f32.mrf.mxu0  ;;  %v716_v8 = vld [vmem:[#allocation2 + $0x109] sm:$0xff] }
  0xd1   : > { %930 = vmatmul.f32.gmra.mxu1 %v5071_v11  ;;  %1123 = vmatmul.f32.gmra.mxu2 %v1016_v47 }
  0xd4   : > { %984 = vmatmul.f32.gmra.mxu3 %v5076_v22 }
  0xd8   : > { %808 = vmatmul.f32.gmra.mxu0 %v709_v23 }
  0xd9   : > { %933 = vmatmul.f32.gmra.mxu1 %v5081_v24  ;;  %1126 = vmatmul.f32.gmra.mxu2 %v1017_v54  ;;  %v722_v54 = vld [vmem:[#allocation2 + $0x151] sm:$0xff] }
  0xdc   : > { %987 = vmatmul.f32.gmra.mxu3 %v5086_v27 }
  0xe0   : > { %811 = vmatmul.f32.gmra.mxu0 %v710_v29  ;;  %v719_v29 = vld [vmem:[#allocation2 + $0x129] sm:$0xff] }
  0xe1   : > { %936 = vmatmul.f32.gmra.mxu1 %v5089_v30  ;;  %1129 = vmatmul.f32.gmra.mxu2 %v1018_v61  ;;  %v1026_v61 = vld [vmem:[#allocation2 + $0x15a] sm:$0xff] }
  0xe4   : > { %990 = vmatmul.f32.gmra.mxu3 %v5096_v36 }
  0xe8   : > { %814 = vmatmul.f32.gmra.mxu0 %v711_v38 }
  0xe9   : > { %939 = vmatmul.f32.gmra.mxu1 %v5101_v39 }
  0xec   : > { %993 = vmatmul.f32.gmra.mxu3 %v5104_v40 }
  0xf0   : > { %817 = vmatmul.f32.gmra.mxu0 %v712_v43  ;;  %v721_v43 = vld [vmem:[#allocation2 + $0x141] sm:$0xff] }
  0xf1   : > { %942 = vmatmul.f32.gmra.mxu1 %v5109_v45 }
  0xf4   : > { %1281 = vmatmul.f32.vlgmr.msrb.gmra.mxu3 %v4752_v0 }
  0xf8   : > { %820 = vmatmul.f32.gmra.mxu0 %v713_v49  ;;  %v1025_v49 = vld [vmem:[#allocation2 + $0x152] sm:$0xff] }
  0xf9   : > { %945 = vmatmul.f32.gmra.mxu1 %v5115_v50 }
  0xfc   : > { %1284 = vmatmul.f32.gmra.mxu3 %v4752_v0  ;;  %v1019_v0 = vld [vmem:[#allocation2 + $0x10a] sm:$0xff] }
  0xfd   : > { %v5119_v55 = vpop.f32.mrf.mxu0  ;;  %1132 = vmatmul.f32.gmra.mxu2 %v1019_v0 }
  0xff   : > { %v5123_v60 = vpop.f32.mrf.mxu3 }
 0x100   : > { %6950 = vst [vmem:[#allocation10_spill] sm:$0xff] %v5123_v60  ;;  %823 = vmatmul.f32.gmra.mxu0 %v714_v58  ;;  %v1906_v60 = vld [vmem:[#allocation4 + $0x378] sm:$0xff] }
 0x101   : > { %948 = vmatmul.f32.gmra.mxu1 %v5121_v59  ;;  %1907 = vmatpush.msrb.mxu2 %v1906_v60  ;;  %v1903_v60 = vld [vmem:[#allocation4 + $0x360] sm:$0xff] }
 0x104   : > { %1287 = vmatmul.f32.gmra.mxu3 %v4973_v51 }
 0x105   : > { %v5127_v1 = vpop.f32.mrf.mxu0  ;;  %1135 = vmatmul.f32.gmra.mxu2 %v1020_v13  ;;  %v724_v13 = vld [vmem:[#allocation2 + $0x169] sm:$0xff] }
 0x107   : > { %v5129_v6 = vpop.f32.mrf.mxu3 }
 0x108   : > { %6951 = vst [vmem:[#allocation11_spill] sm:$0xff] %v5129_v6  ;;  %826 = vmatmul.f32.gmra.mxu0 %v715_v3  ;;  %v723_v3 = vld [vmem:[#allocation2 + $0x159] sm:$0xff] }
 0x109   : > { %v5296_v6 = vld [vmem:[#allocation2 + $0x7a] sm:$0xff] }
 0x10c   : > { %1290 = vmatmul.f32.gmra.mxu3 %v4982_v56 }
 0x10d   : > { %v5132_v7 = vpop.f32.mrf.mxu0  ;;  %1138 = vmatmul.f32.gmra.mxu2 %v1021_v18  ;;  %v1028_v18 = vld [vmem:[#allocation2 + $0x172] sm:$0xff] }
 0x10f   : > { %v5134_v12 = vpop.f32.mrf.mxu3 }
 0x110   : > { %6952 = vst [vmem:[#allocation12_spill] sm:$0xff] %v5134_v12  ;;  %829 = vmatmul.f32.gmra.mxu0 %v716_v8  ;;  %v1027_v8 = vld [vmem:[#allocation2 + $0x16a] sm:$0xff] }
 0x111   : > { %v5286_v12 = vld [vmem:[#allocation2 + $0x6a] sm:$0xff] }
 0x114   : > { %1293 = vmatmul.f32.gmra.mxu3 %v4992_v62 }
 0x115   : > { %v5137_v51 = vpop.f32.mrf.mxu0  ;;  %1141 = vmatmul.f32.gmra.mxu2 %v1022_v28 }
 0x117   : > { %v5139_v17 = vpop.f32.mrf.mxu3 }
 0x118   : > { %6953 = vst [vmem:[#allocation13_spill] sm:$0xff] %v5139_v17  ;;  %832 = vmatmul.f32.gmra.mxu0 %v717_v14 }
 0x11c   : > { %1296 = vmatmul.f32.gmra.mxu3 %v5002_v4 }
 0x11d   : > { %v5142_v56 = vpop.f32.mrf.mxu0  ;;  %1144 = vmatmul.f32.gmra.mxu2 %v1023_v34  ;;  %v726_v34 = vld [vmem:[#allocation2 + $0x181] sm:$0xff] }
 0x11f   : > { %v5144_v23 = vpop.f32.mrf.mxu3 }
 0x120   : > { %6954 = vst [vmem:[#allocation14_spill] sm:$0xff] %v5144_v23  ;;  %835 = vmatmul.f32.gmra.mxu0 %v718_v19  ;;  %v725_v19 = vld [vmem:[#allocation2 + $0x171] sm:$0xff] }
 0x124   : > { %1299 = vmatmul.f32.gmra.mxu3 %v5012_v9 }
 0x125   : > { %v5147_v62 = vpop.f32.mrf.mxu0  ;;  %1147 = vmatmul.f32.gmra.mxu2 %v1024_v41  ;;  %v1030_v41 = vld [vmem:[#allocation2 + $0x18a] sm:$0xff] }
 0x127   : > { %v5149_v32 = vpop.f32.mrf.mxu3 }
 0x128   : > { %6955 = vst [vmem:[#allocation15_spill] sm:$0xff] %v5149_v32  ;;  %838 = vmatmul.f32.gmra.mxu0 %v719_v29  ;;  %v1029_v29 = vld [vmem:[#allocation2 + $0x182] sm:$0xff] }
 0x129   : > { %v1470_v32 = vld [vmem:[#allocation4 + $0x238] sm:$0xff] }
 0x12c   : > { %1302 = vmatmul.f32.gmra.mxu3 %v5022_v15 }
 0x12d   : > { %v5152_v4 = vpop.f32.mrf.mxu0  ;;  %1150 = vmatmul.f32.gmra.mxu2 %v1025_v49 }
 0x12f   : > { %v5154_v38 = vpop.f32.mrf.mxu3 }
 0x130   : > { %6956 = vst [vmem:[#allocation16_spill] sm:$0xff] %v5154_v38  ;;  %841 = vmatmul.f32.gmra.mxu0 %v720_v35 }
 0x134   : > { %1305 = vmatmul.f32.gmra.mxu3 %v5032_v20 }
 0x135   : > { %v5157_v9 = vpop.f32.mrf.mxu0  ;;  %1153 = vmatmul.f32.gmra.mxu2 %v1026_v61  ;;  %v728_v61 = vld [vmem:[#allocation2 + $0x199] sm:$0xff] }
 0x137   : > { %v5159_v47 = vpop.f32.mrf.mxu3 }
 0x138   : > { %6957 = vst [vmem:[#allocation17_spill] sm:$0xff] %v5159_v47  ;;  %844 = vmatmul.f32.gmra.mxu0 %v721_v43  ;;  %v727_v43 = vld [vmem:[#allocation2 + $0x189] sm:$0xff] }
 0x13c   : > { %1308 = vmatmul.f32.gmra.mxu3 %v5041_v26 }
 0x13d   : > { %v5162_v15 = vpop.f32.mrf.mxu0  ;;  %1156 = vmatmul.f32.gmra.mxu2 %v1027_v8  ;;  %v1032_v8 = vld [vmem:[#allocation2 + $0x1a2] sm:$0xff] }
 0x13f   : > { %v5164_v58 = vpop.f32.mrf.mxu3 }
 0x140   : > { %6958 = vst [vmem:[#allocation18_spill] sm:$0xff] %v5164_v58  ;;  %847 = vmatmul.f32.gmra.mxu0 %v722_v54  ;;  %v1031_v54 = vld [vmem:[#allocation2 + $0x19a] sm:$0xff]  ;;  %v1471_v58 = vld [vmem:[#allocation4 + $0x240] sm:$0xff] }
 0x144   : > { %1311 = vmatmul.f32.gmra.mxu3 %v5051_v37 }
 0x145   : > { %v5167_v20 = vpop.f32.mrf.mxu0  ;;  %1159 = vmatmul.f32.gmra.mxu2 %v1028_v18 }
 0x146   : > { %6959 = vst [vmem:[#allocation19_spill] sm:$0xff] %v5167_v20 }
 0x147   : > { %v5169_v0 = vpop.f32.mrf.mxu3 }
 0x148   : > { %6960 = vst [vmem:[#allocation20_spill] sm:$0xff] %v5169_v0  ;;  %850 = vmatmul.f32.gmra.mxu0 %v723_v3 }
 0x14c   : > { %1314 = vmatmul.f32.gmra.mxu3 %v5061_v53 }
 0x14d   : > { %v5172_v26 = vpop.f32.mrf.mxu0  ;;  %1162 = vmatmul.f32.gmra.mxu2 %v1029_v29  ;;  %v997_v29 = vld [vmem:[#allocation2 + $0x2] sm:$0xff] }
 0x14e   : > { %6961 = vst [vmem:[#allocation21_spill] sm:$0xff] %v5172_v26 }
 0x14f   : > { %v5174_v14 = vpop.f32.mrf.mxu3 }
 0x150   : > { %6962 = vst [vmem:[#allocation22_spill] sm:$0xff] %v5174_v14  ;;  %853 = vmatmul.f32.gmra.mxu0 %v724_v13  ;;  %v729_v13 = vld [vmem:[#allocation2 + $0x1a1] sm:$0xff] }
 0x154   : > { %1317 = vmatmul.f32.gmra.mxu3 %v5071_v11 }
 0x155   : > { %v5177_v37 = vpop.f32.mrf.mxu0  ;;  %1165 = vmatmul.f32.gmra.mxu2 %v1030_v41  ;;  %v1477_v41 = vld [vmem:[#allocation4 + $0x270] sm:$0xff] }
 0x156   : > { %6963 = vst [vmem:[#allocation23_spill] sm:$0xff] %v5177_v37  ;;  %v5330_v37 = vld [vmem:[#allocation2 + $0x9a] sm:$0xff] }
 0x157   : > { %v5179_v28 = vpop.f32.mrf.mxu3 }
 0x158   : > { %6964 = vst [vmem:[#allocation24_spill] sm:$0xff] %v5179_v28  ;;  %856 = vmatmul.f32.gmra.mxu0 %v725_v19  ;;  %v1478_v19 = vld [vmem:[#allocation4 + $0x278] sm:$0xff]  ;;  %v1472_v28 = vld [vmem:[#allocation4 + $0x248] sm:$0xff] }
 0x159   : > { %1479 = vmatpush.msra.mxu0 %v1478_v19  ;;  %v1475_v19 = vld [vmem:[#allocation4 + $0x260] sm:$0xff] }
 0x15b   : > { %1480 = vmatpush.msra.mxu0 %v1477_v41 }
 0x15c   : > { %1320 = vmatmul.f32.gmra.mxu3 %v5081_v24 }
 0x15d   : > { %v5182_v53 = vpop.f32.mrf.mxu0  ;;  %1168 = vmatmul.f32.gmra.mxu2 %v1031_v54 }
 0x15e   : > { %6965 = vst [vmem:[#allocation25_spill] sm:$0xff] %v5182_v53 }
 0x15f   : > { %v5184_v35 = vpop.f32.mrf.mxu3 }
 0x160   : > { %6966 = vst [vmem:[#allocation26_spill] sm:$0xff] %v5184_v35  ;;  %859 = vmatmul.f32.gmra.mxu0 %v726_v34  ;;  %v5240_v35 = vld [vmem:[#allocation2 + $0x3a] sm:$0xff] }
 0x164   : > { %1323 = vmatmul.f32.gmra.mxu3 %v5089_v30 }
 0x165   : > { %v5187_v11 = vpop.f32.mrf.mxu0  ;;  %1171 = vmatmul.f32.gmra.mxu2 %v1032_v8  ;;  %v5214_v8 = vld [vmem:[#allocation2 + $0x1a] sm:$0xff] }
 0x166   : > { %6967 = vst [vmem:[#allocation27_spill] sm:$0xff] %v5187_v11  ;;  %v2116_v11 = vld [vmem:[#allocation4 + $0x3d8] sm:$0xff] }
 0x167   : > { %v5189_v49 = vpop.f32.mrf.mxu3 }
 0x168   : > { %6968 = vst [vmem:[#allocation28_spill] sm:$0xff] %v5189_v49  ;;  %862 = vmatmul.f32.gmra.mxu0 %v727_v43  ;;  %v998_v43 = vld [vmem:[#allocation2 + $0xa] sm:$0xff] }
 0x16c   : > { %1326 = vmatmul.f32.gmra.mxu3 %v5101_v39 }
 0x16d   : > { %v5192_v24 = vpop.f32.mrf.mxu0 }
 0x16e   : > { %6969 = vst [vmem:[#allocation29_spill] sm:$0xff] %v5192_v24 }
 0x16f   : > { %v5194_v3 = vpop.f32.mrf.mxu3 }
 0x170   : > { %6970 = vst [vmem:[#allocation30_spill] sm:$0xff] %v5194_v3  ;;  %865 = vmatmul.f32.gmra.mxu0 %v728_v61  ;;  %v1476_v61 = vld [vmem:[#allocation4 + $0x268] sm:$0xff] }
 0x171   : > { %1481 = vmatpush.msra.mxu0 %v1476_v61  ;;  %v5230_v61 = vld [vmem:[#allocation2 + $0x32] sm:$0xff] }
 0x173   : > { %1482 = vmatpush.msra.mxu0 %v1475_v19  ;;  %v1473_v19 = vld [vmem:[#allocation4 + $0x250] sm:$0xff] }
 0x174   : > { %1329 = vmatmul.f32.gmra.mxu3 %v5109_v45 }
 0x175   : > { %v5197_v30 = vpop.f32.mrf.mxu0 }
 0x176   : > { %6971 = vst [vmem:[#allocation31_spill] sm:$0xff] %v5197_v30  ;;  %v1904_v30 = vld [vmem:[#allocation4 + $0x368] sm:$0xff] }
 0x177   : > { %v5199_v18 = vpop.f32.mrf.mxu3 }
 0x178   : > { %868 = vmatmul.f32.gmra.mxu0 %v729_v13 }
 0x17c   : > { %1332 = vmatmul.f32.gmra.mxu3 %v5115_v50 }
 0x17d   : > { %v5202_v39 = vpop.f32.mrf.mxu0 }
 0x17e   : > { %6972 = vst [vmem:[#allocation32_spill] sm:$0xff] %v5202_v39 }
 0x17f   : > { %v5204_v34 = vpop.f32.mrf.mxu3 }
 0x180   : > { %1066 = vmatmul.f32.vlgmr.msrb.gmra.mxu0 %v997_v29  ;;  %v5222_v29 = vld [vmem:[#allocation2 + $0x22] sm:$0xff] }
 0x184   : > { %1335 = vmatmul.f32.gmra.mxu3 %v5121_v59 }
 0x185   : > { %v5207_v45 = vpop.f32.mrf.mxu0 }
 0x186   : > { %6973 = vst [vmem:[#allocation33_spill] sm:$0xff] %v5207_v45  ;;  %v1466_v45 = vld [vmem:[#allocation4 + $0x218] sm:$0xff] }
 0x187   : > { %v5209_v54 = vpop.f32.mrf.mxu3 }
 0x188   : > { %1069 = vmatmul.f32.gmra.mxu0 %v998_v43  ;;  %v1474_v43 = vld [vmem:[#allocation4 + $0x258] sm:$0xff] }
 0x189   : > { %1483 = vmatpush.msra.mxu0 %v1474_v43  ;;  %v5242_v43 = vpop.f32.mrf.mxu2 }
 0x18a   : > { %6978 = vst [vmem:[#allocation38_spill] sm:$0xff] %v5242_v43 }
 0x18b   : > { %1484 = vmatpush.msra.mxu0 %v1473_v19  ;;  %v5250_v19 = vld [vmem:[#allocation2 + $0x4a] sm:$0xff] }
 0x18c   : > { %1338 = vmatmul.f32.gmra.mxu3 %v4966_v46 }
 0x18d   : > { %v5212_v50 = vpop.f32.mrf.mxu0  ;;  %1485 = vmatpush.msra.mxu0 %v1472_v28  ;;  %v5262_v28 = vld [vmem:[#allocation2 + $0x52] sm:$0xff] }
 0x18e   : > { %6974 = vst [vmem:[#allocation34_spill] sm:$0xff] %v5212_v50 }
 0x18f   : > { %v5216_v13 = vpop.f32.mrf.mxu3  ;;  %1486 = vmatpush.msra.mxu0 %v1471_v58  ;;  %v5274_v58 = vld [vmem:[#allocation2 + $0x62] sm:$0xff] }
 0x190   : > { %1072 = vmatmul.f32.gmra.mxu0 %v5214_v8 }
 0x191   : > { %v5257_v47 = vpop.f32.mrf.mxu2  ;;  %1487 = vmatpush.msra.mxu0 %v1470_v32 }
 0x192   : > { %6980 = vst [vmem:[#allocation40_spill] sm:$0xff] %v5257_v47 }
 0x194   : > { %1341 = vmatmul.f32.gmra.mxu3 %v4976_v52  ;;  %v5236_v52 = vpop.f32.mrf.mxu1 }
 0x195   : > { %v5220_v59 = vpop.f32.mrf.mxu0 }
 0x196   : > { %6975 = vst [vmem:[#allocation35_spill] sm:$0xff] %v5220_v59 }
 0x197   : > { %v5224_v41 = vpop.f32.mrf.mxu3 }
 0x198   : > { %1075 = vmatmul.f32.gmra.mxu0 %v5222_v29 }
 0x199   : > { %v5269_v23 = vpop.f32.mrf.mxu2 }
 0x19a   : > { %6982 = vst [vmem:[#allocation42_spill] sm:$0xff] %v5269_v23 }
 0x19c   : > { %1344 = vmatmul.f32.gmra.mxu3 %v4986_v57 }
 0x19d   : > { %v5228_v46 = vpop.f32.mrf.mxu0 }
 0x19e   : > { %6976 = vst [vmem:[#allocation36_spill] sm:$0xff] %v5228_v46 }
 0x19f   : > { %v5232_v3 = vpop.f32.mrf.mxu3 }
 0x1a0   : > { %1078 = vmatmul.f32.gmra.mxu0 %v5230_v61 }
 0x1a1   : > { %v5282_v46 = vpop.f32.mrf.mxu2 }
 0x1a2   : > { %6984 = vst [vmem:[#allocation44_spill] sm:$0xff] %v5282_v46  ;;  %v2119_v46 = vld [vmem:[#allocation4 + $0x3f0] sm:$0xff] }
 0x1a4   : > { %1347 = vmatmul.f32.gmra.mxu3 %v4996_v63  ;;  %v5252_v63 = vpop.f32.mrf.mxu1 }
 0x1a5   : > { %v5238_v49 = vpop.f32.mrf.mxu0 }
 0x1a6   : > { %6977 = vst [vmem:[#allocation37_spill] sm:$0xff] %v5238_v49 }
 0x1a7   : > { %v5244_v57 = vpop.f32.mrf.mxu3 }
 0x1a8   : > { %1081 = vmatmul.f32.gmra.mxu0 %v5240_v35 }
 0x1ac   : > { %1350 = vmatmul.f32.gmra.mxu3 %v5006_v5 }
 0x1ad   : > { %v5248_v14 = vpop.f32.mrf.mxu0 }
 0x1ae   : > { %6979 = vst [vmem:[#allocation39_spill] sm:$0xff] %v5248_v14  ;;  %v5267_v14 = vpop.f32.mrf.mxu1 }
 0x1af   : > { %v5254_v0 = vpop.f32.mrf.mxu3 }
 0x1b0   : > { %1084 = vmatmul.f32.gmra.mxu0 %v5250_v19 }
 0x1b4   : > { %1353 = vmatmul.f32.gmra.mxu3 %v5016_v10 }
 0x1b5   : > { %v5260_v38 = vpop.f32.mrf.mxu0 }
 0x1b6   : > { %6981 = vst [vmem:[#allocation41_spill] sm:$0xff] %v5260_v38  ;;  %v1469_v38 = vld [vmem:[#allocation4 + $0x230] sm:$0xff]  ;;  %v5279_v17 = vpop.f32.mrf.mxu1 }
 0x1b7   : > { %v5264_v5 = vpop.f32.mrf.mxu3  ;;  %1488 = vmatpush.msra.mxu0 %v1469_v38 }
 0x1b8   : > { %1087 = vmatmul.f32.gmra.mxu0 %v5262_v28 }
 0x1bc   : > { %1356 = vmatmul.f32.gmra.mxu3 %v5026_v16 }
 0x1bd   : > { %v5272_v49 = vpop.f32.mrf.mxu0 }
 0x1be   : > { %6983 = vst [vmem:[#allocation43_spill] sm:$0xff] %v5272_v49  ;;  %v1468_v49 = vld [vmem:[#allocation4 + $0x228] sm:$0xff]  ;;  %v5292_v59 = vpop.f32.mrf.mxu1 }
 0x1bf   : > { %v5276_v10 = vpop.f32.mrf.mxu3  ;;  %1489 = vmatpush.msra.mxu0 %v1468_v49  ;;  %v1905_v49 = vld [vmem:[#allocation4 + $0x370] sm:$0xff] }
 0x1c0   : > { %1090 = vmatmul.f32.gmra.mxu0 %v5274_v58  ;;  %1908 = vmatpush.msrb.mxu2 %v1905_v49  ;;  %v1902_v49 = vld [vmem:[#allocation4 + $0x358] sm:$0xff] }
 0x1c2   : > { %1909 = vmatpush.msrb.mxu2 %v1904_v30  ;;  %v1901_v30 = vld [vmem:[#allocation4 + $0x350] sm:$0xff] }
 0x1c4   : > { %1359 = vmatmul.f32.gmra.mxu3 %v5036_v21  ;;  %v5298_v21 = vpop.f32.mrf.mxu2  ;;  %1910 = vmatpush.msrb.mxu2 %v1903_v60  ;;  %v1900_v60 = vld [vmem:[#allocation4 + $0x348] sm:$0xff] }
 0x1c5   : > { %v5284_v32 = vpop.f32.mrf.mxu0  ;;  %6987 = vst [vmem:[#allocation47_spill] sm:$0xff] %v5298_v21  ;;  %v1692_v21 = vld [vmem:[#allocation4 + $0x2f8] sm:$0xff] }
 0x1c6   : > { %6985 = vst [vmem:[#allocation45_spill] sm:$0xff] %v5284_v32  ;;  %v1467_v32 = vld [vmem:[#allocation4 + $0x220] sm:$0xff]  ;;  %v5308_v24 = vpop.f32.mrf.mxu1  ;;  %1693 = vmatpush.msrb.mxu1 %v1692_v21  ;;  %1911 = vmatpush.msrb.mxu2 %v1902_v49  ;;  %v2114_v49 = vld [vmem:[#allocation4 + $0x3c8] sm:$0xff] }
 0x1c7   : > { %v5288_v16 = vpop.f32.mrf.mxu3  ;;  %1490 = vmatpush.msra.mxu0 %v1467_v32  ;;  %v2118_v32 = vld [vmem:[#allocation4 + $0x3e8] sm:$0xff]  ;;  %v1689_v21 = vld [vmem:[#allocation4 + $0x2e0] sm:$0xff] }
 0x1c8   : > { %1093 = vmatmul.f32.gmra.mxu0 %v5286_v12  ;;  %1912 = vmatpush.msrb.mxu2 %v1901_v30  ;;  %v1898_v30 = vld [vmem:[#allocation4 + $0x338] sm:$0xff] }
 0x1c9   : > { %1491 = vmatpush.msra.mxu0 %v1466_v45  ;;  %v1690_v45 = vld [vmem:[#allocation4 + $0x2e8] sm:$0xff] }
 0x1ca   : > { %1913 = vmatpush.msrb.mxu2 %v1900_v60  ;;  %v1897_v60 = vld [vmem:[#allocation4 + $0x330] sm:$0xff] }
 0x1cc   : > { %1362 = vmatmul.f32.gmra.mxu3 %v5046_v31  ;;  %v2120_v31 = vld [vmem:[#allocation4 + $0x3f8] sm:$0xff] }
 0x1cd   : > { %v5294_v38 = vpop.f32.mrf.mxu0  ;;  %2121 = vmatpush.msra.mxu3 %v2120_v31  ;;  %v2117_v31 = vld [vmem:[#allocation4 + $0x3e0] sm:$0xff] }
 0x1ce   : > { %6986 = vst [vmem:[#allocation46_spill] sm:$0xff] %v5294_v38  ;;  %v5306_v38 = vld [vmem:[#allocation2 + $0x82] sm:$0xff] }
 0x1cf   : > { %v5300_v50 = vpop.f32.mrf.mxu3  ;;  %2122 = vmatpush.msra.mxu3 %v2119_v46  ;;  %v5318_v46 = vld [vmem:[#allocation2 + $0x92] sm:$0xff] }
 0x1d0   : > { %1096 = vmatmul.f32.gmra.mxu0 %v5296_v6 }
 0x1d1   : > { %2123 = vmatpush.msra.mxu3 %v2118_v32  ;;  %v2115_v32 = vld [vmem:[#allocation4 + $0x3d0] sm:$0xff] }
 0x1d3   : > { %2124 = vmatpush.msra.mxu3 %v2117_v31  ;;  %v5323_v31 = vpop.f32.mrf.mxu1 }
 0x1d4   : > { %1365 = vmatmul.f32.gmra.mxu3 %v5056_v44  ;;  %v1691_v44 = vld [vmem:[#allocation4 + $0x2f0] sm:$0xff] }
 0x1d5   : > { %v5304_v39 = vpop.f32.mrf.mxu0  ;;  %1694 = vmatpush.msrb.mxu1 %v1691_v44  ;;  %v1688_v44 = vld [vmem:[#allocation4 + $0x2d8] sm:$0xff]  ;;  %2125 = vmatpush.msra.mxu3 %v2116_v11  ;;  %v1464_v11 = vld [vmem:[#allocation4 + $0x208] sm:$0xff] }
 0x1d6   : > { %6988 = vst [vmem:[#allocation48_spill] sm:$0xff] %v5304_v39  ;;  %v5313_v39 = vpop.f32.mrf.mxu2 }
 0x1d7   : > { %v5310_v23 = vpop.f32.mrf.mxu3  ;;  %6990 = vst [vmem:[#allocation50_spill] sm:$0xff] %v5313_v39  ;;  %1695 = vmatpush.msrb.mxu1 %v1690_v45  ;;  %v1465_v39 = vld [vmem:[#allocation4 + $0x210] sm:$0xff]  ;;  %v1899_v45 = vld [vmem:[#allocation4 + $0x340] sm:$0xff]  ;;  %2126 = vmatpush.msra.mxu3 %v2115_v32  ;;  %v2112_v32 = vld [vmem:[#allocation4 + $0x3b8] sm:$0xff] }
 0x1d8   : > { %6989 = vst [vmem:[#allocation49_spill] sm:$0xff] %v5310_v23  ;;  %1099 = vmatmul.f32.gmra.mxu0 %v5306_v38  ;;  %1914 = vmatpush.msrb.mxu2 %v1899_v45  ;;  %v1896_v45 = vld [vmem:[#allocation4 + $0x328] sm:$0xff] }
 0x1d9   : > { %1696 = vmatpush.msrb.mxu1 %v1689_v21  ;;  %1492 = vmatpush.msra.mxu0 %v1465_v39  ;;  %v1686_v21 = vld [vmem:[#allocation4 + $0x2c8] sm:$0xff]  ;;  %v2113_v39 = vld [vmem:[#allocation4 + $0x3c0] sm:$0xff] }
 0x1da   : > { %2127 = vmatpush.msra.mxu3 %v2114_v49  ;;  %1915 = vmatpush.msrb.mxu2 %v1898_v30  ;;  %v2110_v30 = vld [vmem:[#allocation4 + $0x3a8] sm:$0xff] }
 0x1db   : > { %1697 = vmatpush.msrb.mxu1 %v1688_v44  ;;  %v1685_v44 = vld [vmem:[#allocation4 + $0x2c0] sm:$0xff]  ;;  %1493 = vmatpush.msra.mxu0 %v1464_v11  ;;  %v1894_v11 = vld [vmem:[#allocation4 + $0x318] sm:$0xff] }
 0x1dc   : > { %1368 = vmatmul.f32.gmra.mxu3 %v5068_v2  ;;  %v1687_v2 = vld [vmem:[#allocation4 + $0x2d0] sm:$0xff]  ;;  %1916 = vmatpush.msrb.mxu2 %v1897_v60  ;;  %v1463_v60 = vld [vmem:[#allocation4 + $0x200] sm:$0xff] }
 0x1dd   : > { %v5316_v47 = vpop.f32.mrf.mxu0  ;;  %1698 = vmatpush.msrb.mxu1 %v1687_v2  ;;  %2128 = vmatpush.msra.mxu3 %v2113_v39  ;;  %v1684_v2 = vld [vmem:[#allocation4 + $0x2b8] sm:$0xff]  ;;  %v1682_v39 = vld [vmem:[#allocation4 + $0x2a8] sm:$0xff] }
 0x1de   : > { %6991 = vst [vmem:[#allocation51_spill] sm:$0xff] %v5316_v47  ;;  %v5325_v47 = vpop.f32.mrf.mxu2  ;;  %1917 = vmatpush.msrb.mxu2 %v1896_v45  ;;  %v2108_v45 = vld [vmem:[#allocation4 + $0x398] sm:$0xff]  ;;  %1494 = vmatpush.msra.mxu0 %v1463_v60  ;;  %v2105_v60 = vld [vmem:[#allocation4 + $0x380] sm:$0xff] }
 0x1df   : > { %v5320_v53 = vpop.f32.mrf.mxu3  ;;  %6993 = vst [vmem:[#allocation53_spill] sm:$0xff] %v5325_v47  ;;  %1699 = vmatpush.msrb.mxu1 %v1686_v21  ;;  %v2111_v47 = vld [vmem:[#allocation4 + $0x3b0] sm:$0xff]  ;;  %2129 = vmatpush.msra.mxu3 %v2112_v32  ;;  %v1895_v21 = vld [vmem:[#allocation4 + $0x320] sm:$0xff] }
 0x1e0   : > { %6992 = vst [vmem:[#allocation52_spill] sm:$0xff] %v5320_v53  ;;  %1102 = vmatmul.f32.gmra.mxu0 %v5318_v46  ;;  %1918 = vmatpush.msrb.mxu2 %v1895_v21  ;;  %v1681_v32 = vld [vmem:[#allocation4 + $0x2a0] sm:$0xff]  ;;  %v1892_v21 = vld [vmem:[#allocation4 + $0x308] sm:$0xff] }
 0x1e1   : > { %1700 = vmatpush.msrb.mxu1 %v1685_v44  ;;  %2130 = vmatpush.msra.mxu3 %v2111_v47  ;;  %v5335_v44 = vpop.f32.mrf.mxu1  ;;  %v5342_v47 = vld [vmem:[#allocation2 + $0xaa] sm:$0xff] }
 0x1e2   : > { %1919 = vmatpush.msrb.mxu2 %v1894_v11  ;;  %v1678_v11 = vld [vmem:[#allocation4 + $0x288] sm:$0xff] }
 0x1e3   : > { %1701 = vmatpush.msrb.mxu1 %v1684_v2  ;;  %2131 = vmatpush.msra.mxu3 %v2110_v30  ;;  %v2107_v30 = vld [vmem:[#allocation4 + $0x390] sm:$0xff] }
 0x1e4   : > { %1371 = vmatmul.f32.gmra.mxu3 %v5076_v22  ;;  %v1683_v22 = vld [vmem:[#allocation4 + $0x2b0] sm:$0xff] }
 0x1e5   : > { %v5328_v43 = vpop.f32.mrf.mxu0  ;;  %1702 = vmatpush.msrb.mxu1 %v1683_v22  ;;  %v1680_v22 = vld [vmem:[#allocation4 + $0x298] sm:$0xff] }
 0x1e6   : > { %6994 = vst [vmem:[#allocation54_spill] sm:$0xff] %v5328_v43  ;;  %v2109_v43 = vld [vmem:[#allocation4 + $0x3a0] sm:$0xff]  ;;  %v5338_v2 = vpop.f32.mrf.mxu2 }
 0x1e7   : > { %v5332_v49 = vpop.f32.mrf.mxu3  ;;  %1703 = vmatpush.msrb.mxu1 %v1682_v39  ;;  %6996 = vst [vmem:[#allocation56_spill] sm:$0xff] %v5338_v2  ;;  %2132 = vmatpush.msra.mxu3 %v2109_v43  ;;  %v1891_v39 = vld [vmem:[#allocation4 + $0x300] sm:$0xff] }
 0x1e8   : > { %6995 = vst [vmem:[#allocation55_spill] sm:$0xff] %v5332_v49  ;;  %1105 = vmatmul.f32.gmra.mxu0 %v5330_v37  ;;  %v1893_v49 = vld [vmem:[#allocation4 + $0x310] sm:$0xff]  ;;  %v1854_v43 = vld [vmem:[#allocation2 + $0x30] sm:$0xff] }
 0x1e9   : > { %1704 = vmatpush.msrb.mxu1 %v1681_v32  ;;  %1920 = vmatpush.msrb.mxu2 %v1893_v49  ;;  %v2334_v32 = vld [vmem:[#allocation4 + $0x478] sm:$0xff]  ;;  %v1677_v49 = vld [vmem:[#allocation4 + $0x280] sm:$0xff] }
 0x1ea   : > { %2133 = vmatpush.msra.mxu3 %v2108_v45  ;;  %v5348_v45 = vpop.f32.mrf.mxu1  ;;  %2335 = vmatpush.msrb.mxu0 %v2334_v32  ;;  %v5367_v32 = vld [vmem:[#allocation2] sm:$0xff] }
 0x1eb   : > { %1705 = vmatpush.msrb.mxu1 %v1680_v22  ;;  %1921 = vmatpush.msrb.mxu2 %v1892_v21  ;;  %v1426_v22 = vld [vmem:[#allocation2 + $0x19] sm:$0xff] }
 0x1ec   : > { %1374 = vmatmul.f32.gmra.mxu3 %v5086_v27  ;;  %v1679_v27 = vld [vmem:[#allocation4 + $0x290] sm:$0xff] }
 0x1ed   : > { %v5340_v26 = vpop.f32.mrf.mxu0  ;;  %2134 = vmatpush.msra.mxu3 %v2107_v30  ;;  %1706 = vmatpush.msrb.mxu1 %v1679_v27  ;;  %v1427_v27 = vld [vmem:[#allocation2 + $0x21] sm:$0xff] }
 0x1ee   : > { %6997 = vst [vmem:[#allocation57_spill] sm:$0xff] %v5340_v26  ;;  %v2106_v26 = vld [vmem:[#allocation4 + $0x388] sm:$0xff]  ;;  %1922 = vmatpush.msrb.mxu2 %v1891_v39  ;;  %v5352_v21 = vpop.f32.mrf.mxu2 }
 0x1ef   : > { %v5344_v53 = vpop.f32.mrf.mxu3  ;;  %2135 = vmatpush.msra.mxu3 %v2106_v26  ;;  %1923 = vmatmul.f32.vlgmr.msrb.gmra.mxu2 %v1854_v43  ;;  %7000 = vst [vmem:[#allocation60_spill] sm:$0xff] %v5352_v21 }
 0x1f0   : > { %6998 = vst [vmem:[#allocation58_spill] sm:$0xff] %v5344_v53  ;;  %1108 = vmatmul.f32.gmra.mxu0 %v5342_v47  ;;  %1707 = vmatpush.msrb.mxu1 %v1678_v11 }
 0x1f1   : > { %2136 = vmatpush.msra.mxu3 %v2105_v60  ;;  %v1856_v60 = vld [vmem:[#allocation2 + $0x48] sm:$0xff] }
 0x1f2   : > { %1708 = vmatpush.msrb.mxu1 %v1677_v49  ;;  %v5360_v39 = vpop.f32.mrf.mxu1 }
 0x1f3   : > { %1709 = vmatmul.f32.vlgmr.msrb.gmra.mxu1 %v5214_v8 }
 0x1f4   : > { %1377 = vmatmul.f32.gmra.mxu3 %v5096_v36  ;;  %v1855_v36 = vld [vmem:[#allocation2 + $0x38] sm:$0xff] }
 0x1f5   : > { %v5350_v2 = vpop.f32.mrf.mxu0 }
 0x1f6   : > { %6999 = vst [vmem:[#allocation59_spill] sm:$0xff] %v5350_v2  ;;  %v5365_v11 = vpop.f32.mrf.mxu2 }
 0x1f7   : > { %v5354_v30 = vpop.f32.mrf.mxu3  ;;  %1926 = vmatmul.f32.gmra.mxu2 %v1855_v36  ;;  %7003 = vst [vmem:[#allocation63_spill] sm:$0xff] %v5365_v11  ;;  %v2069_v11 = vld [vmem:[#allocation2 + $0x39] sm:$0xff] }
 0x1f8   : > { %7001 = vst [vmem:[#allocation61_spill] sm:$0xff] %v5354_v30  ;;  %1495 = vmatmul.f32.vlgmr.msra.gmra.mxu0 %v1426_v22  ;;  %v2068_v22 = vld [vmem:[#allocation2 + $0x31] sm:$0xff] }
 0x1fa   : > { %v5375_v36 = vpop.f32.mrf.mxu1 }
 0x1fb   : > { %1712 = vmatmul.f32.gmra.mxu1 %v5222_v29  ;;  %v1857_v29 = vld [vmem:[#allocation2 + $0x50] sm:$0xff] }
 0x1fc   : > { %1380 = vmatmul.f32.gmra.mxu3 %v5104_v40  ;;  %v2333_v40 = vld [vmem:[#allocation4 + $0x470] sm:$0xff] }
 0x1fd   : > { %v5358_v26 = vpop.f32.mrf.mxu0  ;;  %2336 = vmatpush.msrb.mxu0 %v2333_v40  ;;  %v1858_v40 = vld [vmem:[#allocation2 + $0x60] sm:$0xff] }
 0x1ff   : > { %v5362_v43 = vpop.f32.mrf.mxu3  ;;  %1929 = vmatmul.f32.gmra.mxu2 %v1856_v60 }
 0x200   : > { %7002 = vst [vmem:[#allocation62_spill] sm:$0xff] %v5362_v43  ;;  %1498 = vmatmul.f32.gmra.mxu0 %v1427_v27  ;;  %v5377_v27 = vpop.f32.mrf.mxu2  ;;  %v1859_v43 = vld [vmem:[#allocation2 + $0x68] sm:$0xff] }
 0x201   : > { %7005 = vst [vmem:[#allocation65_spill] sm:$0xff] %v5377_v27 }
 0x202   : > { %v5385_v21 = vpop.f32.mrf.mxu1 }
 0x203   : > { %1715 = vmatmul.f32.gmra.mxu1 %v5230_v61 }
 0x204   : > { %1383 = vmatmul.f32.gmra.mxu3 %v5367_v32 }
 0x205   : > { %v5370_v8 = vpop.f32.mrf.mxu0 }
 0x207   : > { %v5372_v49 = vpop.f32.mrf.mxu3  ;;  %1932 = vmatmul.f32.gmra.mxu2 %v1857_v29  ;;  %v2070_v29 = vld [vmem:[#allocation2 + $0x49] sm:$0xff] }
 0x208   : > { %7004 = vst [vmem:[#allocation64_spill] sm:$0xff] %v5372_v49  ;;  %1501 = vmatmul.f32.gmra.mxu0 %v2068_v22  ;;  %v5387_v61 = vpop.f32.mrf.mxu2 }
 0x209   : > { %7007 = vst [vmem:[#allocation67_spill] sm:$0xff] %v5387_v61  ;;  %v2071_v61 = vld [vmem:[#allocation2 + $0x51] sm:$0xff] }
 0x20b   : > { %1718 = vmatmul.f32.gmra.mxu1 %v5240_v35  ;;  %v5394_v35 = vpop.f32.mrf.mxu1 }
 0x20c   : > { %1386 = vmatmul.f32.gmra.mxu3 %v5367_v32 }
 0x20d   : > { %v5380_v2 = vpop.f32.mrf.mxu0 }
 0x20f   : > { %v5382_v60 = vpop.f32.mrf.mxu3  ;;  %1935 = vmatmul.f32.gmra.mxu2 %v1858_v40 }
 0x210   : > { %7006 = vst [vmem:[#allocation66_spill] sm:$0xff] %v5382_v60  ;;  %1504 = vmatmul.f32.gmra.mxu0 %v2069_v11  ;;  %v2332_v60 = vld [vmem:[#allocation4 + $0x468] sm:$0xff] }
 0x211   : > { %2337 = vmatpush.msrb.mxu0 %v2332_v60 }
 0x213   : > { %1721 = vmatmul.f32.gmra.mxu1 %v5250_v19  ;;  %v5405_v60 = vpop.f32.mrf.mxu1 }
 0x214   : > { %2137 = vmatmul.f32.vlgmr.msra.gmra.mxu3 %v2068_v22  ;;  %v5398_v22 = vpop.f32.mrf.mxu2  ;;  %7011 = vst [vmem:[#allocation71_spill] sm:$0xff] %v5405_v60  ;;  %v1862_v60 = vld [vmem:[#allocation2 + $0x90] sm:$0xff] }
 0x215   : > { %v5389_v49 = vpop.f32.mrf.mxu0  ;;  %7009 = vst [vmem:[#allocation69_spill] sm:$0xff] %v5398_v22  ;;  %v2331_v22 = vld [vmem:[#allocation4 + $0x460] sm:$0xff] }
 0x216   : > { %2338 = vmatpush.msrb.mxu0 %v2331_v22 }
 0x217   : > { %v5391_v27 = vpop.f32.mrf.mxu3  ;;  %1938 = vmatmul.f32.gmra.mxu2 %v1859_v43 }
 0x218   : > { %7008 = vst [vmem:[#allocation68_spill] sm:$0xff] %v5391_v27  ;;  %1507 = vmatmul.f32.gmra.mxu0 %v2070_v29  ;;  %v1860_v27 = vld [vmem:[#allocation2 + $0x78] sm:$0xff] }
 0x21b   : > { %1724 = vmatmul.f32.gmra.mxu1 %v5262_v28 }
 0x21c   : > { %2140 = vmatmul.f32.gmra.mxu3 %v2069_v11  ;;  %v2072_v11 = vld [vmem:[#allocation2 + $0x61] sm:$0xff]  ;;  %v5410_v53 = vpop.f32.mrf.mxu2 }
 0x21d   : > { %v5396_v30 = vpop.f32.mrf.mxu0  ;;  %7013 = vst [vmem:[#allocation73_spill] sm:$0xff] %v5410_v53 }
 0x21f   : > { %v5400_v40 = vpop.f32.mrf.mxu3  ;;  %1941 = vmatmul.f32.gmra.mxu2 %v1860_v27 }
 0x220   : > { %7010 = vst [vmem:[#allocation70_spill] sm:$0xff] %v5400_v40  ;;  %1510 = vmatmul.f32.gmra.mxu0 %v2071_v61  ;;  %v1861_v40 = vld [vmem:[#allocation2 + $0x80] sm:$0xff] }
 0x223   : > { %1727 = vmatmul.f32.gmra.mxu1 %v5274_v58 }
 0x224   : > { %2143 = vmatmul.f32.gmra.mxu3 %v2070_v29  ;;  %v2073_v29 = vld [vmem:[#allocation2 + $0x69] sm:$0xff]  ;;  %v5419_v20 = vpop.f32.mrf.mxu2 }
 0x225   : > { %v5403_v19 = vpop.f32.mrf.mxu0  ;;  %7016 = vst [vmem:[#allocation76_spill] sm:$0xff] %v5419_v20  ;;  %v1864_v20 = vld [vmem:[#allocation2 + $0xa8] sm:$0xff] }
 0x227   : > { %v5407_v43 = vpop.f32.mrf.mxu3  ;;  %1944 = vmatmul.f32.gmra.mxu2 %v1861_v40  ;;  %v1863_v40 = vld [vmem:[#allocation2 + $0x98] sm:$0xff] }
 0x228   : > { %7012 = vst [vmem:[#allocation72_spill] sm:$0xff] %v5407_v43  ;;  %1513 = vmatmul.f32.gmra.mxu0 %v2072_v11  ;;  %v5417_v43 = vpop.f32.mrf.mxu1 }
 0x229   : > { %7015 = vst [vmem:[#allocation75_spill] sm:$0xff] %v5417_v43 }
 0x22b   : > { %1730 = vmatmul.f32.gmra.mxu1 %v5286_v12  ;;  %v2330_v12 = vld [vmem:[#allocation4 + $0x458] sm:$0xff] }
 0x22c   : > { %2146 = vmatmul.f32.gmra.mxu3 %v2071_v61  ;;  %v2074_v61 = vld [vmem:[#allocation2 + $0x79] sm:$0xff]  ;;  %2339 = vmatpush.msrb.mxu0 %v2330_v12  ;;  %v1865_v12 = vld [vmem:[#allocation2 + $0xb0] sm:$0xff] }
 0x22d   : > { %v5412_v28 = vpop.f32.mrf.mxu0 }
 0x22f   : > { %v5414_v27 = vpop.f32.mrf.mxu3  ;;  %1947 = vmatmul.f32.gmra.mxu2 %v1862_v60 }
 0x230   : > { %7014 = vst [vmem:[#allocation74_spill] sm:$0xff] %v5414_v27  ;;  %1516 = vmatmul.f32.gmra.mxu0 %v2073_v29  ;;  %v5426_v53 = vpop.f32.mrf.mxu1  ;;  %v5428_v27 = vpop.f32.mrf.mxu2 }
 0x231   : > { %7018 = vst [vmem:[#allocation78_spill] sm:$0xff] %v5426_v53  ;;  %v1868_v53 = vld [vmem:[#allocation2 + $0xd8] sm:$0xff] }
 0x232   : > { %7019 = vst [vmem:[#allocation79_spill] sm:$0xff] %v5428_v27  ;;  %v2076_v27 = vld [vmem:[#allocation2 + $0x91] sm:$0xff] }
 0x233   : > { %1733 = vmatmul.f32.gmra.mxu1 %v5296_v6 }
 0x234   : > { %2149 = vmatmul.f32.gmra.mxu3 %v2072_v11  ;;  %v2075_v11 = vld [vmem:[#allocation2 + $0x81] sm:$0xff] }
 0x235   : > { %v5421_v58 = vpop.f32.mrf.mxu0 }
 0x237   : > { %v5423_v22 = vpop.f32.mrf.mxu3  ;;  %1950 = vmatmul.f32.gmra.mxu2 %v1863_v40 }
 0x238   : > { %7017 = vst [vmem:[#allocation77_spill] sm:$0xff] %v5423_v22  ;;  %1519 = vmatmul.f32.gmra.mxu0 %v2074_v61  ;;  %v5435_v6 = vpop.f32.mrf.mxu1 }
 0x239   : > { %7021 = vst [vmem:[#allocation81_spill] sm:$0xff] %v5435_v6  ;;  %v2077_v6 = vld [vmem:[#allocation2 + $0x99] sm:$0xff] }
 0x23b   : > { %1736 = vmatmul.f32.gmra.mxu1 %v5306_v38 }
 0x23c   : > { %2152 = vmatmul.f32.gmra.mxu3 %v2073_v29  ;;  %v5439_v29 = vpop.f32.mrf.mxu2 }
 0x23d   : > { %v5430_v43 = vpop.f32.mrf.mxu0  ;;  %7022 = vst [vmem:[#allocation82_spill] sm:$0xff] %v5439_v29 }
 0x23f   : > { %v5432_v60 = vpop.f32.mrf.mxu3  ;;  %1953 = vmatmul.f32.gmra.mxu2 %v1864_v20 }
 0x240   : > { %7020 = vst [vmem:[#allocation80_spill] sm:$0xff] %v5432_v60  ;;  %1522 = vmatmul.f32.gmra.mxu0 %v2075_v11  ;;  %v2329_v60 = vld [vmem:[#allocation4 + $0x450] sm:$0xff]  ;;  %v5446_v20 = vpop.f32.mrf.mxu1 }
 0x241   : > { %2340 = vmatpush.msrb.mxu0 %v2329_v60  ;;  %7024 = vst [vmem:[#allocation84_spill] sm:$0xff] %v5446_v20 }
 0x243   : > { %1739 = vmatmul.f32.gmra.mxu1 %v5318_v46 }
 0x244   : > { %2155 = vmatmul.f32.gmra.mxu3 %v2074_v61  ;;  %v5451_v29 = vpop.f32.mrf.mxu2 }
 0x245   : > { %v5437_v22 = vpop.f32.mrf.mxu0  ;;  %7026 = vst [vmem:[#allocation86_spill] sm:$0xff] %v5451_v29  ;;  %v1653_v29 = vld [vmem:[#allocation2 + $0xb2] sm:$0xff] }
 0x247   : > { %v5441_v40 = vpop.f32.mrf.mxu3  ;;  %1956 = vmatmul.f32.gmra.mxu2 %v1865_v12  ;;  %v2078_v12 = vld [vmem:[#allocation2 + $0xa9] sm:$0xff] }
 0x248   : > { %7023 = vst [vmem:[#allocation83_spill] sm:$0xff] %v5441_v40  ;;  %1525 = vmatmul.f32.gmra.mxu0 %v2076_v27  ;;  %v1866_v40 = vld [vmem:[#allocation2 + $0xc0] sm:$0xff]  ;;  %v5458_v60 = vpop.f32.mrf.mxu1 }
 0x249   : > { %7028 = vst [vmem:[#allocation88_spill] sm:$0xff] %v5458_v60  ;;  %v2080_v60 = vld [vmem:[#allocation2 + $0xc1] sm:$0xff] }
 0x24b   : > { %1742 = vmatmul.f32.gmra.mxu1 %v5330_v37 }
 0x24c   : > { %2158 = vmatmul.f32.gmra.mxu3 %v2075_v11  ;;  %v5460_v20 = vpop.f32.mrf.mxu2 }
 0x24d   : > { %v5444_v38 = vpop.f32.mrf.mxu0  ;;  %7029 = vst [vmem:[#allocation89_spill] sm:$0xff] %v5460_v20 }
 0x24f   : > { %v5448_v61 = vpop.f32.mrf.mxu3  ;;  %1959 = vmatmul.f32.gmra.mxu2 %v1866_v40  ;;  %v2079_v40 = vld [vmem:[#allocation2 + $0xb1] sm:$0xff] }
 0x250   : > { %7025 = vst [vmem:[#allocation85_spill] sm:$0xff] %v5448_v61  ;;  %1528 = vmatmul.f32.gmra.mxu0 %v2077_v6  ;;  %v1867_v61 = vld [vmem:[#allocation2 + $0xc8] sm:$0xff]  ;;  %v5466_v23 = vpop.f32.mrf.mxu1 }
 0x251   : > { %7032 = vst [vmem:[#allocation92_spill] sm:$0xff] %v5466_v23  ;;  %v1655_v23 = vld [vmem:[#allocation2 + $0xca] sm:$0xff] }
 0x253   : > { %1745 = vmatmul.f32.gmra.mxu1 %v5342_v47 }
 0x254   : > { %2161 = vmatmul.f32.gmra.mxu3 %v2076_v27  ;;  %v5468_v47 = vpop.f32.mrf.mxu2 }
 0x255   : > { %v5453_v46 = vpop.f32.mrf.mxu0  ;;  %7033 = vst [vmem:[#allocation93_spill] sm:$0xff] %v5468_v47 }
 0x257   : > { %v5455_v11 = vpop.f32.mrf.mxu3  ;;  %1962 = vmatmul.f32.gmra.mxu2 %v1867_v61 }
 0x258   : > { %7027 = vst [vmem:[#allocation87_spill] sm:$0xff] %v5455_v11  ;;  %1531 = vmatmul.f32.gmra.mxu0 %v2078_v12  ;;  %v2328_v11 = vld [vmem:[#allocation4 + $0x448] sm:$0xff] }
 0x259   : > { %2341 = vmatpush.msrb.mxu0 %v2328_v11 }
 0x25b   : > { %1748 = vmatmul.f32.gmra.mxu1 %v1653_v29  ;;  %v5474_v29 = vpop.f32.mrf.mxu1 }
 0x25c   : > { %2164 = vmatmul.f32.gmra.mxu3 %v2077_v6  ;;  %v1654_v6 = vld [vmem:[#allocation2 + $0xc2] sm:$0xff]  ;;  %7036 = vst [vmem:[#allocation96_spill] sm:$0xff] %v5474_v29 }
 0x25d   : > { %v5462_v37 = vpop.f32.mrf.mxu0 }
 0x25e   : > { %7030 = vst [vmem:[#allocation90_spill] sm:$0xff] %v5462_v37  ;;  %v1656_v37 = vld [vmem:[#allocation2 + $0xda] sm:$0xff] }
 0x25f   : > { %v5464_v27 = vpop.f32.mrf.mxu3  ;;  %1965 = vmatmul.f32.gmra.mxu2 %v1868_v53  ;;  %v890_v53 = vadd.f32 %v5236_v52, %v5083_v25  ;;  %v893_v25 = vadd.f32 %v5252_v63, %v5091_v33  ;;  %v1657_v33 = vld [vmem:[#allocation2 + $0xe2] sm:$0xff]  ;;  %v896_v63 = vadd.f32 %v5267_v14, %v5106_v42 }
 0x260   : > { %7031 = vst [vmem:[#allocation91_spill] sm:$0xff] %v5464_v27  ;;  %1534 = vmatmul.f32.gmra.mxu0 %v2079_v40  ;;  %v1869_v27 = vld [vmem:[#allocation2 + $0xe0] sm:$0xff]  ;;  %v2326_v42 = vld [vmem:[#allocation4 + $0x438] sm:$0xff] }
 0x263   : > { %1751 = vmatmul.f32.gmra.mxu1 %v1654_v6  ;;  %v2327_v6 = vld [vmem:[#allocation4 + $0x440] sm:$0xff] }
 0x264   : > { %2167 = vmatmul.f32.gmra.mxu3 %v2078_v12  ;;  %v5480_v12 = vpop.f32.mrf.mxu2  ;;  %2342 = vmatpush.msrb.mxu0 %v2327_v6 }
 0x265   : > { %v5470_v20 = vpop.f32.mrf.mxu0  ;;  %7038 = vst [vmem:[#allocation98_spill] sm:$0xff] %v5480_v12 }
 0x266   : > { %7034 = vst [vmem:[#allocation94_spill] sm:$0xff] %v5470_v20  ;;  %v2081_v20 = vld [vmem:[#allocation2 + $0xc9] sm:$0xff]  ;;  %2343 = vmatpush.msrb.mxu0 %v2326_v42 }
 0x267   : > { %v5472_v61 = vpop.f32.mrf.mxu3  ;;  %1968 = vmatmul.f32.gmra.mxu2 %v1869_v27 }
 0x268   : > { %7035 = vst [vmem:[#allocation95_spill] sm:$0xff] %v5472_v61  ;;  %1537 = vmatmul.f32.gmra.mxu0 %v2080_v60  ;;  %v1175_v61 = vadd.f32 %v5358_v26, %v890_v53 }
 0x26a   : > { %v1390_v27 = vadd.f32 %v5199_v18, %v1175_v61 }
 0x26b   : > { %1754 = vmatmul.f32.gmra.mxu1 %v1655_v23  ;;  %v1176_v23 = vadd.f32 %v5370_v8, %v893_v25  ;;  %v2083_v8 = vld [vmem:[#allocation2 + $0xe1] sm:$0xff] }
 0x26c   : > { %2170 = vmatmul.f32.gmra.mxu3 %v2079_v40  ;;  %v1870_v40 = vld [vmem:[#allocation2 + $0xf0] sm:$0xff] }
 0x26d   : > { %v5476_v11 = vpop.f32.mrf.mxu0  ;;  %v1391_v18 = vadd.f32 %v5204_v34, %v1176_v23 }
 0x26e   : > { %7037 = vst [vmem:[#allocation97_spill] sm:$0xff] %v5476_v11 }
 0x26f   : > { %v5482_v47 = vpop.f32.mrf.mxu3  ;;  %1971 = vmatmul.f32.gmra.mxu2 %v1870_v40 }
 0x270   : > { %7039 = vst [vmem:[#allocation99_spill] sm:$0xff] %v5482_v47  ;;  %1540 = vmatmul.f32.gmra.mxu0 %v2081_v20  ;;  %v1710_v11 = vpop.f32.mrf.mxu1  ;;  %v2082_v47 = vld [vmem:[#allocation2 + $0xd9] sm:$0xff] }
 0x272   : > { %v1924_v26 = vpop.f32.mrf.mxu2 }
 0x273   : > { %1757 = vmatmul.f32.gmra.mxu1 %v1656_v37  ;;  %v1177_v37 = vadd.f32 %v5380_v2, %v896_v63  ;;  %v899_v2 = vadd.f32 %v5279_v17, %v5112_v48 }
 0x274   : > { %2173 = vmatmul.f32.gmra.mxu3 %v2080_v60  ;;  %v1871_v60 = vld [vmem:[#allocation2 + $0xf8] sm:$0xff] }
 0x275   : > { %v1496_v29 = vpop.f32.mrf.mxu0 }
 0x276   : > { %v1604_v52 = vadd.f32 %v1496_v29, %v1390_v27 }
 0x277   : > { %v5488_v12 = vpop.f32.mrf.mxu3  ;;  %1974 = vmatmul.f32.gmra.mxu2 %v1871_v60 }
 0x278   : > { %7040 = vst [vmem:[#allocation100_spill] sm:$0xff] %v5488_v12  ;;  %v1818_v53 = vadd.f32 %v1710_v11, %v1604_v52  ;;  %1543 = vmatmul.f32.gmra.mxu0 %v2082_v47  ;;  %v1713_v40 = vpop.f32.mrf.mxu1  ;;  %v1872_v52 = vld [vmem:[#allocation2 + $0x108] sm:$0xff] }
 0x279   : > { %v2292_v12 = vld [vmem:[#allocation2 + $0xaa] sm:$0xff] }
 0x27a   : > { %v5491_v6 = vadd.f32 %v1924_v26, %v1818_v53  ;;  %v1927_v11 = vpop.f32.mrf.mxu2  ;;  %v1392_v26 = vadd.f32 %v5209_v54, %v1177_v37  ;;  %v1658_v53 = vld [vmem:[#allocation2 + $0xf2] sm:$0xff]  ;;  %v2715_v54 = vld [vmem:[#allocation6 + $0xf8] sm:$0xff]  ;;  %v1659_v37 = vld [vmem:[#allocation2 + $0xfa] sm:$0xff] }
 0x27b   : > { %1760 = vmatmul.f32.gmra.mxu1 %v1657_v33  ;;  %v1178_v33 = vadd.f32 %v5389_v49, %v899_v2  ;;  %v2325_v2 = vld [vmem:[#allocation4 + $0x430] sm:$0xff] }
 0x27c   : > { %2176 = vmatmul.f32.gmra.mxu3 %v2081_v20  ;;  %v2666_v20 = vld [vmem:[#allocation6 + $0x78] sm:$0xff]  ;;  %2716 = vmatpush.msra.mxu1 %v2715_v54 }
 0x27d   : > { %v1499_v61 = vpop.f32.mrf.mxu0  ;;  %2829 = vmatpush.msra.mxu2 %v2666_v20  ;;  %2344 = vmatpush.msrb.mxu0 %v2325_v2  ;;  %v1662_v2 = vld [vmem:[#allocation2 + $0x122] sm:$0xff] }
 0x27e   : > { %v1605_v29 = vadd.f32 %v1499_v61, %v1391_v18  ;;  %v2084_v61 = vld [vmem:[#allocation2 + $0xf1] sm:$0xff] }
 0x27f   : > { %v5496_v27 = vpop.f32.mrf.mxu3  ;;  %1977 = vmatmul.f32.gmra.mxu2 %v1872_v52  ;;  %v2085_v52 = vld [vmem:[#allocation2 + $0xf9] sm:$0xff] }
 0x280   : > { %7041 = vst [vmem:[#allocation101_spill] sm:$0xff] %v5496_v27  ;;  %v1819_v25 = vadd.f32 %v1713_v40, %v1605_v29  ;;  %1546 = vmatmul.f32.gmra.mxu0 %v2083_v8  ;;  %v1716_v23 = vpop.f32.mrf.mxu1 }
 0x282   : > { %v5499_v34 = vadd.f32 %v1927_v11, %v1819_v25  ;;  %v1930_v40 = vpop.f32.mrf.mxu2  ;;  %v1393_v11 = vadd.f32 %v5216_v13, %v1178_v33  ;;  %v902_v25 = vadd.f32 %v5292_v59, %v5119_v55 }
 0x283   : > { %1763 = vmatmul.f32.gmra.mxu1 %v1658_v53  ;;  %v2665_v53 = vld [vmem:[#allocation6 + $0x70] sm:$0xff] }
 0x284   : > { %2179 = vmatmul.f32.gmra.mxu3 %v2082_v47  ;;  %v1873_v47 = vld [vmem:[#allocation2 + $0x110] sm:$0xff]  ;;  %v1179_v42 = vadd.f32 %v5396_v30, %v902_v25  ;;  %2830 = vmatpush.msra.mxu2 %v2665_v53  ;;  %v905_v30 = vadd.f32 %v5308_v24, %v5127_v1 }
 0x285   : > { %v1502_v14 = vpop.f32.mrf.mxu0  ;;  %v1661_v25 = vld [vmem:[#allocation2 + $0x112] sm:$0xff] }
 0x286   : > { %v1606_v60 = vadd.f32 %v1502_v14, %v1392_v26  ;;  %v1394_v13 = vadd.f32 %v5224_v41, %v1179_v42 }
 0x287   : > { %v5504_v18 = vpop.f32.mrf.mxu3  ;;  %1980 = vmatmul.f32.gmra.mxu2 %v1873_v47  ;;  %v1180_v47 = vadd.f32 %v5403_v19, %v905_v30  ;;  %v908_v19 = vadd.f32 %v5323_v31, %v5132_v7 }
 0x288   : > { %7042 = vst [vmem:[#allocation102_spill] sm:$0xff] %v5504_v18  ;;  %v1820_v63 = vadd.f32 %v1716_v23, %v1606_v60  ;;  %1549 = vmatmul.f32.gmra.mxu0 %v2084_v61  ;;  %v1719_v17 = vpop.f32.mrf.mxu1  ;;  %v1660_v60 = vld [vmem:[#allocation2 + $0x10a] sm:$0xff] }
 0x289   : > { %v1395_v1 = vadd.f32 %v5232_v3, %v1180_v47  ;;  %v1876_v3 = vld [vmem:[#allocation2 + $0x138] sm:$0xff] }
 0x28a   : > { %v5507_v29 = vadd.f32 %v1930_v40, %v1820_v63  ;;  %v1933_v26 = vpop.f32.mrf.mxu2  ;;  %v2086_v63 = vld [vmem:[#allocation2 + $0x109] sm:$0xff]  ;;  %v2713_v47 = vld [vmem:[#allocation6 + $0xe8] sm:$0xff] }
 0x28b   : > { %1766 = vmatmul.f32.gmra.mxu1 %v1659_v37 }
 0x28c   : > { %2182 = vmatmul.f32.gmra.mxu3 %v2083_v8  ;;  %v1874_v8 = vld [vmem:[#allocation2 + $0x120] sm:$0xff] }
 0x28d   : > { %v1505_v48 = vpop.f32.mrf.mxu0 }
 0x28e   : > { %v1607_v20 = vadd.f32 %v1505_v48, %v1393_v11  ;;  %v2714_v11 = vld [vmem:[#allocation6 + $0xf0] sm:$0xff]  ;;  %v1875_v48 = vld [vmem:[#allocation2 + $0x128] sm:$0xff] }
 0x28f   : > { %v5512_v49 = vpop.f32.mrf.mxu3  ;;  %1983 = vmatmul.f32.gmra.mxu2 %v1874_v8  ;;  %2717 = vmatpush.msra.mxu1 %v2714_v11  ;;  %v914_v11 = vadd.f32 %v5348_v45, %v5142_v56 }
 0x290   : > { %7043 = vst [vmem:[#allocation103_spill] sm:$0xff] %v5512_v49  ;;  %v1821_v14 = vadd.f32 %v1719_v17, %v1607_v20  ;;  %1552 = vmatmul.f32.gmra.mxu0 %v2085_v52  ;;  %v1722_v59 = vpop.f32.mrf.mxu1 }
 0x291   : > { %2718 = vmatpush.msra.mxu1 %v2713_v47  ;;  %v1880_v47 = vld [vmem:[#allocation2 + $0x168] sm:$0xff] }
 0x292   : > { %v5515_v23 = vadd.f32 %v1933_v26, %v1821_v14  ;;  %v1936_v54 = vpop.f32.mrf.mxu2  ;;  %v2087_v26 = vld [vmem:[#allocation2 + $0x111] sm:$0xff]  ;;  %v1181_v14 = vadd.f32 %v5412_v28, %v908_v19 }
 0x293   : > { %1769 = vmatmul.f32.gmra.mxu1 %v1660_v60 }
 0x294   : > { %2185 = vmatmul.f32.gmra.mxu3 %v2084_v61  ;;  %v1396_v53 = vadd.f32 %v5244_v57, %v1181_v14  ;;  %v2664_v57 = vld [vmem:[#allocation6 + $0x68] sm:$0xff]  ;;  %v917_v14 = vadd.f32 %v5360_v39, %v5147_v62  ;;  %v2712_v39 = vld [vmem:[#allocation6 + $0xe0] sm:$0xff] }
 0x295   : > { %v1508_v55 = vpop.f32.mrf.mxu0  ;;  %2831 = vmatpush.msra.mxu2 %v2664_v57  ;;  %2719 = vmatpush.msra.mxu1 %v2712_v39 }
 0x296   : > { %v1608_v40 = vadd.f32 %v1508_v55, %v1394_v13  ;;  %v911_v55 = vadd.f32 %v5335_v44, %v5137_v51 }
 0x297   : > { %v2138_v33 = vpop.f32.mrf.mxu3  ;;  %1986 = vmatmul.f32.gmra.mxu2 %v1875_v48 }
 0x298   : > { %v5522_v61 = vadd.f32 %v2138_v33, %v5491_v6  ;;  %v1822_v41 = vadd.f32 %v1722_v59, %v1608_v40  ;;  %1555 = vmatmul.f32.gmra.mxu0 %v2086_v63  ;;  %v1725_v37 = vpop.f32.mrf.mxu1  ;;  %v1182_v30 = vadd.f32 %v5421_v58, %v911_v55  ;;  %v1879_v55 = vld [vmem:[#allocation2 + $0x158] sm:$0xff] }
 0x29a   : > { %v5524_v17 = vadd.f32 %v1936_v54, %v1822_v41  ;;  %v1939_v42 = vpop.f32.mrf.mxu2  ;;  %v1877_v54 = vld [vmem:[#allocation2 + $0x140] sm:$0xff]  ;;  %v1397_v51 = vadd.f32 %v5254_v0, %v1182_v30  ;;  %v1878_v0 = vld [vmem:[#allocation2 + $0x150] sm:$0xff] }
 0x29b   : > { %1772 = vmatmul.f32.gmra.mxu1 %v1661_v25  ;;  %v1183_v25 = vadd.f32 %v5430_v43, %v914_v11  ;;  %v2092_v11 = vld [vmem:[#allocation2 + $0x151] sm:$0xff] }
 0x29c   : > { %2188 = vmatmul.f32.gmra.mxu3 %v2085_v52 }
 0x29d   : > { %v1511_v24 = vpop.f32.mrf.mxu0 }
 0x29e   : > { %v1609_v6 = vadd.f32 %v1511_v24, %v1395_v1  ;;  %v2089_v24 = vld [vmem:[#allocation2 + $0x129] sm:$0xff] }
 0x29f   : > { %v2141_v20 = vpop.f32.mrf.mxu3  ;;  %1989 = vmatmul.f32.gmra.mxu2 %v1876_v3 }
 0x2a0   : > { %v5531_v8 = vadd.f32 %v2141_v20, %v5499_v34  ;;  %v1823_v13 = vadd.f32 %v1725_v37, %v1609_v6  ;;  %1558 = vmatmul.f32.gmra.mxu0 %v2087_v26  ;;  %v1728_v31 = vpop.f32.mrf.mxu1  ;;  %v2088_v34 = vld [vmem:[#allocation2 + $0x121] sm:$0xff] }
 0x2a2   : > { %v5533_v52 = vadd.f32 %v1939_v42, %v1823_v13  ;;  %v1942_v60 = vpop.f32.mrf.mxu2  ;;  %v1664_v42 = vld [vmem:[#allocation2 + $0x13a] sm:$0xff] }
 0x2a3   : > { %1775 = vmatmul.f32.gmra.mxu1 %v1662_v2  ;;  %v2323_v2 = vld [vmem:[#allocation4 + $0x420] sm:$0xff] }
 0x2a4   : > { %2191 = vmatmul.f32.gmra.mxu3 %v2086_v63  ;;  %v2324_v63 = vld [vmem:[#allocation4 + $0x428] sm:$0xff] }
 0x2a5   : > { %v1514_v7 = vpop.f32.mrf.mxu0  ;;  %2345 = vmatpush.msrb.mxu0 %v2324_v63 }
 0x2a6   : > { %v1610_v28 = vadd.f32 %v1514_v7, %v1396_v53  ;;  %v1184_v53 = vadd.f32 %v5437_v22, %v917_v14 }
 0x2a7   : > { %v2144_v59 = vpop.f32.mrf.mxu3  ;;  %1992 = vmatmul.f32.gmra.mxu2 %v1877_v54  ;;  %2346 = vmatpush.msrb.mxu0 %v2323_v2 }
 0x2a8   : > { %v5540_v40 = vadd.f32 %v2144_v59, %v5507_v29  ;;  %v1824_v33 = vadd.f32 %v1728_v31, %v1610_v28  ;;  %1561 = vmatmul.f32.gmra.mxu0 %v2088_v34  ;;  %v1731_v58 = vpop.f32.mrf.mxu1  ;;  %v1663_v29 = vld [vmem:[#allocation2 + $0x12a] sm:$0xff]  ;;  %v1399_v62 = vadd.f32 %v5276_v10, %v1184_v53 }
 0x2a9   : > { %v5591_v53 = vld [vmem:[#allocation2 + $0x16a] sm:$0xff] }
 0x2aa   : > { %v5542_v41 = vadd.f32 %v1942_v60, %v1824_v33  ;;  %v1945_v37 = vpop.f32.mrf.mxu2  ;;  %v2091_v33 = vld [vmem:[#allocation2 + $0x141] sm:$0xff] }
 0x2ab   : > { %1778 = vmatmul.f32.gmra.mxu1 %v1663_v29 }
 0x2ac   : > { %2194 = vmatmul.f32.gmra.mxu3 %v2087_v26  ;;  %v1398_v26 = vadd.f32 %v5264_v5, %v1183_v25  ;;  %v2663_v5 = vld [vmem:[#allocation6 + $0x60] sm:$0xff] }
 0x2ad   : > { %v1517_v44 = vpop.f32.mrf.mxu0  ;;  %2832 = vmatpush.msra.mxu2 %v2663_v5  ;;  %v1881_v25 = vld [vmem:[#allocation2 + $0x170] sm:$0xff] }
 0x2ae   : > { %v1611_v48 = vadd.f32 %v1517_v44, %v1397_v51  ;;  %v2094_v5 = vld [vmem:[#allocation2 + $0x169] sm:$0xff] }
 0x2af   : > { %v2147_v1 = vpop.f32.mrf.mxu3  ;;  %1995 = vmatmul.f32.gmra.mxu2 %v1878_v0 }
 0x2b0   : > { %v5549_v19 = vadd.f32 %v2147_v1, %v5515_v23  ;;  %v1825_v6 = vadd.f32 %v1731_v58, %v1611_v48  ;;  %1564 = vmatmul.f32.gmra.mxu0 %v2089_v24  ;;  %v1734_v45 = vpop.f32.mrf.mxu1  ;;  %v2090_v23 = vld [vmem:[#allocation2 + $0x139] sm:$0xff] }
 0x2b1   : > { %v5573_v58 = vld [vmem:[#allocation2 + $0x152] sm:$0xff] }
 0x2b2   : > { %v5551_v20 = vadd.f32 %v1945_v37, %v1825_v6  ;;  %v1948_v3 = vpop.f32.mrf.mxu2 }
 0x2b3   : > { %1781 = vmatmul.f32.gmra.mxu1 %v1664_v42 }
 0x2b4   : > { %2197 = vmatmul.f32.gmra.mxu3 %v2088_v34  ;;  %v920_v34 = vadd.f32 %v5375_v36, %v5152_v4 }
 0x2b5   : > { %v1520_v56 = vpop.f32.mrf.mxu0 }
 0x2b6   : > { %v1612_v43 = vadd.f32 %v1520_v56, %v1398_v26  ;;  %v1185_v63 = vadd.f32 %v5444_v38, %v920_v34  ;;  %v923_v38 = vadd.f32 %v5385_v21, %v5157_v9  ;;  %v2322_v21 = vld [vmem:[#allocation4 + $0x418] sm:$0xff]  ;;  %v2095_v34 = vld [vmem:[#allocation2 + $0x171] sm:$0xff] }
 0x2b7   : > { %v2150_v13 = vpop.f32.mrf.mxu3  ;;  %1998 = vmatmul.f32.gmra.mxu2 %v1879_v55  ;;  %2347 = vmatpush.msrb.mxu0 %v2322_v21  ;;  %v2661_v55 = vld [vmem:[#allocation6 + $0x50] sm:$0xff]  ;;  %v2659_v21 = vld [vmem:[#allocation6 + $0x40] sm:$0xff] }
 0x2b8   : > { %v5558_v7 = vadd.f32 %v2150_v13, %v5524_v17  ;;  %v1826_v31 = vadd.f32 %v1734_v45, %v1612_v43  ;;  %1567 = vmatmul.f32.gmra.mxu0 %v2090_v23  ;;  %v1737_v22 = vpop.f32.mrf.mxu1  ;;  %v5563_v17 = vld [vmem:[#allocation2 + $0x142] sm:$0xff]  ;;  %v1400_v44 = vadd.f32 %v5288_v16, %v1185_v63  ;;  %v1186_v1 = vadd.f32 %v5453_v46, %v923_v38  ;;  %v5583_v46 = vld [vmem:[#allocation2 + $0x15a] sm:$0xff] }
 0x2b9   : > { %v2662_v16 = vld [vmem:[#allocation6 + $0x58] sm:$0xff]  ;;  %v2093_v45 = vld [vmem:[#allocation2 + $0x159] sm:$0xff] }
 0x2ba   : > { %v5560_v28 = vadd.f32 %v1948_v3, %v1826_v31  ;;  %v1951_v57 = vpop.f32.mrf.mxu2  ;;  %2833 = vmatpush.msra.mxu2 %v2662_v16  ;;  %v1401_v9 = vadd.f32 %v5300_v50, %v1186_v1  ;;  %v2711_v13 = vld [vmem:[#allocation6 + $0xd8] sm:$0xff]  ;;  %v1882_v50 = vld [vmem:[#allocation2 + $0x180] sm:$0xff] }
 0x2bb   : > { %1784 = vmatmul.f32.gmra.mxu1 %v5563_v17  ;;  %v2097_v38 = vld [vmem:[#allocation2 + $0x189] sm:$0xff]  ;;  %v2098_v16 = vld [vmem:[#allocation2 + $0x199] sm:$0xff] }
 0x2bc   : > { %2200 = vmatmul.f32.gmra.mxu3 %v2089_v24  ;;  %2720 = vmatpush.msra.mxu1 %v2711_v13  ;;  %v2101_v13 = vld [vmem:[#allocation2 + $0x1b9] sm:$0xff] }
 0x2bd   : > { %v1523_v59 = vpop.f32.mrf.mxu0  ;;  %2834 = vmatpush.msra.mxu2 %v2661_v55  ;;  %v2657_v55 = vld [vmem:[#allocation6 + $0x30] sm:$0xff] }
 0x2be   : > { %v1613_v60 = vadd.f32 %v1523_v59, %v1399_v62  ;;  %v2321_v62 = vld [vmem:[#allocation4 + $0x410] sm:$0xff]  ;;  %v5599_v59 = vld [vmem:[#allocation2 + $0x172] sm:$0xff] }
 0x2bf   : > { %v2153_v30 = vpop.f32.mrf.mxu3  ;;  %2001 = vmatmul.f32.gmra.mxu2 %v1880_v47  ;;  %2348 = vmatpush.msrb.mxu0 %v2321_v62  ;;  %v2102_v62 = vld [vmem:[#allocation2 + $0x1c9] sm:$0xff] }
 0x2c0   : > { %v5569_v54 = vadd.f32 %v2153_v30, %v5533_v52  ;;  %v1827_v10 = vadd.f32 %v1737_v22, %v1613_v60  ;;  %1570 = vmatmul.f32.gmra.mxu0 %v2091_v33  ;;  %v1740_v36 = vpop.f32.mrf.mxu1  ;;  %v1884_v30 = vld [vmem:[#allocation2 + $0x198] sm:$0xff] }
 0x2c2   : > { %v2041_v51 = vadd.f32 %v1951_v57, %v1827_v10  ;;  %v1954_v48 = vpop.f32.mrf.mxu2  ;;  %v5606_v57 = vld [vmem:[#allocation2 + $0x182] sm:$0xff] }
 0x2c3   : > { %1787 = vmatmul.f32.gmra.mxu1 %v5573_v58  ;;  %v2096_v10 = vld [vmem:[#allocation2 + $0x181] sm:$0xff] }
 0x2c4   : > { %2203 = vmatmul.f32.gmra.mxu3 %v2090_v23 }
 0x2c5   : > { %v1526_v4 = vpop.f32.mrf.mxu0 }
 0x2c6   : > { %v1614_v29 = vadd.f32 %v1526_v4, %v1400_v44  ;;  %v5613_v4 = vld [vmem:[#allocation2 + $0x18a] sm:$0xff] }
 0x2c7   : > { %v2156_v52 = vpop.f32.mrf.mxu3  ;;  %2004 = vmatmul.f32.gmra.mxu2 %v1881_v25 }
 0x2c8   : > { %v5579_v24 = vadd.f32 %v2156_v52, %v5542_v41  ;;  %v1828_v37 = vadd.f32 %v1740_v36, %v1614_v29  ;;  %1573 = vmatmul.f32.gmra.mxu0 %v2092_v11  ;;  %v1743_v26 = vpop.f32.mrf.mxu1  ;;  %v2660_v52 = vld [vmem:[#allocation6 + $0x48] sm:$0xff] }
 0x2c9   : > { %2835 = vmatpush.msra.mxu2 %v2660_v52  ;;  %v2656_v52 = vld [vmem:[#allocation6 + $0x28] sm:$0xff] }
 0x2ca   : > { %v2042_v6 = vadd.f32 %v1954_v48, %v1828_v37  ;;  %v1957_v42 = vpop.f32.mrf.mxu2  ;;  %v2709_v48 = vld [vmem:[#allocation6 + $0xc8] sm:$0xff] }
 0x2cb   : > { %1790 = vmatmul.f32.gmra.mxu1 %v5583_v46  ;;  %v5621_v37 = vld [vmem:[#allocation2 + $0x19a] sm:$0xff]  ;;  %2836 = vmatpush.msra.mxu2 %v2659_v21  ;;  %v2287_v21 = vld [vmem:[#allocation2 + $0x6a] sm:$0xff] }
 0x2cc   : > { %2206 = vmatmul.f32.gmra.mxu3 %v2091_v33 }
 0x2cd   : > { %v1529_v0 = vpop.f32.mrf.mxu0 }
 0x2ce   : > { %v1615_v41 = vadd.f32 %v1529_v0, %v1401_v9  ;;  %v2099_v9 = vld [vmem:[#allocation2 + $0x1a1] sm:$0xff]  ;;  %v2319_v0 = vld [vmem:[#allocation4 + $0x400] sm:$0xff] }
 0x2cf   : > { %v2159_v56 = vpop.f32.mrf.mxu3  ;;  %2007 = vmatmul.f32.gmra.mxu2 %v1882_v50  ;;  %v2658_v50 = vld [vmem:[#allocation6 + $0x38] sm:$0xff] }
 0x2d0   : > { %v5586_v14 = vadd.f32 %v2159_v56, %v5551_v20  ;;  %v1829_v43 = vadd.f32 %v1743_v26, %v1615_v41  ;;  %1576 = vmatmul.f32.gmra.mxu0 %v2093_v45  ;;  %v1883_v20 = vld [vmem:[#allocation2 + $0x188] sm:$0xff]  ;;  %v2708_v26 = vld [vmem:[#allocation6 + $0xc0] sm:$0xff]  ;;  %2837 = vmatpush.msra.mxu2 %v2658_v50 }
 0x2d1   : > { %v5633_v56 = vld [vmem:[#allocation2 + $0x1b2] sm:$0xff] }
 0x2d2   : > { %v2043_v23 = vadd.f32 %v1957_v42, %v1829_v43  ;;  %v5639_v43 = vld [vmem:[#allocation2 + $0x1ba] sm:$0xff]  ;;  %2838 = vmatpush.msra.mxu2 %v2657_v55 }
 0x2d3   : > { %1793 = vmatmul.f32.gmra.mxu1 %v5591_v53  ;;  %7045 = vst [vmem:[#allocation105_spill] sm:$0xff] %v5639_v43 }
 0x2d4   : > { %2209 = vmatmul.f32.gmra.mxu3 %v2092_v11  ;;  %v2320_v11 = vld [vmem:[#allocation4 + $0x408] sm:$0xff]  ;;  %2839 = vmatpush.msra.mxu2 %v2656_v52 }
 0x2d5   : > { %v5589_v3 = vpop.f32.mrf.mxu0  ;;  %2349 = vmatpush.msrb.mxu0 %v2320_v11  ;;  %v2705_v11 = vld [vmem:[#allocation6 + $0xa8] sm:$0xff] }
 0x2d7   : > { %v2162_v31 = vpop.f32.mrf.mxu3  ;;  %2010 = vmatmul.f32.gmra.mxu2 %v1883_v20  ;;  %2350 = vmatpush.msrb.mxu0 %v2319_v0 }
 0x2d8   : > { %v5594_v2 = vadd.f32 %v2162_v31, %v5560_v28  ;;  %1579 = vmatmul.f32.gmra.mxu0 %v2094_v5  ;;  %v2710_v28 = vld [vmem:[#allocation6 + $0xd0] sm:$0xff]  ;;  %v2282_v31 = vld [vmem:[#allocation2 + $0x32] sm:$0xff] }
 0x2d9   : > { %2721 = vmatpush.msra.mxu1 %v2710_v28  ;;  %v2706_v28 = vld [vmem:[#allocation6 + $0xb0] sm:$0xff] }
 0x2db   : > { %1796 = vmatmul.f32.gmra.mxu1 %v5599_v59 }
 0x2dc   : > { %2212 = vmatmul.f32.gmra.mxu3 %v2093_v45  ;;  %2722 = vmatpush.msra.mxu1 %v2709_v48  ;;  %v2100_v45 = vld [vmem:[#allocation2 + $0x1b1] sm:$0xff]  ;;  %v5654_v48 = vpop.f32.mrf.mxu1 }
 0x2dd   : > { %v5597_v39 = vpop.f32.mrf.mxu0 }
 0x2de   : > { %2723 = vmatpush.msra.mxu1 %v2708_v26 }
 0x2df   : > { %v2165_v22 = vpop.f32.mrf.mxu3  ;;  %2013 = vmatmul.f32.gmra.mxu2 %v1884_v30  ;;  %v2103_v30 = vld [vmem:[#allocation2 + $0x1d1] sm:$0xff] }
 0x2e0   : > { %v5601_v60 = vadd.f32 %v2165_v22, %v2041_v51  ;;  %1582 = vmatmul.f32.gmra.mxu0 %v2095_v34  ;;  %v1885_v51 = vld [vmem:[#allocation2 + $0x1a0] sm:$0xff] }
 0x2e3   : > { %1799 = vmatmul.f32.gmra.mxu1 %v5606_v57 }
 0x2e4   : > { %2215 = vmatmul.f32.gmra.mxu3 %v2094_v5  ;;  %v2707_v5 = vld [vmem:[#allocation6 + $0xb8] sm:$0xff]  ;;  %v5662_v26 = vpop.f32.mrf.mxu1 }
 0x2e5   : > { %v5604_v33 = vpop.f32.mrf.mxu0  ;;  %2724 = vmatpush.msra.mxu1 %v2707_v5  ;;  %v2704_v5 = vld [vmem:[#allocation6 + $0xa0] sm:$0xff] }
 0x2e7   : > { %v2168_v63 = vpop.f32.mrf.mxu3  ;;  %2016 = vmatmul.f32.gmra.mxu2 %v1885_v51  ;;  %2725 = vmatpush.msra.mxu1 %v2706_v28  ;;  %v5650_v51 = vpop.f32.mrf.mxu2 }
 0x2e8   : > { %v5608_v47 = vadd.f32 %v2168_v63, %v2042_v6  ;;  %1585 = vmatmul.f32.gmra.mxu0 %v2096_v10  ;;  %v5627_v6 = vld [vmem:[#allocation2 + $0x1a2] sm:$0xff] }
 0x2e9   : > { %2726 = vmatpush.msra.mxu1 %v2705_v11  ;;  %v2654_v11 = vld [vmem:[#allocation6 + $0x18] sm:$0xff] }
 0x2eb   : > { %1802 = vmatmul.f32.gmra.mxu1 %v5613_v4 }
 0x2ec   : > { %2218 = vmatmul.f32.gmra.mxu3 %v2095_v34  ;;  %v2284_v34 = vld [vmem:[#allocation2 + $0x4a] sm:$0xff]  ;;  %2727 = vmatpush.msra.mxu1 %v2704_v5 }
 0x2ed   : > { %v5611_v44 = vpop.f32.mrf.mxu0 }
 0x2ef   : > { %v2171_v36 = vpop.f32.mrf.mxu3  ;;  %2019 = vmatmul.f32.gmra.mxu2 %v5367_v32 }
 0x2f0   : > { %v5615_v29 = vadd.f32 %v2171_v36, %v2043_v23  ;;  %1588 = vmatmul.f32.gmra.mxu0 %v2097_v38 }
 0x2f3   : > { %1805 = vmatmul.f32.gmra.mxu1 %v5621_v37 }
 0x2f4   : > { %2221 = vmatmul.f32.gmra.mxu3 %v2096_v10  ;;  %v2285_v10 = vld [vmem:[#allocation2 + $0x52] sm:$0xff] }
 0x2f5   : > { %v5619_v1 = vpop.f32.mrf.mxu0 }
 0x2f7   : > { %2022 = vmatmul.f32.gmra.mxu2 %v5367_v32  ;;  %v5660_v0 = vpop.f32.mrf.mxu3 }
 0x2f8   : > { %1591 = vmatmul.f32.gmra.mxu0 %v2098_v16 }
 0x2fb   : > { %1808 = vmatmul.f32.gmra.mxu1 %v5627_v6 }
 0x2fc   : > { %2224 = vmatmul.f32.gmra.mxu3 %v2097_v38  ;;  %v2286_v38 = vld [vmem:[#allocation2 + $0x62] sm:$0xff] }
 0x2fd   : > { %v5625_v25 = vpop.f32.mrf.mxu0 }
 0x2ff   : > { %2025 = vmatmul.f32.gmra.mxu2 %v5367_v32 }
 0x300   : > { %1594 = vmatmul.f32.gmra.mxu0 %v2099_v9 }
 0x303   : > { %1811 = vmatmul.f32.gmra.mxu1 %v5633_v56 }
 0x304   : > { %2227 = vmatmul.f32.gmra.mxu3 %v2098_v16  ;;  %v5656_v16 = vpop.f32.mrf.mxu2 }
 0x305   : > { %v5631_v41 = vpop.f32.mrf.mxu0 }
 0x307   : > { %2028 = vmatmul.f32.gmra.mxu2 %v5367_v32  ;;  %v2283_v32 = vld [vmem:[#allocation2 + $0x3a] sm:$0xff] }
 0x308   : > { %1597 = vmatmul.f32.gmra.mxu0 %v2100_v45 }
 0x30b   : > { %1814 = vmatmul.f32.gmra.mxu1 %v5639_v43 }
 0x30c   : > { %2230 = vmatmul.f32.gmra.mxu3 %v2099_v9  ;;  %v5666_v50 = vpop.f32.mrf.mxu2 }
 0x30d   : > { %v5637_v42 = vpop.f32.mrf.mxu0 }
 0x30e   : > { %7044 = vst [vmem:[#allocation104_spill] sm:$0xff] %v5637_v42  ;;  %v2981_v42 = vld [vmem:[#allocation6 + $0x130] sm:$0xff] }
 0x310   : > { %1600 = vmatmul.f32.gmra.mxu0 %v2101_v13 }
 0x314   : > { %2233 = vmatmul.f32.gmra.mxu3 %v2100_v45  ;;  %v5674_v28 = vpop.f32.mrf.mxu2 }
 0x315   : > { %v5642_v23 = vpop.f32.mrf.mxu0 }
 0x316   : > { %7046 = vst [vmem:[#allocation106_spill] sm:$0xff] %v5642_v23 }
 0x318   : > { %2351 = vmatmul.f32.vlgmr.msrb.gmra.mxu0 %v2282_v31  ;;  %v2655_v31 = vld [vmem:[#allocation6 + $0x20] sm:$0xff] }
 0x319   : > { %2840 = vmatpush.msra.mxu2 %v2655_v31  ;;  %v2291_v31 = vld [vmem:[#allocation2 + $0x9a] sm:$0xff] }
 0x31b   : > { %2841 = vmatpush.msra.mxu2 %v2654_v11  ;;  %v2653_v11 = vld [vmem:[#allocation6 + $0x10] sm:$0xff] }
 0x31c   : > { %2236 = vmatmul.f32.gmra.mxu3 %v2101_v13  ;;  %v2288_v13 = vld [vmem:[#allocation2 + $0x7a] sm:$0xff] }
 0x31d   : > { %v5644_v20 = vpop.f32.mrf.mxu0  ;;  %2842 = vmatpush.msra.mxu2 %v2653_v11 }
 0x31e   : > { %7047 = vst [vmem:[#allocation107_spill] sm:$0xff] %v5644_v20  ;;  %v2701_v20 = vld [vmem:[#allocation6 + $0x88] sm:$0xff] }
 0x320   : > { %2354 = vmatmul.f32.gmra.mxu0 %v2283_v32  ;;  %v5668_v32 = vpop.f32.mrf.mxu3 }
 0x324   : > { %2239 = vmatmul.f32.gmra.mxu3 %v2102_v62  ;;  %v2289_v62 = vld [vmem:[#allocation2 + $0x82] sm:$0xff] }
 0x325   : > { %v5646_v22 = vpop.f32.mrf.mxu0 }
 0x326   : > { %7048 = vst [vmem:[#allocation108_spill] sm:$0xff] %v5646_v22  ;;  %v2295_v22 = vld [vmem:[#allocation2 + $0xca] sm:$0xff] }
 0x328   : > { %2357 = vmatmul.f32.gmra.mxu0 %v2284_v34  ;;  %v5672_v34 = vpop.f32.mrf.mxu1 }
 0x32c   : > { %2242 = vmatmul.f32.gmra.mxu3 %v2103_v30  ;;  %v5676_v30 = vpop.f32.mrf.mxu3 }
 0x32d   : > { %v5648_v63 = vpop.f32.mrf.mxu0 }
 0x32e   : > { %7049 = vst [vmem:[#allocation109_spill] sm:$0xff] %v5648_v63 }
 0x330   : > { %2360 = vmatmul.f32.gmra.mxu0 %v2285_v10  ;;  %v5680_v52 = vpop.f32.mrf.mxu1 }
 0x334   : > { %v5686_v5 = vpop.f32.mrf.mxu3 }
 0x335   : > { %v5652_v36 = vpop.f32.mrf.mxu0 }
 0x336   : > { %7050 = vst [vmem:[#allocation110_spill] sm:$0xff] %v5652_v36  ;;  %v2294_v36 = vld [vmem:[#allocation2 + $0xc2] sm:$0xff] }
 0x338   : > { %2363 = vmatmul.f32.gmra.mxu0 %v2286_v38  ;;  %v2290_v38 = vld [vmem:[#allocation2 + $0x92] sm:$0xff]  ;;  %v5688_v49 = vpop.f32.mrf.mxu1 }
 0x33d   : > { %v5658_v9 = vpop.f32.mrf.mxu0 }
 0x33e   : > { %7051 = vst [vmem:[#allocation111_spill] sm:$0xff] %v5658_v9 }
 0x340   : > { %2366 = vmatmul.f32.gmra.mxu0 %v2287_v21  ;;  %v5682_v21 = vpop.f32.mrf.mxu2 }
 0x345   : > { %v5664_v45 = vpop.f32.mrf.mxu0 }
 0x346   : > { %7052 = vst [vmem:[#allocation112_spill] sm:$0xff] %v5664_v45  ;;  %v2702_v45 = vld [vmem:[#allocation6 + $0x90] sm:$0xff] }
 0x348   : > { %2369 = vmatmul.f32.gmra.mxu0 %v2288_v13  ;;  %v5690_v18 = vpop.f32.mrf.mxu2 }
 0x34d   : > { %v5670_v55 = vpop.f32.mrf.mxu0 }
 0x34e   : > { %7053 = vst [vmem:[#allocation113_spill] sm:$0xff] %v5670_v55  ;;  %v2293_v55 = vld [vmem:[#allocation2 + $0xb2] sm:$0xff] }
 0x350   : > { %2372 = vmatmul.f32.gmra.mxu0 %v2289_v62  ;;  %v2703_v62 = vld [vmem:[#allocation6 + $0x98] sm:$0xff] }
 0x351   : > { %2728 = vmatpush.msra.mxu1 %v2703_v62  ;;  %v2990_v62 = vld [vmem:[#allocation6 + $0x178] sm:$0xff] }
 0x352   : > { %2991 = vmatpush.msrb.mxu3 %v2990_v62  ;;  %v2652_v62 = vld [vmem:[#allocation6 + $0x8] sm:$0xff] }
 0x353   : > { %2729 = vmatpush.msra.mxu1 %v2702_v45  ;;  %v2989_v45 = vld [vmem:[#allocation6 + $0x170] sm:$0xff]  ;;  %2843 = vmatpush.msra.mxu2 %v2652_v62 }
 0x354   : > { %2992 = vmatpush.msrb.mxu3 %v2989_v45  ;;  %v2297_v62 = vld [vmem:[#allocation2 + $0xe2] sm:$0xff] }
 0x355   : > { %v5678_v10 = vpop.f32.mrf.mxu0  ;;  %2730 = vmatpush.msra.mxu1 %v2701_v20  ;;  %v2986_v20 = vld [vmem:[#allocation6 + $0x158] sm:$0xff] }
 0x356   : > { %7054 = vst [vmem:[#allocation114_spill] sm:$0xff] %v5678_v10  ;;  %v5696_v10 = vpop.f32.mrf.mxu1 }
 0x358   : > { %2375 = vmatmul.f32.gmra.mxu0 %v2290_v38  ;;  %v5694_v38 = vpop.f32.mrf.mxu3 }
 0x35d   : > { %v5684_v13 = vpop.f32.mrf.mxu0 }
 0x35e   : > { %7055 = vst [vmem:[#allocation115_spill] sm:$0xff] %v5684_v13 }
 0x360   : > { %2378 = vmatmul.f32.gmra.mxu0 %v2291_v31  ;;  %v5700_v31 = vpop.f32.mrf.mxu2  ;;  %v5702_v9 = vpop.f32.mrf.mxu3 }
 0x361   : > { %7058 = vst [vmem:[#allocation118_spill] sm:$0xff] %v5700_v31  ;;  %v2980_v31 = vld [vmem:[#allocation6 + $0x128] sm:$0xff] }
 0x365   : > { %v5692_v27 = vpop.f32.mrf.mxu0 }
 0x366   : > { %7056 = vst [vmem:[#allocation116_spill] sm:$0xff] %v5692_v27 }
 0x368   : > { %2381 = vmatmul.f32.gmra.mxu0 %v2292_v12  ;;  %v5706_v12 = vpop.f32.mrf.mxu1  ;;  %v5708_v11 = vpop.f32.mrf.mxu2 }
 0x369   : > { %7060 = vst [vmem:[#allocation120_spill] sm:$0xff] %v5706_v12  ;;  %v5710_v63 = vpop.f32.mrf.mxu3 }
 0x36a   : > { %7061 = vst [vmem:[#allocation121_spill] sm:$0xff] %v5708_v11 }
 0x36b   : > { %7062 = vst [vmem:[#allocation122_spill] sm:$0xff] %v5710_v63  ;;  %v2988_v63 = vld [vmem:[#allocation6 + $0x168] sm:$0xff] }
 0x36c   : > { %2993 = vmatpush.msrb.mxu3 %v2988_v63  ;;  %v2983_v63 = vld [vmem:[#allocation6 + $0x140] sm:$0xff] }
 0x36d   : > { %v5698_v13 = vpop.f32.mrf.mxu0 }
 0x36e   : > { %7057 = vst [vmem:[#allocation117_spill] sm:$0xff] %v5698_v13 }
 0x370   : > { %2384 = vmatmul.f32.gmra.mxu0 %v2293_v55  ;;  %v5714_v55 = vpop.f32.mrf.mxu1 }
 0x371   : > { %7064 = vst [vmem:[#allocation124_spill] sm:$0xff] %v5714_v55  ;;  %v5720_v11 = vpop.f32.mrf.mxu3 }
 0x372   : > { %7067 = vst [vmem:[#allocation127_spill] sm:$0xff] %v5720_v11  ;;  %v2700_v11 = vld [vmem:[#allocation6 + $0x80] sm:$0xff] }
 0x373   : > { %2731 = vmatpush.msra.mxu1 %v2700_v11 }
 0x375   : > { %v5704_v27 = vpop.f32.mrf.mxu0 }
 0x376   : > { %7059 = vst [vmem:[#allocation119_spill] sm:$0xff] %v5704_v27  ;;  %v5716_v27 = vpop.f32.mrf.mxu2 }
 0x377   : > { %7065 = vst [vmem:[#allocation125_spill] sm:$0xff] %v5716_v27  ;;  %v2985_v27 = vld [vmem:[#allocation6 + $0x150] sm:$0xff] }
 0x378   : > { %2387 = vmatmul.f32.gmra.mxu0 %v2294_v36  ;;  %v2296_v36 = vld [vmem:[#allocation2 + $0xda] sm:$0xff]  ;;  %v5722_v43 = vpop.f32.mrf.mxu1 }
 0x379   : > { %7068 = vst [vmem:[#allocation128_spill] sm:$0xff] %v5722_v43  ;;  %v5728_v45 = vpop.f32.mrf.mxu3  ;;  %v4653_v43 = vld [vmem:[#allocation2] sm:$0xff] }
 0x37a   : > { %7071 = vst [vmem:[#allocation131_spill] sm:$0xff] %v5728_v45  ;;  %v2982_v45 = vld [vmem:[#allocation6 + $0x138] sm:$0xff] }
 0x37d   : > { %v5712_v13 = vpop.f32.mrf.mxu0 }
 0x37e   : > { %7063 = vst [vmem:[#allocation123_spill] sm:$0xff] %v5712_v13  ;;  %v2987_v13 = vld [vmem:[#allocation6 + $0x160] sm:$0xff] }
 0x37f   : > { %2994 = vmatpush.msrb.mxu3 %v2987_v13 }
 0x380   : > { %2390 = vmatmul.f32.gmra.mxu0 %v2295_v22  ;;  %v5724_v22 = vpop.f32.mrf.mxu2  ;;  %v5730_v13 = vpop.f32.mrf.mxu1 }
 0x381   : > { %7069 = vst [vmem:[#allocation129_spill] sm:$0xff] %v5724_v22  ;;  %2995 = vmatpush.msrb.mxu3 %v2986_v20  ;;  %v2298_v22 = vld [vmem:[#allocation2 + $0xf2] sm:$0xff]  ;;  %v5741_v12 = vpop.f32.mrf.mxu3 }
 0x382   : > { %7072 = vst [vmem:[#allocation132_spill] sm:$0xff] %v5730_v13 }
 0x383   : > { %2996 = vmatpush.msrb.mxu3 %v2985_v27  ;;  %v3185_v27 = vld [vmem:[#allocation6 + $0x1f8] sm:$0xff] }
 0x384   : > { %3186 = vmatpush.msrb.mxu1 %v3185_v27 }
 0x385   : > { %v5718_v23 = vpop.f32.mrf.mxu0 }
 0x386   : > { %7066 = vst [vmem:[#allocation126_spill] sm:$0xff] %v5718_v23  ;;  %v2651_v23 = vld [vmem:[#allocation6] sm:$0xff] }
 0x387   : > { %2844 = vmatpush.msra.mxu2 %v2651_v23 }
 0x388   : > { %2393 = vmatmul.f32.gmra.mxu0 %v2296_v36  ;;  %v2984_v36 = vld [vmem:[#allocation6 + $0x148] sm:$0xff]  ;;  %2845 = vmatmul.f32.vlgmr.msra.gmra.mxu2 %v4653_v43  ;;  %v5738_v11 = vpop.f32.mrf.mxu2  ;;  %v5743_v27 = vpop.f32.mrf.mxu1 }
 0x389   : > { %2997 = vmatpush.msrb.mxu3 %v2984_v36  ;;  %7073 = vst [vmem:[#allocation133_spill] sm:$0xff] %v5738_v11  ;;  %v3378_v36 = vld [vmem:[#allocation6 + $0x270] sm:$0xff]  ;;  %v2978_v11 = vld [vmem:[#allocation6 + $0x118] sm:$0xff] }
 0x38a   : > { %7074 = vst [vmem:[#allocation134_spill] sm:$0xff] %v5743_v27  ;;  %v2300_v27 = vld [vmem:[#allocation2 + $0x10a] sm:$0xff] }
 0x38b   : > { %2998 = vmatpush.msrb.mxu3 %v2983_v63 }
 0x38d   : > { %v5726_v55 = vpop.f32.mrf.mxu0  ;;  %2999 = vmatpush.msrb.mxu3 %v2982_v45  ;;  %v2977_v45 = vld [vmem:[#allocation6 + $0x110] sm:$0xff] }
 0x38e   : > { %7070 = vst [vmem:[#allocation130_spill] sm:$0xff] %v5726_v55  ;;  %v5735_v55 = vld [vmem:[%s6906_s4] ss:$0 sm:$0xff] }
 0x38f   : > { %3000 = vmatpush.msrb.mxu3 %v2981_v42 }
 0x390   : > { %2396 = vmatmul.f32.gmra.mxu0 %v2297_v62  ;;  %v3379_v62 = vld [vmem:[#allocation6 + $0x278] sm:$0xff]  ;;  %2848 = vmatmul.f32.gmra.mxu2 %v4653_v43  ;;  %v5747_v42 = vpop.f32.mrf.mxu2 }
 0x391   : > { %3380 = vmatpush.msrb.mxu2 %v3379_v62  ;;  %v2979_v62 = vld [vmem:[#allocation6 + $0x120] sm:$0xff]  ;;  %3001 = vmatpush.msrb.mxu3 %v2980_v31  ;;  %7075 = vst [vmem:[#allocation135_spill] sm:$0xff] %v5747_v42 }
 0x392   : > { %v2975_v31 = vld [vmem:[#allocation6 + $0x100] sm:$0xff] }
 0x393   : > { %3381 = vmatpush.msrb.mxu2 %v3378_v36  ;;  %3002 = vmatpush.msrb.mxu3 %v2979_v62  ;;  %v5749_v36 = vpop.f32.mrf.mxu3  ;;  %v5752_v62 = vpop.f32.mrf.mxu1 }
 0x394   : > { %7076 = vst [vmem:[#allocation136_spill] sm:$0xff] %v5752_v62 }
 0x395   : > { %v2352_v20 = vpop.f32.mrf.mxu0  ;;  %3003 = vmatpush.msrb.mxu3 %v2978_v11 }
 0x396   : > { %v2460_v23 = vadd.f32 %v2352_v20, %v5522_v61  ;;  %v3184_v61 = vld [vmem:[#allocation6 + $0x1f0] sm:$0xff] }
 0x397   : > { %v2299_v20 = vld [vmem:[#allocation2 + $0xfa] sm:$0xff]  ;;  %3187 = vmatpush.msrb.mxu1 %v3184_v61  ;;  %3004 = vmatpush.msrb.mxu3 %v2977_v45 }
 0x398   : > { %v2500_v13 = vadd.f32 %v5735_v55, %v2460_v23  ;;  %2399 = vmatmul.f32.gmra.mxu0 %v2298_v22  ;;  %v2976_v23 = vld [vmem:[#allocation6 + $0x108] sm:$0xff]  ;;  %v5755_v45 = vpop.f32.mrf.mxu2 }
 0x399   : > { %3005 = vmatpush.msrb.mxu3 %v2976_v23  ;;  %7077 = vst [vmem:[#allocation137_spill] sm:$0xff] %v5755_v45  ;;  %v2301_v23 = vld [vmem:[#allocation2 + $0x112] sm:$0xff] }
 0x39a   : > { %2572 = vst [vmem:[#allocation3 + $0x1] sm:$0xff] %v2500_v13 }
 0x39b   : > { %2612 = vst [vmem:[#allocation3] sm:$0xff] %v4653_v43  ;;  %3006 = vmatpush.msrb.mxu3 %v2975_v31  ;;  %v5761_v62 = vpop.f32.mrf.mxu1 }
 0x39d   : > { %v2355_v63 = vpop.f32.mrf.mxu0 }
 0x39e   : > { %v2461_v22 = vadd.f32 %v2355_v63, %v5531_v8 }
 0x3a0   : > { %v2501_v13 = vadd.f32 %v5735_v55, %v2461_v22  ;;  %2402 = vmatmul.f32.gmra.mxu0 %v2299_v20  ;;  %v3377_v22 = vld [vmem:[#allocation6 + $0x268] sm:$0xff] }
 0x3a1   : > { %3382 = vmatpush.msrb.mxu2 %v3377_v22  ;;  %v2302_v22 = vld [vmem:[#allocation2 + $0x122] sm:$0xff] }
 0x3a2   : > { %2573 = vst [vmem:[#allocation3 + $0x9] sm:$0xff] %v2501_v13 }
 0x3a3   : > { %2613 = vst [vmem:[#allocation3 + $0x8] sm:$0xff] %v4653_v43 }
 0x3a4   : > { %2614 = vst [vmem:[#allocation3 + $0x10] sm:$0x3] %v4653_v43  ;;  %v3183_v43 = vld [vmem:[#allocation6 + $0x1e8] sm:$0xff] }
 0x3a5   : > { %v2358_v61 = vpop.f32.mrf.mxu0  ;;  %3188 = vmatpush.msrb.mxu1 %v3183_v43 }
 0x3a6   : > { %v2462_v8 = vadd.f32 %v2358_v61, %v5540_v40  ;;  %v5757_v40 = vpop.f32.mrf.mxu3 }
 0x3a8   : > { %v2502_v11 = vadd.f32 %v5735_v55, %v2462_v8  ;;  %2405 = vmatmul.f32.gmra.mxu0 %v2300_v27 }
 0x3aa   : > { %2574 = vst [vmem:[#allocation3 + $0x19] sm:$0xff] %v2502_v11  ;;  %v2667_v63 = vld [vmem:[#allocation3 + $0x1] sm:$0xff] }
 0x3ab   : > { %v2942_v20 = vld [vmem:[#allocation3 + $0x2] sm:$0xff]  ;;  %2732 = vmatmul.f32.vlgmr.msra.gmra.mxu1 %v2667_v63  ;;  %v2943_v8 = vld [vmem:[#allocation3 + $0xa] sm:$0xff]  ;;  %v5763_v63 = vpop.f32.mrf.mxu2 }
 0x3ac   : > { %3007 = vmatmul.f32.vlgmr.msrb.gmra.mxu3 %v2942_v20  ;;  %v2668_v27 = vld [vmem:[#allocation3 + $0x9] sm:$0xff]  ;;  %7078 = vst [vmem:[#allocation138_spill] sm:$0xff] %v5763_v63 }
 0x3ad   : > { %v2361_v13 = vpop.f32.mrf.mxu0  ;;  %v2303_v63 = vld [vmem:[#allocation2 + $0x12a] sm:$0xff] }
 0x3ae   : > { %v2463_v31 = vadd.f32 %v2361_v13, %v5549_v19  ;;  %v5766_v45 = vpop.f32.mrf.mxu3 }
 0x3b0   : > { %v2503_v61 = vadd.f32 %v5735_v55, %v2463_v31  ;;  %2408 = vmatmul.f32.gmra.mxu0 %v2301_v23  ;;  %v3376_v31 = vld [vmem:[#allocation6 + $0x260] sm:$0xff] }
 0x3b1   : > { %v2621_v42 = vld [vmem:[#allocation3 + $0x18] sm:$0xff]  ;;  %3383 = vmatpush.msrb.mxu2 %v3376_v31 }
 0x3b2   : > { %2575 = vst [vmem:[#allocation3 + $0x21] sm:$0xff] %v2503_v61  ;;  %2851 = vmatmul.f32.gmra.mxu2 %v2621_v42  ;;  %v3182_v42 = vld [vmem:[#allocation6 + $0x1e0] sm:$0xff]  ;;  %v2304_v31 = vld [vmem:[#allocation2 + $0x13a] sm:$0xff] }
 0x3b3   : > { %2735 = vmatmul.f32.gmra.mxu1 %v2668_v27  ;;  %v5769_v27 = vpop.f32.mrf.mxu1 }
 0x3b4   : > { %3010 = vmatmul.f32.gmra.mxu3 %v2943_v8  ;;  %3189 = vmatpush.msrb.mxu1 %v3182_v42 }
 0x3b5   : > { %v2364_v20 = vpop.f32.mrf.mxu0 }
 0x3b6   : > { %v2464_v43 = vadd.f32 %v2364_v20, %v5558_v7  ;;  %v5772_v20 = vpop.f32.mrf.mxu2 }
 0x3b7   : > { %7079 = vst [vmem:[#allocation139_spill] sm:$0xff] %v5772_v20 }
 0x3b8   : > { %v2504_v19 = vadd.f32 %v5735_v55, %v2464_v43  ;;  %2411 = vmatmul.f32.gmra.mxu0 %v2302_v22 }
 0x3b9   : > { %v2622_v13 = vld [vmem:[#allocation3 + $0x20] sm:$0xff] }
 0x3ba   : > { %v2944_v23 = vld [vmem:[#allocation3 + $0x1a] sm:$0xff]  ;;  %2576 = vst [vmem:[#allocation3 + $0x31] sm:$0xff] %v2504_v19  ;;  %2854 = vmatmul.f32.gmra.mxu2 %v2622_v13  ;;  %v5777_v13 = vpop.f32.mrf.mxu3 }
 0x3bb   : > { %2738 = vmatmul.f32.gmra.mxu1 %v2502_v11  ;;  %7080 = vst [vmem:[#allocation140_spill] sm:$0xff] %v5777_v13  ;;  %v2945_v11 = vld [vmem:[#allocation3 + $0x22] sm:$0xff]  ;;  %v5780_v42 = vpop.f32.mrf.mxu1 }
 0x3bc   : > { %3013 = vmatmul.f32.gmra.mxu3 %v2944_v23  ;;  %7081 = vst [vmem:[#allocation141_spill] sm:$0xff] %v5780_v42  ;;  %v3375_v13 = vld [vmem:[#allocation6 + $0x258] sm:$0xff] }
 0x3bd   : > { %v2367_v8 = vpop.f32.mrf.mxu0  ;;  %3384 = vmatpush.msrb.mxu2 %v3375_v13 }
 0x3be   : > { %v2465_v7 = vadd.f32 %v2367_v8, %v5569_v54 }
 0x3c0   : > { %v2505_v22 = vadd.f32 %v5735_v55, %v2465_v7  ;;  %2414 = vmatmul.f32.gmra.mxu0 %v2303_v63  ;;  %v5784_v63 = vpop.f32.mrf.mxu2 }
 0x3c1   : > { %v5775_v43 = vld [vmem:[#allocation3 + $0x30] sm:$0xff]  ;;  %7082 = vst [vmem:[#allocation142_spill] sm:$0xff] %v5784_v63 }
 0x3c2   : > { %2577 = vst [vmem:[#allocation3 + $0x39] sm:$0xff] %v2505_v22  ;;  %2857 = vmatmul.f32.gmra.mxu2 %v5775_v43 }
 0x3c3   : > { %2741 = vmatmul.f32.gmra.mxu1 %v2503_v61  ;;  %v3181_v61 = vld [vmem:[#allocation6 + $0x1d8] sm:$0xff] }
 0x3c4   : > { %3016 = vmatmul.f32.gmra.mxu3 %v2945_v11  ;;  %v5789_v11 = vpop.f32.mrf.mxu3  ;;  %3190 = vmatpush.msrb.mxu1 %v3181_v61 }
 0x3c5   : > { %v2370_v23 = vpop.f32.mrf.mxu0  ;;  %7083 = vst [vmem:[#allocation143_spill] sm:$0xff] %v5789_v11 }
 0x3c6   : > { %v2466_v54 = vadd.f32 %v2370_v23, %v5579_v24 }
 0x3c8   : > { %v2506_v8 = vadd.f32 %v5735_v55, %v2466_v54  ;;  %2417 = vmatmul.f32.gmra.mxu0 %v2304_v31  ;;  %v5792_v31 = vpop.f32.mrf.mxu1 }
 0x3c9   : > { %v5786_v7 = vld [vmem:[#allocation3 + $0x38] sm:$0xff]  ;;  %7084 = vst [vmem:[#allocation144_spill] sm:$0xff] %v5792_v31 }
 0x3ca   : > { %v2946_v20 = vld [vmem:[#allocation3 + $0x32] sm:$0xff]  ;;  %2578 = vst [vmem:[#allocation3 + $0x49] sm:$0xff] %v2506_v8  ;;  %2860 = vmatmul.f32.gmra.mxu2 %v5786_v7 }
 0x3cb   : > { %2744 = vmatmul.f32.gmra.mxu1 %v2504_v19  ;;  %v2947_v19 = vld [vmem:[#allocation3 + $0x3a] sm:$0xff] }
 0x3cc   : > { %3019 = vmatmul.f32.gmra.mxu3 %v2946_v20  ;;  %v5799_v20 = vpop.f32.mrf.mxu2  ;;  %v5801_v61 = vpop.f32.mrf.mxu3 }
 0x3cd   : > { %v2373_v24 = vpop.f32.mrf.mxu0  ;;  %7085 = vst [vmem:[#allocation145_spill] sm:$0xff] %v5799_v20  ;;  %v3374_v20 = vld [vmem:[#allocation6 + $0x250] sm:$0xff] }
 0x3ce   : > { %v2467_v23 = vadd.f32 %v2373_v24, %v5586_v14  ;;  %7086 = vst [vmem:[#allocation146_spill] sm:$0xff] %v5801_v61  ;;  %3385 = vmatpush.msrb.mxu2 %v3374_v20 }
 0x3d0   : > { %v2507_v54 = vadd.f32 %v5735_v55, %v2467_v23  ;;  %2420 = vmatmul.f32.gmra.mxu0 %v5563_v17  ;;  %v5808_v31 = vpop.f32.mrf.mxu1 }
 0x3d1   : > { %v5796_v63 = vld [vmem:[#allocation3 + $0x48] sm:$0xff]  ;;  %7087 = vst [vmem:[#allocation147_spill] sm:$0xff] %v5808_v31 }
 0x3d2   : > { %2579 = vst [vmem:[#allocation3 + $0x51] sm:$0xff] %v2507_v54  ;;  %2863 = vmatmul.f32.gmra.mxu2 %v5796_v63 }
 0x3d3   : > { %2747 = vmatmul.f32.gmra.mxu1 %v2505_v22  ;;  %v3180_v22 = vld [vmem:[#allocation6 + $0x1d0] sm:$0xff] }
 0x3d4   : > { %3022 = vmatmul.f32.gmra.mxu3 %v2947_v19  ;;  %3191 = vmatpush.msrb.mxu1 %v3180_v22  ;;  %v5811_v19 = vpop.f32.mrf.mxu2 }
 0x3d5   : > { %v2376_v13 = vpop.f32.mrf.mxu0  ;;  %7088 = vst [vmem:[#allocation148_spill] sm:$0xff] %v5811_v19  ;;  %v7094_v19 = vld [vmem:[#allocation71_spill] sm:$0xff] }
 0x3d6   : > { %v2468_v14 = vadd.f32 %v2376_v13, %v5594_v2 }
 0x3d8   : > { %v2508_v24 = vadd.f32 %v5735_v55, %v2468_v14  ;;  %2423 = vmatmul.f32.gmra.mxu0 %v5573_v58  ;;  %v926_v58 = vadd.f32 %v5394_v35, %v5162_v15  ;;  %v5816_v14 = vpop.f32.mrf.mxu3  ;;  %v7092_v15 = vld [vmem:[#allocation49_spill] sm:$0xff] }
 0x3d9   : > { %v5806_v17 = vld [vmem:[#allocation3 + $0x50] sm:$0xff]  ;;  %7089 = vst [vmem:[#allocation149_spill] sm:$0xff] %v5816_v14 }
 0x3da   : > { %v2948_v23 = vld [vmem:[#allocation3 + $0x4a] sm:$0xff]  ;;  %2580 = vst [vmem:[#allocation3 + $0x61] sm:$0xff] %v2508_v24  ;;  %2866 = vmatmul.f32.gmra.mxu2 %v5806_v17  ;;  %v2949_v20 = vld [vmem:[#allocation3 + $0x52] sm:$0xff] }
 0x3db   : > { %2750 = vmatmul.f32.gmra.mxu1 %v2506_v8  ;;  %v7090_v8 = vld [vmem:[#allocation90_spill] sm:$0xff] }
 0x3dc   : > { %3025 = vmatmul.f32.gmra.mxu3 %v2948_v23  ;;  %v1187_v23 = vadd.f32 %v7090_v8, %v926_v58 }
 0x3dd   : > { %v2379_v2 = vpop.f32.mrf.mxu0 }
 0x3de   : > { %v2469_v13 = vadd.f32 %v2379_v2, %v5601_v60  ;;  %v5824_v60 = vpop.f32.mrf.mxu1  ;;  %v1402_v35 = vadd.f32 %v7092_v15, %v1187_v23 }
 0x3df   : > { %7091 = vst [vmem:[#allocation90_spill] sm:$0xff] %v5824_v60  ;;  %v7095_v60 = vld [vmem:[#allocation94_spill] sm:$0xff] }
 0x3e0   : > { %v2509_v31 = vadd.f32 %v5735_v55, %v2469_v13  ;;  %2426 = vmatmul.f32.gmra.mxu0 %v5583_v46  ;;  %v5828_v13 = vpop.f32.mrf.mxu2  ;;  %v7093_v46 = vld [vmem:[#allocation19_spill] sm:$0xff]  ;;  %v1616_v58 = vadd.f32 %v5589_v3, %v1402_v35  ;;  %v5838_v42 = vpop.f32.mrf.mxu3 }
 0x3e1   : > { %v5820_v61 = vld [vmem:[#allocation3 + $0x60] sm:$0xff]  ;;  %v929_v14 = vadd.f32 %v7094_v19, %v7093_v46  ;;  %v3179_v19 = vld [vmem:[#allocation6 + $0x1c8] sm:$0xff] }
 0x3e2   : > { %2581 = vst [vmem:[#allocation3 + $0x69] sm:$0xff] %v2509_v31  ;;  %2869 = vmatmul.f32.gmra.mxu2 %v5820_v61  ;;  %v1830_v3 = vadd.f32 %v5654_v48, %v1616_v58  ;;  %3192 = vmatpush.msrb.mxu1 %v3179_v19  ;;  %v7098_v35 = vld [vmem:[#allocation75_spill] sm:$0xff] }
 0x3e3   : > { %2753 = vmatmul.f32.gmra.mxu1 %v2507_v54  ;;  %v1188_v11 = vadd.f32 %v7095_v60, %v929_v14  ;;  %v7097_v60 = vld [vmem:[#allocation21_spill] sm:$0xff] }
 0x3e4   : > { %3028 = vmatmul.f32.gmra.mxu3 %v2949_v20  ;;  %v2044_v46 = vadd.f32 %v5650_v51, %v1830_v3 }
 0x3e5   : > { %v2382_v22 = vpop.f32.mrf.mxu0 }
 0x3e6   : > { %v2470_v2 = vadd.f32 %v2382_v22, %v5608_v47  ;;  %v3373_v47 = vld [vmem:[#allocation6 + $0x248] sm:$0xff]  ;;  %v5843_v15 = vpop.f32.mrf.mxu1  ;;  %v2258_v51 = vadd.f32 %v5660_v0, %v2044_v46  ;;  %v3372_v46 = vld [vmem:[#allocation6 + $0x240] sm:$0xff] }
 0x3e7   : > { %3386 = vmatpush.msrb.mxu2 %v3373_v47 }
 0x3e8   : > { %v2510_v8 = vadd.f32 %v5735_v55, %v2470_v2  ;;  %2429 = vmatmul.f32.gmra.mxu0 %v5591_v53  ;;  %v7096_v53 = vld [vmem:[#allocation52_spill] sm:$0xff]  ;;  %v932_v2 = vadd.f32 %v7098_v35, %v7097_v60  ;;  %v5852_v48 = vpop.f32.mrf.mxu2  ;;  %v5860_v19 = vpop.f32.mrf.mxu3 }
 0x3e9   : > { %v5835_v54 = vld [vmem:[#allocation3 + $0x68] sm:$0xff]  ;;  %v1403_v22 = vadd.f32 %v7096_v53, %v1188_v11  ;;  %3387 = vmatpush.msrb.mxu2 %v3372_v46 }
 0x3ea   : > { %v2950_v20 = vld [vmem:[#allocation3 + $0x62] sm:$0xff]  ;;  %2582 = vst [vmem:[#allocation3 + $0x79] sm:$0xff] %v2510_v8  ;;  %2872 = vmatmul.f32.gmra.mxu2 %v5835_v54 }
 0x3eb   : > { %2756 = vmatmul.f32.gmra.mxu1 %v2508_v24  ;;  %v1617_v24 = vadd.f32 %v5597_v39, %v1403_v22  ;;  %v7099_v11 = vld [vmem:[#allocation97_spill] sm:$0xff]  ;;  %v7101_v22 = vld [vmem:[#allocation23_spill] sm:$0xff] }
 0x3ec   : > { %3031 = vmatmul.f32.gmra.mxu3 %v2950_v20  ;;  %v1189_v47 = vadd.f32 %v7099_v11, %v932_v2 }
 0x3ed   : > { %v2385_v23 = vpop.f32.mrf.mxu0  ;;  %v1831_v39 = vadd.f32 %v5662_v26, %v1617_v24  ;;  %v5874_v24 = vld [vmem:[#allocation6 + $0x378] sm:$0xff] }
 0x3ee   : > { %v2471_v14 = vadd.f32 %v2385_v23, %v5615_v29  ;;  %v2951_v29 = vld [vmem:[#allocation3 + $0x6a] sm:$0xff]  ;;  %v5867_v11 = vpop.f32.mrf.mxu1  ;;  %3769 = vmatpush.msra.mxu0 %v5874_v24 }
 0x3ef   : > { %v2045_v35 = vadd.f32 %v5656_v16, %v1831_v39  ;;  %v5878_v16 = vld [vmem:[#allocation6 + $0x370] sm:$0xff] }
 0x3f0   : > { %v2511_v20 = vadd.f32 %v5735_v55, %v2471_v14  ;;  %2432 = vmatmul.f32.gmra.mxu0 %v5599_v59  ;;  %v7100_v59 = vld [vmem:[#allocation55_spill] sm:$0xff]  ;;  %v7102_v14 = vld [vmem:[#allocation78_spill] sm:$0xff] }
 0x3f1   : > { %v5854_v58 = vld [vmem:[#allocation3 + $0x78] sm:$0xff]  ;;  %v1404_v23 = vadd.f32 %v7100_v59, %v1189_v47  ;;  %v935_v60 = vadd.f32 %v7102_v14, %v7101_v22  ;;  %v5876_v47 = vpop.f32.mrf.mxu2  ;;  %v7104_v59 = vld [vmem:[#allocation58_spill] sm:$0xff]  ;;  %3770 = vmatpush.msra.mxu0 %v5878_v16  ;;  %v7105_v22 = vld [vmem:[#allocation25_spill] sm:$0xff] }
 0x3f2   : > { %2583 = vst [vmem:[#allocation3 + $0x81] sm:$0xff] %v2511_v20  ;;  %2875 = vmatmul.f32.gmra.mxu2 %v5854_v58  ;;  %v7106_v14 = vld [vmem:[#allocation81_spill] sm:$0xff] }
 0x3f3   : > { %2759 = vmatmul.f32.gmra.mxu1 %v2509_v31  ;;  %v1618_v2 = vadd.f32 %v5604_v33, %v1404_v23  ;;  %v3178_v33 = vld [vmem:[#allocation6 + $0x1c0] sm:$0xff] }
 0x3f4   : > { %3034 = vmatmul.f32.gmra.mxu3 %v2951_v29  ;;  %v7103_v29 = vld [vmem:[#allocation38_spill] sm:$0xff]  ;;  %3193 = vmatpush.msrb.mxu1 %v3178_v33  ;;  %v5899_v33 = vld [vmem:[#allocation6 + $0x368] sm:$0xff] }
 0x3f5   : > { %v2388_v3 = vpop.f32.mrf.mxu0  ;;  %v1832_v39 = vadd.f32 %v5672_v34, %v1618_v2  ;;  %3771 = vmatpush.msra.mxu0 %v5899_v33 }
 0x3f6   : > { %v2472_v53 = vadd.f32 %v2388_v3, %v2258_v51  ;;  %v1190_v51 = vadd.f32 %v7103_v29, %v935_v60  ;;  %v5896_v2 = vpop.f32.mrf.mxu1  ;;  %v5901_v29 = vld [vmem:[#allocation6 + $0x360] sm:$0xff] }
 0x3f7   : > { %v2046_v60 = vadd.f32 %v5666_v50, %v1832_v39  ;;  %v7107_v50 = vld [vmem:[#allocation40_spill] sm:$0xff]  ;;  %3772 = vmatpush.msra.mxu0 %v5901_v29 }
 0x3f8   : > { %v2512_v31 = vadd.f32 %v5735_v55, %v2472_v53  ;;  %2435 = vmatmul.f32.gmra.mxu0 %v5606_v57  ;;  %v2259_v57 = vadd.f32 %v5668_v32, %v2045_v35  ;;  %v1405_v23 = vadd.f32 %v7104_v59, %v1190_v51  ;;  %v5885_v53 = vpop.f32.mrf.mxu3 }
 0x3f9   : > { %v5871_v0 = vld [vmem:[#allocation3 + $0x80] sm:$0xff]  ;;  %v2260_v51 = vadd.f32 %v5676_v30, %v2046_v60 }
 0x3fa   : > { %v2952_v26 = vld [vmem:[#allocation3 + $0x7a] sm:$0xff]  ;;  %2584 = vst [vmem:[#allocation3 + $0x91] sm:$0xff] %v2512_v31  ;;  %2878 = vmatmul.f32.gmra.mxu2 %v5871_v0  ;;  %v1619_v32 = vadd.f32 %v5611_v44, %v1405_v23  ;;  %v2953_v46 = vld [vmem:[#allocation3 + $0x82] sm:$0xff] }
 0x3fb   : > { %2762 = vmatmul.f32.gmra.mxu1 %v2510_v8 }
 0x3fc   : > { %3037 = vmatmul.f32.gmra.mxu3 %v2952_v26  ;;  %v938_v26 = vadd.f32 %v7106_v14, %v7105_v22  ;;  %v7111_v22 = vld [vmem:[#allocation84_spill] sm:$0xff] }
 0x3fd   : > { %v2391_v3 = vpop.f32.mrf.mxu0 }
 0x3fe   : > { %v2473_v8 = vadd.f32 %v2391_v3, %v2259_v57  ;;  %v1191_v44 = vadd.f32 %v7107_v50, %v938_v26  ;;  %v5907_v57 = vpop.f32.mrf.mxu2  ;;  %v7108_v3 = vld [vmem:[#allocation61_spill] sm:$0xff]  ;;  %v5926_v50 = vld [vmem:[#allocation6 + $0x350] sm:$0xff] }
 0x3ff   : > { %7112 = vst [vmem:[#allocation19_spill] sm:$0xff] %v5926_v50 }
 0x400   : > { %v2513_v34 = vadd.f32 %v5735_v55, %v2473_v8  ;;  %2438 = vmatmul.f32.gmra.mxu0 %v5613_v4  ;;  %v1833_v4 = vadd.f32 %v5680_v52, %v1619_v32  ;;  %v1406_v59 = vadd.f32 %v7108_v3, %v1191_v44  ;;  %v7110_v8 = vld [vmem:[#allocation27_spill] sm:$0xff]  ;;  %v5917_v52 = vpop.f32.mrf.mxu3  ;;  %v3177_v44 = vld [vmem:[#allocation6 + $0x1b8] sm:$0xff]  ;;  %v5935_v3 = vpop.f32.mrf.mxu1 }
 0x401   : > { %v5894_v35 = vld [vmem:[#allocation3 + $0x90] sm:$0xff]  ;;  %v941_v14 = vadd.f32 %v7111_v22, %v7110_v8  ;;  %3194 = vmatpush.msrb.mxu1 %v3177_v44 }
 0x402   : > { %2585 = vst [vmem:[#allocation3 + $0x99] sm:$0xff] %v2513_v34  ;;  %2881 = vmatmul.f32.gmra.mxu2 %v5894_v35  ;;  %v2047_v26 = vadd.f32 %v5674_v28, %v1833_v4  ;;  %v1620_v30 = vadd.f32 %v5619_v1, %v1406_v59  ;;  %v3371_v28 = vld [vmem:[#allocation6 + $0x238] sm:$0xff]  ;;  %v5930_v1 = vld [vmem:[#allocation6 + $0x348] sm:$0xff]  ;;  %v5940_v22 = vld [vmem:[#allocation6 + $0x340] sm:$0xff] }
 0x403   : > { %2765 = vmatmul.f32.gmra.mxu1 %v2511_v20  ;;  %v5911_v20 = vld [vmem:[#allocation6 + $0x358] sm:$0xff]  ;;  %7113 = vst [vmem:[#allocation71_spill] sm:$0xff] %v5930_v1  ;;  %3388 = vmatpush.msrb.mxu2 %v3371_v28 }
 0x404   : > { %3040 = vmatmul.f32.gmra.mxu3 %v2953_v46  ;;  %7109 = vst [vmem:[#allocation49_spill] sm:$0xff] %v5911_v20  ;;  %3773 = vmatpush.msra.mxu0 %v5911_v20  ;;  %v7164_v20 = vld [vmem:[#allocation107_spill] sm:$0xff] }
 0x405   : > { %v2394_v39 = vpop.f32.mrf.mxu0  ;;  %7116 = vst [vmem:[#allocation94_spill] sm:$0xff] %v5940_v22 }
 0x406   : > { %v2474_v23 = vadd.f32 %v2394_v39, %v2260_v51  ;;  %v7114_v51 = vld [vmem:[#allocation42_spill] sm:$0xff]  ;;  %v1834_v39 = vadd.f32 %v5688_v49, %v1620_v30  ;;  %3774 = vmatpush.msra.mxu0 %v5926_v50 }
 0x407   : > { %v1192_v4 = vadd.f32 %v7114_v51, %v941_v14  ;;  %v7118_v14 = vld [vmem:[#allocation29_spill] sm:$0xff] }
 0x408   : > { %v5920_v60 = vadd.f32 %v5735_v55, %v2474_v23  ;;  %2441 = vmatmul.f32.gmra.mxu0 %v5621_v37  ;;  %v2261_v37 = vadd.f32 %v5686_v5, %v2047_v26  ;;  %v7115_v23 = vld [vmem:[#allocation62_spill] sm:$0xff]  ;;  %v7119_v5 = vld [vmem:[#allocation88_spill] sm:$0xff]  ;;  %v2048_v49 = vadd.f32 %v5682_v21, %v1834_v39  ;;  %v5955_v51 = vld [vmem:[#allocation6 + $0x338] sm:$0xff] }
 0x409   : > { %v5923_v32 = vld [vmem:[#allocation3 + $0x98] sm:$0xff]  ;;  %v1407_v8 = vadd.f32 %v7115_v23, %v1192_v4  ;;  %3775 = vmatpush.msra.mxu0 %v5930_v1  ;;  %v944_v26 = vadd.f32 %v7119_v5, %v7118_v14  ;;  %7120 = vst [vmem:[#allocation21_spill] sm:$0xff] %v5955_v51  ;;  %v5957_v4 = vpop.f32.mrf.mxu3  ;;  %v5968_v14 = vpop.f32.mrf.mxu1 }
 0x40a   : > { %v2954_v46 = vld [vmem:[#allocation3 + $0x92] sm:$0xff]  ;;  %2586 = vst [vmem:[#allocation3 + $0xa9] sm:$0xff] %v5920_v60  ;;  %2884 = vmatmul.f32.gmra.mxu2 %v5923_v32  ;;  %v2955_v21 = vld [vmem:[#allocation3 + $0x9a] sm:$0xff] }
 0x40b   : > { %2768 = vmatmul.f32.gmra.mxu1 %v2512_v31  ;;  %v1621_v30 = vadd.f32 %v5625_v25, %v1407_v8  ;;  %3776 = vmatpush.msra.mxu0 %v5940_v22  ;;  %v5961_v25 = vld [vmem:[#allocation6 + $0x330] sm:$0xff]  ;;  %7124 = vst [vmem:[#allocation97_spill] sm:$0xff] %v5968_v14 }
 0x40c   : > { %3043 = vmatmul.f32.gmra.mxu3 %v2954_v46  ;;  %v5942_v46 = vpop.f32.mrf.mxu2  ;;  %7121 = vst [vmem:[#allocation75_spill] sm:$0xff] %v5961_v25  ;;  %v7123_v8 = vld [vmem:[#allocation64_spill] sm:$0xff] }
 0x40d   : > { %v2397_v59 = vpop.f32.mrf.mxu0  ;;  %7117 = vst [vmem:[#allocation52_spill] sm:$0xff] %v5942_v46  ;;  %3777 = vmatpush.msra.mxu0 %v5955_v51  ;;  %v7127_v22 = vld [vmem:[#allocation92_spill] sm:$0xff]  ;;  %v7163_v46 = vld [vmem:[#allocation125_spill] sm:$0xff] }
 0x40e   : > { %v2475_v31 = vadd.f32 %v2397_v59, %v2261_v37  ;;  %v7122_v37 = vld [vmem:[#allocation44_spill] sm:$0xff]  ;;  %v1835_v59 = vadd.f32 %v5696_v10, %v1621_v30 }
 0x40f   : > { %v1193_v39 = vadd.f32 %v7122_v37, %v944_v26  ;;  %3778 = vmatpush.msra.mxu0 %v5961_v25  ;;  %v7173_v14 = vld [vmem:[#allocation108_spill] sm:$0xff] }
 0x410   : > { %v5949_v28 = vadd.f32 %v5735_v55, %v2475_v31  ;;  %2444 = vmatmul.f32.gmra.mxu0 %v5627_v6  ;;  %v2262_v6 = vadd.f32 %v5694_v38, %v2048_v49  ;;  %v2049_v26 = vadd.f32 %v5690_v18, %v1835_v59  ;;  %v5988_v18 = vld [vmem:[#allocation6 + $0x318] sm:$0xff] }
 0x411   : > { %v5952_v44 = vld [vmem:[#allocation3 + $0xa8] sm:$0xff]  ;;  %v1408_v31 = vadd.f32 %v7123_v8, %v1193_v39  ;;  %v5984_v39 = vld [vmem:[#allocation6 + $0x320] sm:$0xff]  ;;  %7130 = vst [vmem:[#allocation38_spill] sm:$0xff] %v5988_v18  ;;  %v6004_v25 = vpop.f32.mrf.mxu1 }
 0x412   : > { %2587 = vst [vmem:[#allocation3 + $0xb1] sm:$0xff] %v5949_v28  ;;  %2887 = vmatmul.f32.gmra.mxu2 %v5952_v44  ;;  %v2263_v59 = vadd.f32 %v5702_v9, %v2049_v26  ;;  %v7138_v9 = vld [vmem:[#allocation118_spill] sm:$0xff] }
 0x413   : > { %2771 = vmatmul.f32.gmra.mxu1 %v2513_v34  ;;  %v5971_v34 = vld [vmem:[#allocation6 + $0x328] sm:$0xff]  ;;  %v1622_v38 = vadd.f32 %v5631_v41, %v1408_v31  ;;  %7129 = vst [vmem:[#allocation78_spill] sm:$0xff] %v5984_v39  ;;  %v3176_v41 = vld [vmem:[#allocation6 + $0x1b0] sm:$0xff]  ;;  %v5993_v31 = vpop.f32.mrf.mxu3 }
 0x414   : > { %3046 = vmatmul.f32.gmra.mxu3 %v2955_v21  ;;  %7125 = vst [vmem:[#allocation55_spill] sm:$0xff] %v5971_v34  ;;  %v7126_v21 = vld [vmem:[#allocation31_spill] sm:$0xff]  ;;  %v5979_v49 = vpop.f32.mrf.mxu2  ;;  %3779 = vmatpush.msra.mxu0 %v5971_v34 }
 0x415   : > { %v2400_v23 = vpop.f32.mrf.mxu0  ;;  %v947_v1 = vadd.f32 %v7127_v22, %v7126_v21  ;;  %7128 = vst [vmem:[#allocation23_spill] sm:$0xff] %v5979_v49  ;;  %v3370_v22 = vld [vmem:[#allocation6 + $0x230] sm:$0xff]  ;;  %3195 = vmatpush.msrb.mxu1 %v3176_v41  ;;  %v7134_v21 = vld [vmem:[#allocation66_spill] sm:$0xff] }
 0x416   : > { %v2476_v5 = vadd.f32 %v2400_v23, %v2262_v6  ;;  %v7132_v23 = vld [vmem:[#allocation120_spill] sm:$0xff]  ;;  %7133 = vst [vmem:[#allocation58_spill] sm:$0xff] %v5993_v31  ;;  %3780 = vmatpush.msra.mxu0 %v5984_v39  ;;  %3389 = vmatpush.msrb.mxu2 %v3370_v22  ;;  %v7141_v39 = vld [vmem:[#allocation105_spill] sm:$0xff] }
 0x417   : > { %v1836_v8 = vadd.f32 %v7132_v23, %v1622_v38  ;;  %v7136_v49 = vld [vmem:[#allocation32_spill] sm:$0xff]  ;;  %7140 = vst [vmem:[#allocation81_spill] sm:$0xff] %v6004_v25  ;;  %v7152_v31 = vld [vmem:[#allocation121_spill] sm:$0xff] }
 0x418   : > { %v2516_v10 = vadd.f32 %v5735_v55, %v2476_v5  ;;  %2447 = vmatmul.f32.gmra.mxu0 %v5633_v56  ;;  %v7131_v56 = vld [vmem:[#allocation47_spill] sm:$0xff]  ;;  %v7139_v38 = vld [vmem:[#allocation104_spill] sm:$0xff] }
 0x419   : > { %v5981_v30 = vld [vmem:[#allocation3 + $0xb0] sm:$0xff]  ;;  %v1194_v6 = vadd.f32 %v7131_v56, %v947_v1  ;;  %3781 = vmatpush.msra.mxu0 %v5988_v18  ;;  %v7137_v1 = vld [vmem:[#allocation96_spill] sm:$0xff]  ;;  %v2050_v26 = vadd.f32 %v7138_v9, %v1836_v8 }
 0x41a   : > { %v2956_v37 = vld [vmem:[#allocation3 + $0xaa] sm:$0xff]  ;;  %2588 = vst [vmem:[#allocation3 + $0xc1] sm:$0xff] %v2516_v10  ;;  %2890 = vmatmul.f32.gmra.mxu2 %v5981_v30  ;;  %v950_v56 = vadd.f32 %v7137_v1, %v7136_v49  ;;  %v2957_v49 = vld [vmem:[#allocation3 + $0xb2] sm:$0xff] }
 0x41b   : > { %2774 = vmatmul.f32.gmra.mxu1 %v5920_v60  ;;  %v1409_v34 = vadd.f32 %v7134_v21, %v1194_v6  ;;  %v7145_v8 = vld [vmem:[#allocation50_spill] sm:$0xff]  ;;  %v6024_v18 = vpop.f32.mrf.mxu3 }
 0x41c   : > { %3049 = vmatmul.f32.gmra.mxu3 %v2956_v37  ;;  %v5998_v37 = vld [vmem:[#allocation6 + $0x310] sm:$0xff]  ;;  %v6010_v6 = vpop.f32.mrf.mxu2  ;;  %7149 = vst [vmem:[#allocation84_spill] sm:$0xff] %v6024_v18 }
 0x41d   : > { %v2403_v5 = vpop.f32.mrf.mxu0  ;;  %7135 = vst [vmem:[#allocation25_spill] sm:$0xff] %v5998_v37  ;;  %v1623_v23 = vadd.f32 %v7139_v38, %v1409_v34  ;;  %3782 = vmatpush.msra.mxu0 %v5998_v37  ;;  %v6017_v34 = vld [vmem:[#allocation6 + $0x300] sm:$0xff] }
 0x41e   : > { %v2477_v60 = vadd.f32 %v2403_v5, %v2263_v59  ;;  %7142 = vst [vmem:[#allocation40_spill] sm:$0xff] %v6010_v6  ;;  %v6013_v59 = vld [vmem:[#allocation6 + $0x308] sm:$0xff]  ;;  %v1195_v5 = vadd.f32 %v7145_v8, %v950_v56  ;;  %v2316_v38 = vld [vmem:[#allocation2 + $0x1ca] sm:$0xff]  ;;  %v7148_v6 = vld [vmem:[#allocation68_spill] sm:$0xff] }
 0x41f   : > { %7143 = vst [vmem:[#allocation61_spill] sm:$0xff] %v6013_v59  ;;  %3783 = vmatpush.msra.mxu0 %v6013_v59  ;;  %v7153_v8 = vld [vmem:[#allocation106_spill] sm:$0xff] }
 0x420   : > { %v2517_v22 = vadd.f32 %v5735_v55, %v2477_v60  ;;  %2450 = vmatmul.f32.gmra.mxu0 %v7141_v39  ;;  %7144 = vst [vmem:[#allocation27_spill] sm:$0xff] %v6017_v34  ;;  %v7146_v39 = vld [vmem:[#allocation122_spill] sm:$0xff]  ;;  %v7147_v60 = vld [vmem:[#allocation124_spill] sm:$0xff]  ;;  %v1410_v37 = vadd.f32 %v7148_v6, %v1195_v5  ;;  %v3369_v5 = vld [vmem:[#allocation6 + $0x228] sm:$0xff] }
 0x421   : > { %v6008_v41 = vld [vmem:[#allocation3 + $0xc0] sm:$0xff]  ;;  %v2264_v21 = vadd.f32 %v7146_v39, %v2050_v26  ;;  %v1837_v1 = vadd.f32 %v7147_v60, %v1623_v23  ;;  %3784 = vmatpush.msra.mxu0 %v6017_v34  ;;  %3390 = vmatpush.msrb.mxu2 %v3369_v5 }
 0x422   : > { %2589 = vst [vmem:[#allocation3 + $0xc9] sm:$0xff] %v2517_v22  ;;  %2893 = vmatmul.f32.gmra.mxu2 %v6008_v41  ;;  %v1624_v26 = vadd.f32 %v7153_v8, %v1410_v37  ;;  %v2317_v8 = vld [vmem:[#allocation2 + $0x1d2] sm:$0xff] }
 0x423   : > { %2777 = vmatmul.f32.gmra.mxu1 %v5949_v28  ;;  %v7150_v28 = vld [vmem:[#allocation33_spill] sm:$0xff]  ;;  %v2051_v56 = vadd.f32 %v7152_v31, %v1837_v1  ;;  %v7157_v1 = vld [vmem:[#allocation127_spill] sm:$0xff] }
 0x424   : > { %3052 = vmatmul.f32.gmra.mxu3 %v2957_v49  ;;  %v7151_v49 = vld [vmem:[#allocation10_spill] sm:$0xff] }
 0x425   : > { %v2406_v9 = vpop.f32.mrf.mxu0  ;;  %v953_v25 = vadd.f32 %v7151_v49, %v7150_v28  ;;  %v7156_v28 = vld [vmem:[#allocation53_spill] sm:$0xff]  ;;  %v2265_v37 = vadd.f32 %v7157_v1, %v2051_v56  ;;  %v7158_v49 = vld [vmem:[#allocation128_spill] sm:$0xff] }
 0x426   : > { %v2478_v51 = vadd.f32 %v2406_v9, %v2264_v21  ;;  %v2849_v21 = vpop.f32.mrf.mxu2  ;;  %v3175_v9 = vld [vmem:[#allocation6 + $0x1a8] sm:$0xff]  ;;  %v7168_v1 = vld [vmem:[#allocation132_spill] sm:$0xff] }
 0x427   : > { %v1196_v31 = vadd.f32 %v7156_v28, %v953_v25  ;;  %3196 = vmatpush.msrb.mxu1 %v3175_v9  ;;  %v7166_v9 = vld [vmem:[#allocation56_spill] sm:$0xff] }
 0x428   : > { %v2518_v23 = vadd.f32 %v5735_v55, %v2478_v51  ;;  %2453 = vmatmul.f32.gmra.mxu0 %v2316_v38  ;;  %v6032_v39 = vpop.f32.mrf.mxu1  ;;  %v1838_v51 = vadd.f32 %v7158_v49, %v1624_v26 }
 0x429   : > { %7154 = vst [vmem:[#allocation42_spill] sm:$0xff] %v6032_v39  ;;  %v6034_v60 = vld [vmem:[#allocation3 + $0xc8] sm:$0xff]  ;;  %v7159_v39 = vld [vmem:[#allocation70_spill] sm:$0xff] }
 0x42a   : > { %7155 = vst [vmem:[#allocation62_spill] sm:$0xff] %v6034_v60  ;;  %v2958_v6 = vld [vmem:[#allocation3 + $0xc2] sm:$0xff]  ;;  %2896 = vmatmul.f32.gmra.mxu2 %v6034_v60  ;;  %v1411_v34 = vadd.f32 %v7159_v39, %v1196_v31  ;;  %v7161_v60 = vld [vmem:[#allocation34_spill] sm:$0xff]  ;;  %v2052_v50 = vadd.f32 %v7163_v46, %v1838_v51  ;;  %v7167_v31 = vld [vmem:[#allocation131_spill] sm:$0xff] }
 0x42b   : > { %2590 = vst [vmem:[#allocation3 + $0xd9] sm:$0xff] %v2518_v23  ;;  %2780 = vmatmul.f32.gmra.mxu1 %v2516_v10  ;;  %v7162_v10 = vld [vmem:[#allocation11_spill] sm:$0xff]  ;;  %v2959_v39 = vld [vmem:[#allocation3 + $0xca] sm:$0xff] }
 0x42c   : > { %3055 = vmatmul.f32.gmra.mxu3 %v2958_v6  ;;  %v956_v6 = vadd.f32 %v7162_v10, %v7161_v60  ;;  %v1625_v25 = vadd.f32 %v7164_v20, %v1411_v34  ;;  %v2266_v60 = vadd.f32 %v7167_v31, %v2052_v50  ;;  %v7170_v10 = vld [vmem:[#allocation35_spill] sm:$0xff] }
 0x42d   : > { %v2409_v38 = vpop.f32.mrf.mxu0 }
 0x42e   : > { %v2479_v59 = vadd.f32 %v2409_v38, %v2265_v37  ;;  %v1197_v28 = vadd.f32 %v7166_v9, %v956_v6  ;;  %v1839_v46 = vadd.f32 %v7168_v1, %v1625_v25 }
 0x42f   : > { %v6041_v18 = vpop.f32.mrf.mxu3 }
 0x430   : > { %7160 = vst [vmem:[#allocation29_spill] sm:$0xff] %v6041_v18  ;;  %v2519_v56 = vadd.f32 %v5735_v55, %v2479_v59  ;;  %2456 = vmatmul.f32.gmra.mxu0 %v2317_v8  ;;  %v2736_v26 = vpop.f32.mrf.mxu1  ;;  %v7169_v59 = vld [vmem:[#allocation72_spill] sm:$0xff] }
 0x431   : > { %v2850_v37 = vadd.f32 %v2849_v21, %v2736_v26  ;;  %v1412_v49 = vadd.f32 %v7169_v59, %v1197_v28  ;;  %v7171_v18 = vld [vmem:[#allocation12_spill] sm:$0xff]  ;;  %v3368_v26 = vld [vmem:[#allocation6 + $0x220] sm:$0xff] }
 0x432   : > { %v6048_v5 = vld [vmem:[#allocation3 + $0xd8] sm:$0xff]  ;;  %2591 = vst [vmem:[#allocation3 + $0xe1] sm:$0xff] %v2519_v56  ;;  %v3174_v28 = vld [vmem:[#allocation6 + $0x1a0] sm:$0xff]  ;;  %3391 = vmatpush.msrb.mxu2 %v3368_v26 }
 0x433   : > { %7165 = vst [vmem:[#allocation88_spill] sm:$0xff] %v6048_v5  ;;  %2899 = vmatmul.f32.gmra.mxu2 %v6048_v5  ;;  %2783 = vmatmul.f32.gmra.mxu1 %v2517_v22  ;;  %v959_v5 = vadd.f32 %v7171_v18, %v7170_v10  ;;  %v7172_v22 = vld [vmem:[#allocation129_spill] sm:$0xff]  ;;  %v1626_v6 = vadd.f32 %v7173_v14, %v1412_v49  ;;  %v7174_v18 = vld [vmem:[#allocation60_spill] sm:$0xff]  ;;  %v7175_v14 = vld [vmem:[#allocation134_spill] sm:$0xff] }
 0x434   : > { %3058 = vmatmul.f32.gmra.mxu3 %v2959_v39  ;;  %v2053_v39 = vadd.f32 %v7172_v22, %v1839_v46  ;;  %3197 = vmatpush.msrb.mxu1 %v3174_v28  ;;  %v7178_v10 = vld [vmem:[#allocation13_spill] sm:$0xff]  ;;  %v7181_v26 = vld [vmem:[#allocation63_spill] sm:$0xff] }
 0x435   : > { %v2412_v20 = vpop.f32.mrf.mxu0  ;;  %v2852_v34 = vpop.f32.mrf.mxu2  ;;  %v1198_v31 = vadd.f32 %v7174_v18, %v959_v5  ;;  %v1840_v1 = vadd.f32 %v7175_v14, %v1626_v6  ;;  %v7180_v18 = vld [vmem:[#allocation109_spill] sm:$0xff] }
 0x436   : > { %v2480_v51 = vadd.f32 %v2412_v20, %v2266_v60  ;;  %v2267_v60 = vadd.f32 %v5741_v12, %v2053_v39  ;;  %v7176_v20 = vld [vmem:[#allocation74_spill] sm:$0xff] }
 0x437   : > { %v3011_v38 = vpop.f32.mrf.mxu3  ;;  %v1413_v59 = vadd.f32 %v7176_v20, %v1198_v31  ;;  %v7183_v20 = vld [vmem:[#allocation77_spill] sm:$0xff] }
 0x438   : > { %v6055_v8 = vadd.f32 %v3011_v38, %v2850_v37  ;;  %v2520_v50 = vadd.f32 %v5735_v55, %v2480_v51  ;;  %v2739_v9 = vpop.f32.mrf.mxu1  ;;  %3785 = vmatmul.f32.vlgmr.msra.gmra.mxu0 %v5775_v43 }
 0x439   : > { %v6063_v21 = vld [vmem:[#allocation3 + $0xe0] sm:$0xff]  ;;  %v2853_v46 = vadd.f32 %v2852_v34, %v2739_v9  ;;  %v1627_v12 = vadd.f32 %v7180_v18, %v1413_v59 }
 0x43a   : > { %v2960_v25 = vld [vmem:[#allocation3 + $0xda] sm:$0xff]  ;;  %2592 = vst [vmem:[#allocation3 + $0xf1] sm:$0xff] %v2520_v50  ;;  %v2961_v9 = vld [vmem:[#allocation3 + $0xe2] sm:$0xff] }
 0x43b   : > { %2902 = vmatmul.f32.gmra.mxu2 %v6063_v21  ;;  %2786 = vmatmul.f32.gmra.mxu1 %v2518_v23  ;;  %v7177_v23 = vld [vmem:[#allocation36_spill] sm:$0xff] }
 0x43c   : > { %3061 = vmatmul.f32.gmra.mxu3 %v2960_v25  ;;  %v962_v22 = vadd.f32 %v7178_v10, %v7177_v23  ;;  %v7179_v25 = vld [vmem:[#allocation133_spill] sm:$0xff]  ;;  %v7185_v10 = vld [vmem:[#allocation14_spill] sm:$0xff] }
 0x43d   : > { %v2415_v43 = vpop.f32.mrf.mxu0  ;;  %v2855_v37 = vpop.f32.mrf.mxu2  ;;  %v2054_v5 = vadd.f32 %v7179_v25, %v1840_v1  ;;  %v7184_v23 = vld [vmem:[#allocation37_spill] sm:$0xff] }
 0x43e   : > { %v2481_v49 = vadd.f32 %v2415_v43, %v2267_v60  ;;  %v1199_v28 = vadd.f32 %v7181_v26, %v962_v22  ;;  %v7182_v60 = vld [vmem:[#allocation136_spill] sm:$0xff]  ;;  %v965_v25 = vadd.f32 %v7185_v10, %v7184_v23  ;;  %v3173_v26 = vld [vmem:[#allocation6 + $0x198] sm:$0xff]  ;;  %v7191_v10 = vld [vmem:[#allocation15_spill] sm:$0xff] }
 0x43f   : > { %v3014_v51 = vpop.f32.mrf.mxu3  ;;  %v2268_v31 = vadd.f32 %v5749_v36, %v2054_v5  ;;  %v1841_v14 = vadd.f32 %v7182_v60, %v1627_v12  ;;  %3198 = vmatpush.msrb.mxu1 %v3173_v26 }
 0x440   : > { %v6070_v38 = vadd.f32 %v3014_v51, %v2853_v46  ;;  %v2521_v39 = vadd.f32 %v5735_v55, %v2481_v49  ;;  %v2742_v6 = vpop.f32.mrf.mxu1  ;;  %3788 = vmatmul.f32.gmra.mxu0 %v5786_v7  ;;  %v1414_v59 = vadd.f32 %v7183_v20, %v1199_v28  ;;  %v7188_v28 = vld [vmem:[#allocation65_spill] sm:$0xff]  ;;  %v7189_v20 = vld [vmem:[#allocation80_spill] sm:$0xff] }
 0x441   : > { %v6078_v34 = vld [vmem:[#allocation3 + $0xf0] sm:$0xff]  ;;  %v2856_v1 = vadd.f32 %v2855_v37, %v2742_v6  ;;  %v3367_v6 = vld [vmem:[#allocation6 + $0x218] sm:$0xff] }
 0x442   : > { %2593 = vst [vmem:[#allocation3 + $0xf9] sm:$0xff] %v2521_v39  ;;  %3392 = vmatpush.msrb.mxu2 %v3367_v6 }
 0x443   : > { %2905 = vmatmul.f32.gmra.mxu2 %v6078_v34  ;;  %2789 = vmatmul.f32.gmra.mxu1 %v2519_v56  ;;  %v7186_v56 = vld [vmem:[#allocation135_spill] sm:$0xff] }
 0x444   : > { %3064 = vmatmul.f32.gmra.mxu3 %v2961_v9  ;;  %v2055_v18 = vadd.f32 %v7186_v56, %v1841_v14  ;;  %v7187_v9 = vld [vmem:[#allocation110_spill] sm:$0xff] }
 0x445   : > { %v2418_v46 = vpop.f32.mrf.mxu0  ;;  %v2858_v43 = vpop.f32.mrf.mxu2  ;;  %v1628_v22 = vadd.f32 %v7187_v9, %v1414_v59  ;;  %v7192_v9 = vld [vmem:[#allocation137_spill] sm:$0xff] }
 0x446   : > { %v2482_v7 = vadd.f32 %v2418_v46, %v2268_v31  ;;  %v1200_v31 = vadd.f32 %v7188_v28, %v965_v25  ;;  %v2269_v60 = vadd.f32 %v5757_v40, %v2055_v18 }
 0x447   : > { %v3017_v49 = vpop.f32.mrf.mxu3  ;;  %v1842_v14 = vadd.f32 %v5761_v62, %v1628_v22 }
 0x448   : > { %v6085_v51 = vadd.f32 %v3017_v49, %v2856_v1  ;;  %v2522_v36 = vadd.f32 %v5735_v55, %v2482_v7  ;;  %v2745_v5 = vpop.f32.mrf.mxu1  ;;  %3791 = vmatmul.f32.gmra.mxu0 %v5796_v63  ;;  %v1415_v59 = vadd.f32 %v7189_v20, %v1200_v31 }
 0x449   : > { %v6093_v37 = vld [vmem:[#allocation3 + $0xf8] sm:$0xff]  ;;  %v2859_v1 = vadd.f32 %v2858_v43, %v2745_v5  ;;  %v2056_v25 = vadd.f32 %v7192_v9, %v1842_v14 }
 0x44a   : > { %v2962_v12 = vld [vmem:[#allocation3 + $0xf2] sm:$0xff]  ;;  %2594 = vst [vmem:[#allocation3 + $0x109] sm:$0xff] %v2522_v36  ;;  %v2963_v22 = vld [vmem:[#allocation3 + $0xfa] sm:$0xff] }
 0x44b   : > { %2908 = vmatmul.f32.gmra.mxu2 %v6093_v37  ;;  %2792 = vmatmul.f32.gmra.mxu1 %v2520_v50  ;;  %v7190_v50 = vld [vmem:[#allocation39_spill] sm:$0xff]  ;;  %v2270_v26 = vadd.f32 %v5766_v45, %v2056_v25  ;;  %v6124_v45 = vld [vmem:[%s6906_s4] ss:$0 sm:$0xff] }
 0x44c   : > { %3067 = vmatmul.f32.gmra.mxu3 %v2962_v12  ;;  %v968_v56 = vadd.f32 %v7191_v10, %v7190_v50  ;;  %v7193_v12 = vld [vmem:[#allocation111_spill] sm:$0xff]  ;;  %v7199_v10 = vld [vmem:[#allocation112_spill] sm:$0xff] }
 0x44d   : > { %v2421_v63 = vpop.f32.mrf.mxu0  ;;  %v2861_v46 = vpop.f32.mrf.mxu2  ;;  %v1629_v40 = vadd.f32 %v7193_v12, %v1415_v59  ;;  %v7194_v5 = vld [vmem:[#allocation67_spill] sm:$0xff]  ;;  %v7196_v59 = vld [vmem:[#allocation41_spill] sm:$0xff]  ;;  %v3366_v12 = vld [vmem:[#allocation6 + $0x210] sm:$0xff] }
 0x44e   : > { %v2483_v7 = vadd.f32 %v2421_v63, %v2269_v60  ;;  %v1201_v6 = vadd.f32 %v7194_v5, %v968_v56  ;;  %v7195_v14 = vld [vmem:[#allocation83_spill] sm:$0xff]  ;;  %v7201_v5 = vld [vmem:[#allocation140_spill] sm:$0xff]  ;;  %3393 = vmatpush.msrb.mxu2 %v3366_v12 }
 0x44f   : > { %v3020_v49 = vpop.f32.mrf.mxu3  ;;  %v1843_v28 = vadd.f32 %v5769_v27, %v1629_v40  ;;  %v3172_v40 = vld [vmem:[#allocation6 + $0x190] sm:$0xff] }
 0x450   : > { %v6100_v23 = vadd.f32 %v3020_v49, %v2859_v1  ;;  %v2523_v62 = vadd.f32 %v5735_v55, %v2483_v7  ;;  %v2748_v18 = vpop.f32.mrf.mxu1  ;;  %3794 = vmatmul.f32.gmra.mxu0 %v5806_v17  ;;  %v1416_v1 = vadd.f32 %v7195_v14, %v1201_v6  ;;  %v7197_v7 = vld [vmem:[#allocation16_spill] sm:$0xff]  ;;  %3199 = vmatpush.msrb.mxu1 %v3172_v40  ;;  %v7203_v14 = vld [vmem:[#allocation85_spill] sm:$0xff] }
 0x451   : > { %v6108_v43 = vld [vmem:[#allocation3 + $0x108] sm:$0xff]  ;;  %v2862_v31 = vadd.f32 %v2861_v46, %v2748_v18  ;;  %v971_v49 = vadd.f32 %v7197_v7, %v7196_v59 }
 0x452   : > { %2595 = vst [vmem:[#allocation3 + $0x111] sm:$0xff] %v2523_v62  ;;  %v1630_v56 = vadd.f32 %v7199_v10, %v1416_v1  ;;  %v7200_v18 = vld [vmem:[#allocation69_spill] sm:$0xff]  ;;  %v7206_v10 = vld [vmem:[#allocation139_spill] sm:$0xff] }
 0x453   : > { %2911 = vmatmul.f32.gmra.mxu2 %v6108_v43  ;;  %2795 = vmatmul.f32.gmra.mxu1 %v2521_v39  ;;  %v7198_v39 = vld [vmem:[#allocation138_spill] sm:$0xff]  ;;  %v7205_v7 = vld [vmem:[#allocation17_spill] sm:$0xff] }
 0x454   : > { %3070 = vmatmul.f32.gmra.mxu3 %v2963_v22  ;;  %v2057_v50 = vadd.f32 %v7198_v39, %v1843_v28  ;;  %v1202_v22 = vadd.f32 %v7200_v18, %v971_v49  ;;  %v7208_v40 = vld [vmem:[#allocation73_spill] sm:$0xff] }
 0x455   : > { %v2424_v60 = vpop.f32.mrf.mxu0  ;;  %v2864_v55 = vpop.f32.mrf.mxu2 }
 0x456   : > { %v2484_v17 = vadd.f32 %v2424_v60, %v2270_v26  ;;  %v2271_v6 = vadd.f32 %v7201_v5, %v2057_v50  ;;  %v7202_v26 = vld [vmem:[#allocation141_spill] sm:$0xff]  ;;  %v1417_v1 = vadd.f32 %v7203_v14, %v1202_v22  ;;  %v7209_v22 = vld [vmem:[#allocation143_spill] sm:$0xff] }
 0x457   : > { %v3023_v63 = vpop.f32.mrf.mxu3  ;;  %v1844_v28 = vadd.f32 %v7202_v26, %v1630_v56  ;;  %v7211_v14 = vld [vmem:[#allocation87_spill] sm:$0xff] }
 0x458   : > { %v6115_v20 = vadd.f32 %v3023_v63, %v2862_v31  ;;  %v2524_v27 = vadd.f32 %v6124_v45, %v2484_v17  ;;  %v2751_v46 = vpop.f32.mrf.mxu1  ;;  %3797 = vmatmul.f32.gmra.mxu0 %v5820_v61 }
 0x459   : > { %v6128_v9 = vld [vmem:[#allocation3 + $0x110] sm:$0xff]  ;;  %v2865_v31 = vadd.f32 %v2864_v55, %v2751_v46  ;;  %v2058_v49 = vadd.f32 %v7206_v10, %v1844_v28 }
 0x45a   : > { %v2964_v25 = vld [vmem:[#allocation3 + $0x10a] sm:$0xff]  ;;  %2596 = vst [vmem:[#allocation3 + $0x121] sm:$0xff] %v2524_v27  ;;  %v2965_v46 = vld [vmem:[#allocation3 + $0x112] sm:$0xff] }
 0x45b   : > { %2914 = vmatmul.f32.gmra.mxu2 %v6128_v9  ;;  %2798 = vmatmul.f32.gmra.mxu1 %v2522_v36  ;;  %v7204_v36 = vld [vmem:[#allocation43_spill] sm:$0xff]  ;;  %v2272_v5 = vadd.f32 %v7209_v22, %v2058_v49  ;;  %v3573_v22 = vld [vmem:[#allocation6 + $0x2f8] sm:$0xff] }
 0x45c   : > { %3073 = vmatmul.f32.gmra.mxu3 %v2964_v25  ;;  %v974_v39 = vadd.f32 %v7205_v7, %v7204_v36  ;;  %v7207_v25 = vld [vmem:[#allocation113_spill] sm:$0xff]  ;;  %v7214_v7 = vld [vmem:[#allocation18_spill] sm:$0xff] }
 0x45d   : > { %v2427_v61 = vpop.f32.mrf.mxu0  ;;  %v2867_v60 = vpop.f32.mrf.mxu2  ;;  %v1631_v50 = vadd.f32 %v7207_v25, %v1417_v1  ;;  %v7213_v36 = vld [vmem:[#allocation45_spill] sm:$0xff]  ;;  %3574 = vmatpush.msra.mxu3 %v3573_v22  ;;  %v3571_v22 = vld [vmem:[#allocation6 + $0x2e8] sm:$0xff] }
 0x45e   : > { %v2485_v17 = vadd.f32 %v2427_v61, %v2271_v6  ;;  %v1203_v18 = vadd.f32 %v7208_v40, %v974_v39  ;;  %v7210_v6 = vld [vmem:[#allocation144_spill] sm:$0xff]  ;;  %v977_v10 = vadd.f32 %v7214_v7, %v7213_v36  ;;  %v3365_v40 = vld [vmem:[#allocation6 + $0x208] sm:$0xff] }
 0x45f   : > { %v3026_v63 = vpop.f32.mrf.mxu3  ;;  %v1845_v26 = vadd.f32 %v7210_v6, %v1631_v50  ;;  %3394 = vmatpush.msrb.mxu2 %v3365_v40 }
 0x460   : > { %v6135_v59 = vadd.f32 %v3026_v63, %v2865_v31  ;;  %v2525_v56 = vadd.f32 %v6124_v45, %v2485_v17  ;;  %v2754_v12 = vpop.f32.mrf.mxu1  ;;  %3800 = vmatmul.f32.gmra.mxu0 %v5835_v54  ;;  %v1418_v1 = vadd.f32 %v7211_v14, %v1203_v18  ;;  %v3171_v18 = vld [vmem:[#allocation6 + $0x188] sm:$0xff] }
 0x461   : > { %v6143_v55 = vld [vmem:[#allocation3 + $0x120] sm:$0xff]  ;;  %v2868_v28 = vadd.f32 %v2867_v60, %v2754_v12  ;;  %3200 = vmatpush.msrb.mxu1 %v3171_v18 }
 0x462   : > { %2597 = vst [vmem:[#allocation3 + $0x129] sm:$0xff] %v2525_v56  ;;  %v3572_v18 = vld [vmem:[#allocation6 + $0x2f0] sm:$0xff] }
 0x463   : > { %2917 = vmatmul.f32.gmra.mxu2 %v6143_v55  ;;  %2801 = vmatmul.f32.gmra.mxu1 %v2523_v62  ;;  %v7215_v62 = vld [vmem:[#allocation142_spill] sm:$0xff] }
 0x464   : > { %3076 = vmatmul.f32.gmra.mxu3 %v2965_v46  ;;  %v2059_v25 = vadd.f32 %v7215_v62, %v1845_v26  ;;  %v7216_v46 = vld [vmem:[#allocation114_spill] sm:$0xff] }
 0x465   : > { %v2430_v31 = vpop.f32.mrf.mxu0  ;;  %v2870_v61 = vpop.f32.mrf.mxu2  ;;  %v1632_v39 = vadd.f32 %v7216_v46, %v1418_v1  ;;  %v7218_v26 = vld [vmem:[#allocation146_spill] sm:$0xff]  ;;  %3575 = vmatpush.msra.mxu3 %v3572_v18 }
 0x466   : > { %v2486_v54 = vadd.f32 %v2430_v31, %v2272_v5  ;;  %v7217_v5 = vld [vmem:[#allocation76_spill] sm:$0xff]  ;;  %v7219_v31 = vld [vmem:[#allocation147_spill] sm:$0xff]  ;;  %v7222_v46 = vld [vmem:[#allocation46_spill] sm:$0xff] }
 0x467   : > { %v3029_v17 = vpop.f32.mrf.mxu3  ;;  %v1204_v6 = vadd.f32 %v7217_v5, %v977_v10  ;;  %v1846_v14 = vadd.f32 %v7219_v31, %v1632_v39  ;;  %v7224_v10 = vld [vmem:[#allocation145_spill] sm:$0xff]  ;;  %3576 = vmatpush.msra.mxu3 %v3571_v22 }
 0x468   : > { %v6150_v63 = vadd.f32 %v3029_v17, %v2868_v28  ;;  %v6157_v49 = vadd.f32 %v6124_v45, %v2486_v54  ;;  %v2757_v50 = vpop.f32.mrf.mxu1  ;;  %3803 = vmatmul.f32.gmra.mxu0 %v5854_v58  ;;  %v2273_v28 = vadd.f32 %v7218_v26, %v2059_v25  ;;  %v7220_v17 = vld [vmem:[#allocation91_spill] sm:$0xff]  ;;  %v7227_v31 = vld [vmem:[#allocation149_spill] sm:$0xff] }
 0x469   : > { %v6160_v60 = vld [vmem:[#allocation3 + $0x128] sm:$0xff]  ;;  %v2871_v58 = vadd.f32 %v2870_v61, %v2757_v50  ;;  %v1419_v36 = vadd.f32 %v7220_v17, %v1204_v6  ;;  %v2060_v5 = vadd.f32 %v7224_v10, %v1846_v14  ;;  %v7225_v25 = vld [vmem:[#allocation115_spill] sm:$0xff] }
 0x46a   : > { %7212 = vst [vmem:[#allocation44_spill] sm:$0xff] %v6150_v63  ;;  %v2966_v12 = vld [vmem:[#allocation3 + $0x122] sm:$0xff]  ;;  %v2967_v40 = vld [vmem:[#allocation3 + $0x12a] sm:$0xff]  ;;  %v7226_v6 = vld [vmem:[#allocation79_spill] sm:$0xff] }
 0x46b   : > { %2598 = vst [vmem:[#allocation3 + $0x139] sm:$0xff] %v6157_v49  ;;  %2920 = vmatmul.f32.gmra.mxu2 %v6160_v60  ;;  %2804 = vmatmul.f32.gmra.mxu1 %v2524_v27  ;;  %v1633_v26 = vadd.f32 %v7225_v25, %v1419_v36  ;;  %v2274_v14 = vadd.f32 %v7227_v31, %v2060_v5  ;;  %v7230_v25 = vld [vmem:[#allocation48_spill] sm:$0xff] }
 0x46c   : > { %3079 = vmatmul.f32.gmra.mxu3 %v2966_v12  ;;  %v7223_v12 = vld [vmem:[#allocation20_spill] sm:$0xff] }
 0x46d   : > { %v2433_v1 = vpop.f32.mrf.mxu0  ;;  %v2873_v54 = vpop.f32.mrf.mxu2  ;;  %v980_v63 = vadd.f32 %v7223_v12, %v7222_v46  ;;  %v7233_v31 = vld [vmem:[#allocation116_spill] sm:$0xff] }
 0x46e   : > { %v2487_v7 = vadd.f32 %v2433_v1, %v2273_v28 }
 0x46f   : > { %v3032_v62 = vpop.f32.mrf.mxu3  ;;  %v1205_v28 = vadd.f32 %v7226_v6, %v980_v63  ;;  %v3569_v63 = vld [vmem:[#allocation6 + $0x2d8] sm:$0xff]  ;;  %v7232_v6 = vld [vmem:[#allocation148_spill] sm:$0xff] }
 0x470   : > { %v6168_v27 = vadd.f32 %v3032_v62, %v2871_v58  ;;  %v6175_v39 = vadd.f32 %v6124_v45, %v2487_v7  ;;  %v2760_v61 = vpop.f32.mrf.mxu1  ;;  %3806 = vmatmul.f32.gmra.mxu0 %v5871_v0  ;;  %v7228_v58 = vld [vmem:[#allocation90_spill] sm:$0xff]  ;;  %v7229_v62 = vld [vmem:[#allocation95_spill] sm:$0xff] }
 0x471   : > { %v1847_v1 = vadd.f32 %v7228_v58, %v1633_v26  ;;  %v2874_v17 = vadd.f32 %v2873_v54, %v2760_v61  ;;  %v3570_v7 = vld [vmem:[#allocation6 + $0x2e0] sm:$0xff]  ;;  %v1420_v46 = vadd.f32 %v7229_v62, %v1205_v28  ;;  %v3568_v28 = vld [vmem:[#allocation6 + $0x2d0] sm:$0xff]  ;;  %v3567_v58 = vld [vmem:[#allocation6 + $0x2c8] sm:$0xff] }
 0x472   : > { %7221 = vst [vmem:[#allocation64_spill] sm:$0xff] %v6168_v27  ;;  %v6178_v50 = vld [vmem:[#allocation3 + $0x138] sm:$0xff]  ;;  %3577 = vmatpush.msra.mxu3 %v3570_v7 }
 0x473   : > { %2599 = vst [vmem:[#allocation3 + $0x141] sm:$0xff] %v6175_v39  ;;  %2923 = vmatmul.f32.gmra.mxu2 %v6178_v50  ;;  %2807 = vmatmul.f32.gmra.mxu1 %v2525_v56  ;;  %v7231_v56 = vld [vmem:[#allocation22_spill] sm:$0xff]  ;;  %v2061_v5 = vadd.f32 %v7232_v6, %v1847_v1  ;;  %v1634_v26 = vadd.f32 %v7233_v31, %v1420_v46  ;;  %v7236_v6 = vld [vmem:[#allocation51_spill] sm:$0xff]  ;;  %v7237_v31 = vld [vmem:[#allocation24_spill] sm:$0xff] }
 0x474   : > { %3082 = vmatmul.f32.gmra.mxu3 %v2967_v40  ;;  %v983_v40 = vadd.f32 %v7231_v56, %v7230_v25  ;;  %v3170_v1 = vld [vmem:[#allocation6 + $0x180] sm:$0xff]  ;;  %v7235_v25 = vld [vmem:[#allocation99_spill] sm:$0xff] }
 0x475   : > { %v2436_v0 = vpop.f32.mrf.mxu0  ;;  %v2876_v36 = vpop.f32.mrf.mxu2  ;;  %3578 = vmatpush.msra.mxu3 %v3569_v63  ;;  %v1848_v7 = vadd.f32 %v5843_v15, %v1634_v26  ;;  %3201 = vmatpush.msrb.mxu1 %v3170_v1  ;;  %v7239_v1 = vld [vmem:[#allocation86_spill] sm:$0xff] }
 0x476   : > { %v2488_v12 = vadd.f32 %v2436_v0, %v2274_v14  ;;  %v3364_v14 = vld [vmem:[#allocation6 + $0x200] sm:$0xff] }
 0x477   : > { %v3035_v10 = vpop.f32.mrf.mxu3  ;;  %3579 = vmatpush.msra.mxu3 %v3568_v28  ;;  %3395 = vmatpush.msrb.mxu2 %v3364_v14  ;;  %v2062_v15 = vadd.f32 %v5828_v13, %v1848_v7  ;;  %v3563_v13 = vld [vmem:[#allocation6 + $0x2a8] sm:$0xff] }
 0x478   : > { %v6188_v27 = vadd.f32 %v3035_v10, %v2874_v17  ;;  %v6193_v54 = vadd.f32 %v6124_v45, %v2488_v12  ;;  %v2763_v61 = vpop.f32.mrf.mxu1  ;;  %3809 = vmatmul.f32.gmra.mxu0 %v5894_v35  ;;  %v7234_v17 = vld [vmem:[#allocation82_spill] sm:$0xff]  ;;  %v2275_v35 = vadd.f32 %v5838_v42, %v2061_v5  ;;  %v3565_v42 = vld [vmem:[#allocation6 + $0x2b8] sm:$0xff] }
 0x479   : > { %v1206_v0 = vadd.f32 %v7234_v17, %v983_v40  ;;  %v2877_v62 = vadd.f32 %v2876_v36, %v2763_v61  ;;  %v3566_v10 = vld [vmem:[#allocation6 + $0x2c0] sm:$0xff]  ;;  %3580 = vmatpush.msra.mxu3 %v3567_v58  ;;  %v7238_v5 = vld [vmem:[#allocation117_spill] sm:$0xff]  ;;  %v3564_v58 = vld [vmem:[#allocation6 + $0x2b0] sm:$0xff] }
 0x47a   : > { %v6196_v18 = vld [vmem:[#allocation3 + $0x140] sm:$0xff]  ;;  %2600 = vst [vmem:[#allocation3 + $0x151] sm:$0xff] %v6193_v54 }
 0x47b   : > { %v2968_v22 = vld [vmem:[#allocation3 + $0x13a] sm:$0xff]  ;;  %2926 = vmatmul.f32.gmra.mxu2 %v6196_v18  ;;  %2810 = vmatmul.f32.gmra.mxu1 %v6157_v49  ;;  %v1421_v56 = vadd.f32 %v7235_v25, %v1206_v0  ;;  %v2969_v14 = vld [vmem:[#allocation3 + $0x142] sm:$0xff]  ;;  %v2276_v0 = vadd.f32 %v5860_v19, %v2062_v15 }
 0x47c   : > { %3085 = vmatmul.f32.gmra.mxu3 %v2968_v22  ;;  %v986_v22 = vadd.f32 %v7237_v31, %v7236_v6 }
 0x47d   : > { %v2439_v46 = vpop.f32.mrf.mxu0  ;;  %v2879_v12 = vpop.f32.mrf.mxu2  ;;  %v1635_v26 = vadd.f32 %v7238_v5, %v1421_v56  ;;  %3581 = vmatpush.msra.mxu3 %v3566_v10  ;;  %v7240_v10 = vld [vmem:[#allocation100_spill] sm:$0xff] }
 0x47e   : > { %v2489_v63 = vadd.f32 %v2439_v46, %v2275_v35  ;;  %v1207_v17 = vadd.f32 %v7239_v1, %v986_v22  ;;  %v3562_v46 = vld [vmem:[#allocation6 + $0x2a0] sm:$0xff]  ;;  %v3561_v22 = vld [vmem:[#allocation6 + $0x298] sm:$0xff] }
 0x47f   : > { %v3038_v49 = vpop.f32.mrf.mxu3  ;;  %3582 = vmatpush.msra.mxu3 %v3565_v42  ;;  %v7243_v42 = vld [vmem:[#allocation119_spill] sm:$0xff] }
 0x480   : > { %v6207_v40 = vadd.f32 %v3038_v49, %v2877_v62  ;;  %v6212_v36 = vadd.f32 %v6124_v45, %v2489_v63  ;;  %v2766_v61 = vpop.f32.mrf.mxu1  ;;  %3812 = vmatmul.f32.gmra.mxu0 %v5923_v32  ;;  %v1849_v32 = vadd.f32 %v5867_v11, %v1635_v26  ;;  %v1422_v25 = vadd.f32 %v7240_v10, %v1207_v17  ;;  %v7241_v49 = vld [vmem:[#allocation54_spill] sm:$0xff]  ;;  %v3962_v17 = vld [vmem:[#allocation6 + $0x3f8] sm:$0xff] }
 0x481   : > { %v6215_v28 = vld [vmem:[#allocation3 + $0x150] sm:$0xff]  ;;  %3583 = vmatpush.msra.mxu3 %v3564_v58  ;;  %v2880_v35 = vadd.f32 %v2879_v12, %v2766_v61  ;;  %v4156_v61 = vld [vmem:[#allocation6 + $0x478] sm:$0xff]  ;;  %3963 = vmatpush.msra.mxu1 %v3962_v17 }
 0x482   : > { %2601 = vst [vmem:[#allocation3 + $0x159] sm:$0xff] %v6212_v36  ;;  %v2063_v19 = vadd.f32 %v5852_v48, %v1849_v32  ;;  %v1636_v11 = vadd.f32 %v7243_v42, %v1422_v25  ;;  %v3560_v48 = vld [vmem:[#allocation6 + $0x290] sm:$0xff]  ;;  %v7244_v58 = vld [vmem:[#allocation89_spill] sm:$0xff]  ;;  %4157 = vmatpush.msra.mxu2 %v4156_v61  ;;  %v7250_v61 = vld [vmem:[#allocation102_spill] sm:$0xff] }
 0x483   : > { %2929 = vmatmul.f32.gmra.mxu2 %v6215_v28  ;;  %2813 = vmatmul.f32.gmra.mxu1 %v6175_v39  ;;  %v7242_v39 = vld [vmem:[#allocation26_spill] sm:$0xff] }
 0x484   : > { %3088 = vmatmul.f32.gmra.mxu3 %v2969_v14  ;;  %v989_v6 = vadd.f32 %v7242_v39, %v7241_v49  ;;  %v3559_v14 = vld [vmem:[#allocation6 + $0x288] sm:$0xff]  ;;  %v2277_v1 = vadd.f32 %v5885_v53, %v2063_v19 }
 0x485   : > { %v2442_v7 = vpop.f32.mrf.mxu0  ;;  %v2882_v62 = vpop.f32.mrf.mxu2  ;;  %3584 = vmatpush.msra.mxu3 %v3563_v13 }
 0x486   : > { %v2490_v56 = vadd.f32 %v2442_v7, %v2276_v0  ;;  %v1208_v13 = vadd.f32 %v7244_v58, %v989_v6  ;;  %v3558_v7 = vld [vmem:[#allocation6 + $0x280] sm:$0xff] }
 0x487   : > { %v3041_v63 = vpop.f32.mrf.mxu3  ;;  %3585 = vmatpush.msra.mxu3 %v3562_v46  ;;  %v7245_v46 = vld [vmem:[#allocation101_spill] sm:$0xff] }
 0x488   : > { %v6226_v31 = vadd.f32 %v3041_v63, %v2880_v35  ;;  %v6231_v12 = vadd.f32 %v6124_v45, %v2490_v56  ;;  %v2769_v15 = vpop.f32.mrf.mxu1  ;;  %3815 = vmatmul.f32.gmra.mxu0 %v5952_v44  ;;  %v1850_v44 = vadd.f32 %v5896_v2, %v1636_v11  ;;  %v7246_v56 = vld [vmem:[#allocation57_spill] sm:$0xff]  ;;  %v7247_v63 = vld [vmem:[#allocation28_spill] sm:$0xff]  ;;  %v7248_v2 = vld [vmem:[#allocation123_spill] sm:$0xff] }
 0x489   : > { %v6234_v5 = vld [vmem:[#allocation3 + $0x158] sm:$0xff]  ;;  %3586 = vmatpush.msra.mxu3 %v3561_v22  ;;  %v2883_v0 = vadd.f32 %v2882_v62, %v2769_v15  ;;  %v992_v49 = vadd.f32 %v7247_v63, %v7246_v56  ;;  %v7256_v56 = vld [vmem:[#allocation49_spill] sm:$0xff] }
 0x48a   : > { %v2970_v26 = vld [vmem:[#allocation3 + $0x152] sm:$0xff]  ;;  %2602 = vst [vmem:[#allocation3 + $0x169] sm:$0xff] %v6231_v12  ;;  %v2064_v53 = vadd.f32 %v5876_v47, %v1850_v44  ;;  %v6255_v42 = vld [vmem:[#allocation3 + $0x15a] sm:$0xff]  ;;  %v7249_v47 = vld [vmem:[#allocation93_spill] sm:$0xff] }
 0x48b   : > { %2932 = vmatmul.f32.gmra.mxu2 %v6234_v5  ;;  %2816 = vmatmul.f32.gmra.mxu1 %v6193_v54  ;;  %v1423_v54 = vadd.f32 %v7245_v46, %v1208_v13  ;;  %v1209_v11 = vadd.f32 %v7249_v47, %v992_v49 }
 0x48c   : > { %3091 = vmatmul.f32.gmra.mxu3 %v2970_v26  ;;  %v2278_v15 = vadd.f32 %v5917_v52, %v2064_v53  ;;  %v7257_v53 = vld [vmem:[#allocation103_spill] sm:$0xff] }
 0x48d   : > { %3587 = vmatpush.msra.mxu3 %v3560_v48  ;;  %v2445_v32 = vpop.f32.mrf.mxu0  ;;  %v2885_v35 = vpop.f32.mrf.mxu2  ;;  %v1637_v6 = vadd.f32 %v7248_v2, %v1423_v54 }
 0x48e   : > { %v2491_v10 = vadd.f32 %v2445_v32, %v2277_v1  ;;  %v7252_v1 = vld [vmem:[#allocation30_spill] sm:$0xff] }
 0x48f   : > { %v3044_v25 = vpop.f32.mrf.mxu3  ;;  %3588 = vmatpush.msra.mxu3 %v3559_v14  ;;  %v1424_v14 = vadd.f32 %v7250_v61, %v1209_v11  ;;  %v7259_v11 = vld [vmem:[#allocation52_spill] sm:$0xff]  ;;  %v7261_v61 = vld [vmem:[#allocation62_spill] sm:$0xff] }
 0x490   : > { %v6245_v39 = vadd.f32 %v3044_v25, %v2883_v0  ;;  %v2531_v62 = vadd.f32 %v6124_v45, %v2491_v10  ;;  %v2772_v22 = vpop.f32.mrf.mxu1  ;;  %3818 = vmatmul.f32.gmra.mxu0 %v5981_v30  ;;  %v1851_v30 = vadd.f32 %v5935_v3, %v1637_v6  ;;  %v4155_v0 = vld [vmem:[#allocation6 + $0x470] sm:$0xff]  ;;  %v7253_v3 = vld [vmem:[#allocation126_spill] sm:$0xff] }
 0x491   : > { %3589 = vmatpush.msra.mxu3 %v3558_v7  ;;  %v6251_v19 = vld [vmem:[#allocation3 + $0x168] sm:$0xff]  ;;  %v2886_v26 = vadd.f32 %v2885_v35, %v2772_v22  ;;  %v1638_v32 = vadd.f32 %v7253_v3, %v1424_v14  ;;  %4158 = vmatpush.msra.mxu2 %v4155_v0  ;;  %v3331_v14 = vld [vmem:[#allocation3 + $0x19] sm:$0xff] }
 0x492   : > { %2603 = vst [vmem:[#allocation3 + $0x171] sm:$0xff] %v2531_v62  ;;  %v2065_v52 = vadd.f32 %v5907_v57, %v1851_v30  ;;  %v7254_v57 = vld [vmem:[#allocation98_spill] sm:$0xff] }
 0x493   : > { %4586 = vmatpush.msrb.mxu3 %v5874_v24  ;;  %2935 = vmatmul.f32.gmra.mxu2 %v6251_v19  ;;  %v7260_v30 = vld [vmem:[#allocation130_spill] sm:$0xff] }
 0x494   : > { %2819 = vmatmul.f32.gmra.mxu1 %v6212_v36  ;;  %3094 = vmatmul.f32.gmra.mxu3 %v6255_v42  ;;  %v7251_v36 = vld [vmem:[#allocation59_spill] sm:$0xff]  ;;  %v2279_v10 = vadd.f32 %v5957_v4, %v2065_v52  ;;  %v7266_v52 = vld [vmem:[#allocation21_spill] sm:$0xff] }
 0x495   : > { %4587 = vmatpush.msrb.mxu3 %v5878_v16  ;;  %v2448_v48 = vpop.f32.mrf.mxu0  ;;  %v2888_v24 = vpop.f32.mrf.mxu2  ;;  %v995_v44 = vadd.f32 %v7252_v1, %v7251_v36  ;;  %v7264_v36 = vld [vmem:[#allocation58_spill] sm:$0xff] }
 0x496   : > { %v2492_v58 = vadd.f32 %v2448_v48, %v2278_v15 }
 0x497   : > { %v3047_v13 = vpop.f32.mrf.mxu3  ;;  %4588 = vmatpush.msrb.mxu3 %v5899_v33  ;;  %v3961_v33 = vld [vmem:[#allocation6 + $0x3f0] sm:$0xff]  ;;  %v1210_v54 = vadd.f32 %v7254_v57, %v995_v44  ;;  %v7265_v44 = vld [vmem:[#allocation81_spill] sm:$0xff]  ;;  %v7267_v57 = vld [vmem:[#allocation75_spill] sm:$0xff] }
 0x498   : > { %v6267_v17 = vadd.f32 %v3047_v13, %v2886_v26  ;;  %v2532_v16 = vadd.f32 %v6124_v45, %v2492_v58  ;;  %v2775_v35 = vpop.f32.mrf.mxu1  ;;  %3821 = vmatmul.f32.gmra.mxu0 %v6008_v41  ;;  %v7255_v41 = vld [vmem:[#allocation97_spill] sm:$0xff]  ;;  %3964 = vmatpush.msra.mxu1 %v3961_v33  ;;  %v7263_v13 = vld [vmem:[#allocation94_spill] sm:$0xff] }
 0x499   : > { %v6273_v7 = vld [vmem:[#allocation3 + $0x170] sm:$0xff]  ;;  %4589 = vmatpush.msrb.mxu3 %v5901_v29  ;;  %v1852_v25 = vadd.f32 %v7255_v41, %v1638_v32  ;;  %v2889_v63 = vadd.f32 %v2888_v24, %v2775_v35  ;;  %v1425_v2 = vadd.f32 %v7257_v53, %v1210_v54  ;;  %v7262_v24 = vld [vmem:[#allocation71_spill] sm:$0xff] }
 0x49a   : > { %v6275_v46 = vld [vmem:[#allocation3 + $0x16a] sm:$0xff]  ;;  %2604 = vst [vmem:[#allocation3 + $0x181] sm:$0xff] %v2532_v16  ;;  %v6294_v58 = vld [vmem:[#allocation3 + $0x172] sm:$0xff] }
 0x49b   : > { %2938 = vmatmul.f32.gmra.mxu2 %v6273_v7  ;;  %4590 = vmatpush.msrb.mxu3 %v7256_v56  ;;  %v2066_v15 = vadd.f32 %v7259_v11, %v1852_v25  ;;  %v1639_v4 = vadd.f32 %v7260_v30, %v1425_v2  ;;  %v7268_v41 = vld [vmem:[#allocation23_spill] sm:$0xff] }
 0x49c   : > { %2822 = vmatmul.f32.gmra.mxu1 %v6231_v12  ;;  %3097 = vmatmul.f32.gmra.mxu3 %v6275_v46  ;;  %v7258_v12 = vld [vmem:[#allocation19_spill] sm:$0xff] }
 0x49d   : > { %v2451_v49 = vpop.f32.mrf.mxu0  ;;  %v2891_v29 = vpop.f32.mrf.mxu2  ;;  %4591 = vmatpush.msrb.mxu3 %v7258_v12  ;;  %v2280_v1 = vadd.f32 %v7264_v36, %v2066_v15  ;;  %v1853_v0 = vadd.f32 %v7265_v44, %v1639_v4  ;;  %v7270_v53 = vld [vmem:[#allocation55_spill] sm:$0xff]  ;;  %v7271_v12 = vld [vmem:[#allocation84_spill] sm:$0xff]  ;;  %v7272_v15 = vld [vmem:[#allocation78_spill] sm:$0xff] }
 0x49e   : > { %v2493_v6 = vadd.f32 %v2451_v49, %v2279_v10  ;;  %v4154_v10 = vld [vmem:[#allocation6 + $0x468] sm:$0xff]  ;;  %v3332_v49 = vld [vmem:[#allocation3 + $0x21] sm:$0xff] }
 0x49f   : > { %v3050_v22 = vpop.f32.mrf.mxu3  ;;  %4592 = vmatpush.msrb.mxu3 %v7262_v24  ;;  %4159 = vmatpush.msra.mxu2 %v4154_v10  ;;  %v3525_v2 = vld [vmem:[#allocation3 + $0x1a] sm:$0xff]  ;;  %v7273_v24 = vld [vmem:[#allocation38_spill] sm:$0xff] }
 0x4a0   : > { %v6287_v47 = vadd.f32 %v3050_v22, %v2889_v63  ;;  %v2533_v26 = vadd.f32 %v6124_v45, %v2493_v6  ;;  %v2778_v48 = vpop.f32.mrf.mxu1  ;;  %3824 = vmatmul.f32.gmra.mxu0 %v7261_v61  ;;  %v7269_v63 = vld [vmem:[#allocation88_spill] sm:$0xff]  ;;  %v3960_v22 = vld [vmem:[#allocation6 + $0x3e8] sm:$0xff] }
 0x4a1   : > { %4593 = vmatpush.msrb.mxu3 %v7263_v13  ;;  %v2892_v3 = vadd.f32 %v2891_v29, %v2778_v48  ;;  %v3137_v29 = vld [vmem:[#allocation3 + $0x18] sm:$0xff]  ;;  %v6308_v6 = vld [vmem:[#allocation2] sm:$0xff]  ;;  %3965 = vmatpush.msra.mxu1 %v3960_v22 }
 0x4a2   : > { %2605 = vst [vmem:[#allocation3 + $0x189] sm:$0xff] %v2533_v26  ;;  %v6319_v44 = vld [vmem:[#allocation3 + $0x31] sm:$0xff]  ;;  %v6329_v10 = vld [vmem:[#allocation3 + $0x39] sm:$0xff] }
 0x4a3   : > { %3396 = vmatmul.f32.vlgmr.msrb.gmra.mxu2 %v3331_v14  ;;  %4594 = vmatpush.msrb.mxu3 %v7266_v52  ;;  %v3526_v52 = vld [vmem:[#allocation3 + $0x22] sm:$0xff]  ;;  %v6341_v22 = vld [vmem:[#allocation3 + $0x3a] sm:$0xff] }
 0x4a4   : > { %2825 = vmatmul.f32.gmra.mxu1 %v2531_v62  ;;  %3100 = vmatmul.f32.gmra.mxu3 %v6294_v58  ;;  %v2067_v62 = vadd.f32 %v7268_v41, %v1853_v0  ;;  %v3138_v0 = vld [vmem:[#allocation3 + $0x20] sm:$0xff]  ;;  %v3139_v41 = vld [vmem:[#allocation3 + $0x30] sm:$0xff] }
 0x4a5   : > { %v2454_v32 = vpop.f32.mrf.mxu0  ;;  %v2894_v16 = vpop.f32.mrf.mxu2  ;;  %4595 = vmatpush.msrb.mxu3 %v7267_v57 }
 0x4a6   : > { %v2494_v35 = vadd.f32 %v2454_v32, %v2280_v1  ;;  %v2281_v11 = vadd.f32 %v7271_v12, %v2067_v62  ;;  %v7274_v1 = vld [vmem:[#allocation25_spill] sm:$0xff]  ;;  %v6332_v62 = vld [vmem:[#allocation3 + $0x32] sm:$0xff] }
 0x4a7   : > { %v3053_v33 = vpop.f32.mrf.mxu3  ;;  %4596 = vmatpush.msrb.mxu3 %v7270_v53 }
 0x4a8   : > { %v6302_v54 = vadd.f32 %v3053_v33, %v2892_v3  ;;  %v2534_v25 = vadd.f32 %v6124_v45, %v2494_v35  ;;  %v2781_v56 = vpop.f32.mrf.mxu1  ;;  %3827 = vmatmul.f32.gmra.mxu0 %v7269_v63  ;;  %v7275_v3 = vld [vmem:[#allocation61_spill] sm:$0xff]  ;;  %v4153_v33 = vld [vmem:[#allocation6 + $0x460] sm:$0xff] }
 0x4a9   : > { %4597 = vmatpush.msrb.mxu3 %v7272_v15  ;;  %v2895_v30 = vadd.f32 %v2894_v16, %v2781_v56  ;;  %4160 = vmatpush.msra.mxu2 %v4153_v33 }
 0x4aa   : > { %2606 = vst [vmem:[#allocation3 + $0x199] sm:$0xff] %v2534_v25  ;;  %v3959_v25 = vld [vmem:[#allocation6 + $0x3e0] sm:$0xff] }
 0x4ab   : > { %3399 = vmatmul.f32.gmra.mxu2 %v3332_v49  ;;  %2616 = vst [vmem:[#allocation3 + $0x198] sm:$0xff] %v6308_v6  ;;  %4598 = vmatpush.msrb.mxu3 %v7273_v24  ;;  %v3958_v24 = vld [vmem:[#allocation6 + $0x3d8] sm:$0xff] }
 0x4ac   : > { %3202 = vmatmul.f32.vlgmr.msrb.gmra.mxu1 %v3137_v29  ;;  %3590 = vmatmul.f32.vlgmr.msra.gmra.mxu3 %v3525_v2  ;;  %v3140_v2 = vld [vmem:[#allocation3 + $0x38] sm:$0xff] }
 0x4ad   : > { %v2457_v4 = vpop.f32.mrf.mxu0  ;;  %v2897_v26 = vpop.f32.mrf.mxu2  ;;  %4599 = vmatpush.msrb.mxu3 %v7274_v1  ;;  %3966 = vmatpush.msra.mxu1 %v3959_v25  ;;  %v3143_v25 = vld [vmem:[#allocation3 + $0x60] sm:$0xff] }
 0x4ae   : > { %v2495_v48 = vadd.f32 %v2457_v4, %v2281_v11  ;;  %v4152_v4 = vld [vmem:[#allocation6 + $0x458] sm:$0xff] }
 0x4af   : > { %v3056_v61 = vpop.f32.mrf.mxu3  ;;  %4600 = vmatpush.msrb.mxu3 %v7275_v3  ;;  %4161 = vmatpush.msra.mxu2 %v4152_v4  ;;  %v3142_v3 = vld [vmem:[#allocation3 + $0x50] sm:$0xff] }
 0x4b0   : > { %v6314_v14 = vadd.f32 %v3056_v61, %v2895_v30  ;;  %v2535_v13 = vadd.f32 %v6124_v45, %v2495_v48  ;;  %v2784_v36 = vpop.f32.mrf.mxu1  ;;  %3830 = vmatmul.f32.gmra.mxu0 %v6063_v21  ;;  %v7276_v45 = vld [vmem:[#allocation27_spill] sm:$0xff]  ;;  %v3141_v48 = vld [vmem:[#allocation3 + $0x48] sm:$0xff]  ;;  %3967 = vmatpush.msra.mxu1 %v3958_v24 }
 0x4b1   : > { %4601 = vmatpush.msrb.mxu3 %v7276_v45  ;;  %v2898_v21 = vadd.f32 %v2897_v26, %v2784_v36  ;;  %v6350_v61 = vld [vmem:[#allocation3 + $0x4a] sm:$0xff]  ;;  %v6359_v45 = vld [vmem:[#allocation3 + $0x52] sm:$0xff] }
 0x4b2   : > { %2607 = vst [vmem:[#allocation3 + $0x1a1] sm:$0xff] %v2535_v13  ;;  %v6377_v4 = vld [vmem:[#allocation3 + $0x6a] sm:$0xff] }
 0x4b3   : > { %3402 = vmatmul.f32.gmra.mxu2 %v6319_v44  ;;  %2617 = vst [vmem:[#allocation3 + $0x1a0] sm:$0xff] %v6308_v6 }
 0x4b4   : > { %3205 = vmatmul.f32.gmra.mxu1 %v3138_v0  ;;  %3593 = vmatmul.f32.gmra.mxu3 %v3526_v52  ;;  %2618 = vst [vmem:[#allocation3 + $0x1a8] sm:$0x3] %v6308_v6 }
 0x4b6   : > { %v2900_v32 = vpop.f32.mrf.mxu2 }
 0x4b7   : > { %v3059_v16 = vpop.f32.mrf.mxu3 }
 0x4b8   : > { %v6326_v35 = vadd.f32 %v3059_v16, %v2898_v21  ;;  %v2787_v57 = vpop.f32.mrf.mxu1  ;;  %3833 = vmatmul.f32.gmra.mxu0 %v6078_v34  ;;  %v6338_v34 = vld [vmem:[#allocation3 + $0x49] sm:$0xff] }
 0x4b9   : > { %v2901_v56 = vadd.f32 %v2900_v32, %v2787_v57  ;;  %v4151_v57 = vld [vmem:[#allocation6 + $0x450] sm:$0xff] }
 0x4ba   : > { %4162 = vmatpush.msra.mxu2 %v4151_v57  ;;  %v6389_v57 = vpop.f32.mrf.mxu0 }
 0x4bb   : > { %3405 = vmatmul.f32.gmra.mxu2 %v6329_v10  ;;  %7277 = vst [vmem:[#allocation31_spill] sm:$0xff] %v6389_v57 }
 0x4bc   : > { %3208 = vmatmul.f32.gmra.mxu1 %v3139_v41  ;;  %3596 = vmatmul.f32.gmra.mxu3 %v6332_v62 }
 0x4be   : > { %v2903_v63 = vpop.f32.mrf.mxu2 }
 0x4bf   : > { %v3062_v49 = vpop.f32.mrf.mxu3 }
 0x4c0   : > { %v6335_v53 = vadd.f32 %v3062_v49, %v2901_v56  ;;  %v2790_v29 = vpop.f32.mrf.mxu1  ;;  %3836 = vmatmul.f32.gmra.mxu0 %v6093_v37  ;;  %v6347_v37 = vld [vmem:[#allocation3 + $0x51] sm:$0xff]  ;;  %v6368_v56 = vld [vmem:[#allocation3 + $0x62] sm:$0xff] }
 0x4c1   : > { %v2904_v12 = vadd.f32 %v2903_v63, %v2790_v29  ;;  %v3957_v63 = vld [vmem:[#allocation6 + $0x3d0] sm:$0xff] }
 0x4c2   : > { %3968 = vmatpush.msra.mxu1 %v3957_v63  ;;  %v6394_v63 = vld [vmem:[#allocation3 + $0x91] sm:$0xff] }
 0x4c3   : > { %3408 = vmatmul.f32.gmra.mxu2 %v6338_v34  ;;  %7278 = vst [vmem:[#allocation92_spill] sm:$0xff] %v6394_v63 }
 0x4c4   : > { %3211 = vmatmul.f32.gmra.mxu1 %v3140_v2  ;;  %3599 = vmatmul.f32.gmra.mxu3 %v6341_v22 }
 0x4c6   : > { %v2906_v11 = vpop.f32.mrf.mxu2 }
 0x4c7   : > { %v3065_v15 = vpop.f32.mrf.mxu3 }
 0x4c8   : > { %v6344_v30 = vadd.f32 %v3065_v15, %v2904_v12  ;;  %v2793_v26 = vpop.f32.mrf.mxu1  ;;  %3839 = vmatmul.f32.gmra.mxu0 %v6108_v43  ;;  %v6356_v43 = vld [vmem:[#allocation3 + $0x61] sm:$0xff] }
 0x4c9   : > { %v2907_v13 = vadd.f32 %v2906_v11, %v2793_v26  ;;  %v3144_v15 = vld [vmem:[#allocation3 + $0x68] sm:$0xff] }
 0x4cb   : > { %3411 = vmatmul.f32.gmra.mxu2 %v6347_v37 }
 0x4cc   : > { %3214 = vmatmul.f32.gmra.mxu1 %v3141_v48  ;;  %3602 = vmatmul.f32.gmra.mxu3 %v6350_v61 }
 0x4ce   : > { %v2909_v36 = vpop.f32.mrf.mxu2 }
 0x4cf   : > { %v3068_v1 = vpop.f32.mrf.mxu3 }
 0x4d0   : > { %v6353_v0 = vadd.f32 %v3068_v1, %v2907_v13  ;;  %v2796_v52 = vpop.f32.mrf.mxu1  ;;  %3842 = vmatmul.f32.gmra.mxu0 %v6128_v9  ;;  %v6365_v9 = vld [vmem:[#allocation3 + $0x69] sm:$0xff] }
 0x4d1   : > { %v2910_v21 = vadd.f32 %v2909_v36, %v2796_v52  ;;  %v4150_v36 = vld [vmem:[#allocation6 + $0x448] sm:$0xff] }
 0x4d2   : > { %4163 = vmatpush.msra.mxu2 %v4150_v36  ;;  %v3145_v52 = vld [vmem:[#allocation3 + $0x78] sm:$0xff] }
 0x4d3   : > { %3414 = vmatmul.f32.gmra.mxu2 %v6356_v43 }
 0x4d4   : > { %3217 = vmatmul.f32.gmra.mxu1 %v3142_v3  ;;  %3605 = vmatmul.f32.gmra.mxu3 %v6359_v45  ;;  %v6386_v3 = vld [vmem:[#allocation3 + $0x7a] sm:$0xff] }
 0x4d6   : > { %v2912_v32 = vpop.f32.mrf.mxu2 }
 0x4d7   : > { %v3071_v16 = vpop.f32.mrf.mxu3 }
 0x4d8   : > { %v6362_v33 = vadd.f32 %v3071_v16, %v2910_v21  ;;  %v2799_v41 = vpop.f32.mrf.mxu1  ;;  %3845 = vmatmul.f32.gmra.mxu0 %v6143_v55  ;;  %v6374_v55 = vld [vmem:[#allocation3 + $0x79] sm:$0xff] }
 0x4d9   : > { %v2913_v49 = vadd.f32 %v2912_v32, %v2799_v41  ;;  %v3956_v21 = vld [vmem:[#allocation6 + $0x3c8] sm:$0xff] }
 0x4da   : > { %3969 = vmatpush.msra.mxu1 %v3956_v21  ;;  %v3955_v21 = vld [vmem:[#allocation6 + $0x3c0] sm:$0xff] }
 0x4db   : > { %3417 = vmatmul.f32.gmra.mxu2 %v6365_v9 }
 0x4dc   : > { %3220 = vmatmul.f32.gmra.mxu1 %v3143_v25  ;;  %3608 = vmatmul.f32.gmra.mxu3 %v6368_v56 }
 0x4dd   : > { %3970 = vmatpush.msra.mxu1 %v3955_v21 }
 0x4de   : > { %v2915_v29 = vpop.f32.mrf.mxu2 }
 0x4df   : > { %v3074_v2 = vpop.f32.mrf.mxu3 }
 0x4e0   : > { %v6371_v12 = vadd.f32 %v3074_v2, %v2913_v49  ;;  %v2802_v11 = vpop.f32.mrf.mxu1  ;;  %3848 = vmatmul.f32.gmra.mxu0 %v6160_v60  ;;  %v6383_v60 = vld [vmem:[#allocation3 + $0x81] sm:$0xff] }
 0x4e1   : > { %v2916_v26 = vadd.f32 %v2915_v29, %v2802_v11  ;;  %v3146_v49 = vld [vmem:[#allocation3 + $0x80] sm:$0xff] }
 0x4e2   : > { %v6397_v29 = vld [vmem:[#allocation3 + $0x82] sm:$0xff] }
 0x4e3   : > { %3420 = vmatmul.f32.gmra.mxu2 %v6374_v55 }
 0x4e4   : > { %3223 = vmatmul.f32.gmra.mxu1 %v3144_v15  ;;  %3611 = vmatmul.f32.gmra.mxu3 %v6377_v4 }
 0x4e6   : > { %v2918_v48 = vpop.f32.mrf.mxu2 }
 0x4e7   : > { %v3077_v24 = vpop.f32.mrf.mxu3 }
 0x4e8   : > { %v6380_v13 = vadd.f32 %v3077_v24, %v2916_v26  ;;  %v2805_v1 = vpop.f32.mrf.mxu1  ;;  %3851 = vmatmul.f32.gmra.mxu0 %v6178_v50  ;;  %v6402_v24 = vpop.f32.mrf.mxu0 }
 0x4e9   : > { %v2919_v32 = vadd.f32 %v2918_v48, %v2805_v1  ;;  %v4149_v48 = vld [vmem:[#allocation6 + $0x440] sm:$0xff]  ;;  %7280 = vst [vmem:[#allocation120_spill] sm:$0xff] %v6402_v24 }
 0x4ea   : > { %4164 = vmatpush.msra.mxu2 %v4149_v48  ;;  %v3147_v1 = vld [vmem:[#allocation3 + $0x90] sm:$0xff]  ;;  %v6419_v48 = vld [vmem:[#allocation3 + $0x9a] sm:$0xff] }
 0x4eb   : > { %3423 = vmatmul.f32.gmra.mxu2 %v6383_v60  ;;  %7285 = vst [vmem:[#allocation104_spill] sm:$0xff] %v6419_v48  ;;  %v6428_v24 = vld [vmem:[#allocation3 + $0xaa] sm:$0xff] }
 0x4ec   : > { %3226 = vmatmul.f32.gmra.mxu1 %v3145_v52  ;;  %3614 = vmatmul.f32.gmra.mxu3 %v6386_v3  ;;  %v6408_v52 = vld [vmem:[#allocation3 + $0x92] sm:$0xff]  ;;  %7288 = vst [vmem:[#allocation122_spill] sm:$0xff] %v6428_v24 }
 0x4ee   : > { %v2921_v16 = vpop.f32.mrf.mxu2 }
 0x4ef   : > { %v3080_v41 = vpop.f32.mrf.mxu3 }
 0x4f0   : > { %v6391_v25 = vadd.f32 %v3080_v41, %v2919_v32  ;;  %v2808_v50 = vpop.f32.mrf.mxu1  ;;  %3854 = vmatmul.f32.gmra.mxu0 %v6196_v18  ;;  %v6405_v18 = vld [vmem:[#allocation3 + $0x99] sm:$0xff] }
 0x4f1   : > { %v2922_v2 = vadd.f32 %v2921_v16, %v2808_v50  ;;  %7281 = vst [vmem:[#allocation66_spill] sm:$0xff] %v6405_v18 }
 0x4f3   : > { %3426 = vmatmul.f32.gmra.mxu2 %v6394_v63 }
 0x4f4   : > { %3229 = vmatmul.f32.gmra.mxu1 %v3146_v49  ;;  %3617 = vmatmul.f32.gmra.mxu3 %v6397_v29 }
 0x4f6   : > { %v2924_v11 = vpop.f32.mrf.mxu2 }
 0x4f7   : > { %v3083_v15 = vpop.f32.mrf.mxu3 }
 0x4f8   : > { %v6400_v26 = vadd.f32 %v3083_v15, %v2922_v2  ;;  %v2811_v36 = vpop.f32.mrf.mxu1  ;;  %3857 = vmatmul.f32.gmra.mxu0 %v6215_v28  ;;  %v6414_v28 = vld [vmem:[#allocation3 + $0xa9] sm:$0xff]  ;;  %v6416_v2 = vpop.f32.mrf.mxu0  ;;  %v3148_v15 = vld [vmem:[#allocation3 + $0x98] sm:$0xff] }
 0x4f9   : > { %v2925_v32 = vadd.f32 %v2924_v11, %v2811_v36  ;;  %7283 = vst [vmem:[#allocation96_spill] sm:$0xff] %v6414_v28 }
 0x4fa   : > { %7279 = vst [vmem:[#allocation47_spill] sm:$0xff] %v6400_v26 }
 0x4fb   : > { %3429 = vmatmul.f32.gmra.mxu2 %v6405_v18  ;;  %7284 = vst [vmem:[#allocation118_spill] sm:$0xff] %v6416_v2  ;;  %v3149_v2 = vld [vmem:[#allocation3 + $0xa8] sm:$0xff] }
 0x4fc   : > { %3232 = vmatmul.f32.gmra.mxu1 %v3147_v1  ;;  %3620 = vmatmul.f32.gmra.mxu3 %v6408_v52 }
 0x4fe   : > { %v2927_v16 = vpop.f32.mrf.mxu2 }
 0x4ff   : > { %v3086_v41 = vpop.f32.mrf.mxu3 }
 0x500   : > { %v6411_v50 = vadd.f32 %v3086_v41, %v2925_v32  ;;  %v2814_v49 = vpop.f32.mrf.mxu1  ;;  %3860 = vmatmul.f32.gmra.mxu0 %v6234_v5  ;;  %v4148_v32 = vld [vmem:[#allocation6 + $0x438] sm:$0xff]  ;;  %v6425_v5 = vld [vmem:[#allocation3 + $0xb1] sm:$0xff] }
 0x501   : > { %v2928_v11 = vadd.f32 %v2927_v16, %v2814_v49  ;;  %4165 = vmatpush.msra.mxu2 %v4148_v32  ;;  %7287 = vst [vmem:[#allocation50_spill] sm:$0xff] %v6425_v5  ;;  %v3954_v16 = vld [vmem:[#allocation6 + $0x3b8] sm:$0xff]  ;;  %v6431_v49 = vpop.f32.mrf.mxu0 }
 0x502   : > { %7282 = vst [vmem:[#allocation32_spill] sm:$0xff] %v6411_v50  ;;  %3971 = vmatpush.msra.mxu1 %v3954_v16  ;;  %v6436_v32 = vld [vmem:[#allocation3 + $0xc1] sm:$0xff] }
 0x503   : > { %3432 = vmatmul.f32.gmra.mxu2 %v6414_v28  ;;  %7289 = vst [vmem:[#allocation124_spill] sm:$0xff] %v6431_v49  ;;  %v3151_v28 = vld [vmem:[#allocation3 + $0xc0] sm:$0xff]  ;;  %v3152_v50 = vld [vmem:[#allocation3 + $0xc8] sm:$0xff] }
 0x504   : > { %3235 = vmatmul.f32.gmra.mxu1 %v3148_v15  ;;  %3623 = vmatmul.f32.gmra.mxu3 %v6419_v48  ;;  %7291 = vst [vmem:[#allocation33_spill] sm:$0xff] %v6436_v32  ;;  %v3153_v48 = vld [vmem:[#allocation3 + $0xd8] sm:$0xff] }
 0x506   : > { %v2930_v36 = vpop.f32.mrf.mxu2 }
 0x507   : > { %v3089_v1 = vpop.f32.mrf.mxu3 }
 0x508   : > { %v6422_v21 = vadd.f32 %v3089_v1, %v2928_v11  ;;  %v2817_v41 = vpop.f32.mrf.mxu1  ;;  %3863 = vmatmul.f32.gmra.mxu0 %v6251_v19 }
 0x509   : > { %v2931_v15 = vadd.f32 %v2930_v36, %v2817_v41  ;;  %v6442_v36 = vpop.f32.mrf.mxu0 }
 0x50a   : > { %7286 = vst [vmem:[#allocation105_spill] sm:$0xff] %v6422_v21 }
 0x50b   : > { %3435 = vmatmul.f32.gmra.mxu2 %v6425_v5  ;;  %v3150_v5 = vld [vmem:[#allocation3 + $0xb0] sm:$0xff]  ;;  %7293 = vst [vmem:[#allocation121_spill] sm:$0xff] %v6442_v36 }
 0x50c   : > { %3238 = vmatmul.f32.gmra.mxu1 %v3149_v2  ;;  %3626 = vmatmul.f32.gmra.mxu3 %v6428_v24  ;;  %v6439_v2 = vld [vmem:[#allocation3 + $0xb2] sm:$0xff] }
 0x50d   : > { %7292 = vst [vmem:[#allocation10_spill] sm:$0xff] %v6439_v2  ;;  %v4146_v24 = vld [vmem:[#allocation6 + $0x428] sm:$0xff] }
 0x50e   : > { %v2933_v11 = vpop.f32.mrf.mxu2 }
 0x50f   : > { %v3092_v1 = vpop.f32.mrf.mxu3 }
 0x510   : > { %v6433_v57 = vadd.f32 %v3092_v1, %v2931_v15  ;;  %3866 = vmatmul.f32.gmra.mxu0 %v6273_v7  ;;  %v6446_v1 = vld [vmem:[#allocation3 + $0x180] sm:$0xff] }
 0x511   : > { %v2820_v19 = vpop.f32.mrf.mxu1 }
 0x512   : > { %7290 = vst [vmem:[#allocation68_spill] sm:$0xff] %v6433_v57  ;;  %v2934_v49 = vadd.f32 %v2933_v11, %v2820_v19  ;;  %v4147_v57 = vld [vmem:[#allocation6 + $0x430] sm:$0xff] }
 0x513   : > { %3438 = vmatmul.f32.gmra.mxu2 %v6436_v32  ;;  %v6449_v32 = vld [vmem:[#allocation3 + $0xc9] sm:$0xff]  ;;  %v3953_v11 = vld [vmem:[#allocation6 + $0x3b0] sm:$0xff] }
 0x514   : > { %3241 = vmatmul.f32.gmra.mxu1 %v3150_v5  ;;  %3629 = vmatmul.f32.gmra.mxu3 %v6439_v2  ;;  %7295 = vst [vmem:[#allocation53_spill] sm:$0xff] %v6449_v32  ;;  %v6452_v5 = vld [vmem:[#allocation3 + $0xc2] sm:$0xff] }
 0x515   : > { %4166 = vmatpush.msra.mxu2 %v4147_v57  ;;  %7296 = vst [vmem:[#allocation127_spill] sm:$0xff] %v6452_v5  ;;  %3972 = vmatpush.msra.mxu1 %v3953_v11  ;;  %v6459_v57 = vpop.f32.mrf.mxu0 }
 0x516   : > { %v2936_v16 = vpop.f32.mrf.mxu2  ;;  %7298 = vst [vmem:[#allocation70_spill] sm:$0xff] %v6459_v57  ;;  %v7302_v57 = vld [vmem:[#allocation29_spill] sm:$0xff] }
 0x517   : > { %v3095_v41 = vpop.f32.mrf.mxu3  ;;  %4167 = vmatpush.msra.mxu2 %v4146_v24  ;;  %v6482_v24 = vld [vmem:[#allocation3 + $0xf1] sm:$0xff] }
 0x518   : > { %v6444_v15 = vadd.f32 %v3095_v41, %v2934_v49  ;;  %3869 = vmatmul.f32.gmra.mxu0 %v6446_v1  ;;  %7303 = vst [vmem:[#allocation11_spill] sm:$0xff] %v6482_v24 }
 0x519   : > { %v2823_v21 = vpop.f32.mrf.mxu1 }
 0x51a   : > { %7294 = vst [vmem:[#allocation106_spill] sm:$0xff] %v6444_v15  ;;  %v2937_v49 = vadd.f32 %v2936_v16, %v2823_v21  ;;  %v6457_v15 = vld [vmem:[#allocation3 + $0x188] sm:$0xff]  ;;  %v7300_v21 = vld [vmem:[#allocation42_spill] sm:$0xff]  ;;  %v7301_v16 = vld [vmem:[#allocation40_spill] sm:$0xff] }
 0x51b   : > { %3441 = vmatmul.f32.gmra.mxu2 %v6449_v32  ;;  %v6462_v32 = vld [vmem:[#allocation3 + $0xd9] sm:$0xff]  ;;  %v2847_v11 = vadd.f32 %v7301_v16, %v7300_v21 }
 0x51c   : > { %3244 = vmatmul.f32.gmra.mxu1 %v3151_v28  ;;  %3632 = vmatmul.f32.gmra.mxu3 %v6452_v5  ;;  %7299 = vst [vmem:[#allocation34_spill] sm:$0xff] %v6462_v32  ;;  %v6465_v28 = vld [vmem:[#allocation3 + $0xca] sm:$0xff] }
 0x51d   : > { %v3104_v5 = vadd.f32 %v7302_v57, %v2847_v11  ;;  %v6485_v11 = vld [vmem:[#allocation3 + $0xe2] sm:$0xff] }
 0x51e   : > { %v2939_v19 = vpop.f32.mrf.mxu2 }
 0x51f   : > { %v3098_v41 = vpop.f32.mrf.mxu3 }
 0x520   : > { %v6455_v36 = vadd.f32 %v3098_v41, %v2937_v49  ;;  %3872 = vmatmul.f32.gmra.mxu0 %v6457_v15 }
 0x521   : > { %v2826_v2 = vpop.f32.mrf.mxu1 }
 0x522   : > { %7297 = vst [vmem:[#allocation128_spill] sm:$0xff] %v6455_v36  ;;  %v2940_v49 = vadd.f32 %v2939_v19, %v2826_v2  ;;  %v3952_v19 = vld [vmem:[#allocation6 + $0x3a8] sm:$0xff] }
 0x523   : > { %3444 = vmatmul.f32.gmra.mxu2 %v6462_v32  ;;  %v6473_v32 = vld [vmem:[#allocation3 + $0xe1] sm:$0xff]  ;;  %3973 = vmatpush.msra.mxu1 %v3952_v19 }
 0x524   : > { %3247 = vmatmul.f32.gmra.mxu1 %v3152_v50  ;;  %3635 = vmatmul.f32.gmra.mxu3 %v6465_v28  ;;  %v6476_v50 = vld [vmem:[#allocation3 + $0xda] sm:$0xff] }
 0x526   : > { %v3397_v41 = vpop.f32.mrf.mxu2 }
 0x527   : > { %v3101_v36 = vpop.f32.mrf.mxu3 }
 0x528   : > { %v6471_v18 = vadd.f32 %v3101_v36, %v2940_v49 }
 0x529   : > { %v3203_v26 = vpop.f32.mrf.mxu1 }
 0x52a   : > { %v3299_v63 = vadd.f32 %v3203_v26, %v3104_v5  ;;  %v3154_v5 = vld [vmem:[#allocation3 + $0xe0] sm:$0xff] }
 0x52b   : > { %3447 = vmatmul.f32.gmra.mxu2 %v6473_v32 }
 0x52c   : > { %3250 = vmatmul.f32.gmra.mxu1 %v3153_v48  ;;  %3638 = vmatmul.f32.gmra.mxu3 %v6476_v50  ;;  %v3493_v2 = vadd.f32 %v3397_v41, %v3299_v63 }
 0x52e   : > { %v3400_v57 = vpop.f32.mrf.mxu2 }
 0x52f   : > { %v3591_v36 = vpop.f32.mrf.mxu3 }
 0x530   : > { %v6479_v21 = vadd.f32 %v3591_v36, %v3493_v2  ;;  %v4145_v2 = vld [vmem:[#allocation6 + $0x420] sm:$0xff]  ;;  %v6491_v36 = vld [vmem:[#allocation3 + $0xf9] sm:$0xff] }
 0x531   : > { %v3206_v16 = vpop.f32.mrf.mxu1  ;;  %4168 = vmatpush.msra.mxu2 %v4145_v2  ;;  %7305 = vst [vmem:[#allocation107_spill] sm:$0xff] %v6491_v36 }
 0x532   : > { %v3300_v26 = vadd.f32 %v3206_v16, %v6055_v8  ;;  %v3155_v16 = vld [vmem:[#allocation3 + $0xf0] sm:$0xff] }
 0x533   : > { %3450 = vmatmul.f32.gmra.mxu2 %v6482_v24  ;;  %v6494_v24 = vld [vmem:[#allocation3 + $0xf2] sm:$0xff] }
 0x534   : > { %3253 = vmatmul.f32.gmra.mxu1 %v3154_v5  ;;  %3641 = vmatmul.f32.gmra.mxu3 %v6485_v11  ;;  %v3494_v63 = vadd.f32 %v3400_v57, %v3300_v26  ;;  %v3951_v26 = vld [vmem:[#allocation6 + $0x3a0] sm:$0xff] }
 0x535   : > { %3974 = vmatpush.msra.mxu1 %v3951_v26 }
 0x536   : > { %v3403_v48 = vpop.f32.mrf.mxu2 }
 0x537   : > { %v3594_v49 = vpop.f32.mrf.mxu3 }
 0x538   : > { %v6488_v41 = vadd.f32 %v3594_v49, %v3494_v63 }
 0x539   : > { %v3209_v19 = vpop.f32.mrf.mxu1 }
 0x53a   : > { %7304 = vst [vmem:[#allocation125_spill] sm:$0xff] %v6488_v41  ;;  %v3301_v8 = vadd.f32 %v3209_v19, %v6070_v38  ;;  %v6500_v19 = vld [vmem:[#allocation3 + $0x109] sm:$0xff]  ;;  %v3156_v41 = vld [vmem:[#allocation3 + $0xf8] sm:$0xff] }
 0x53b   : > { %3453 = vmatmul.f32.gmra.mxu2 %v6491_v36  ;;  %7307 = vst [vmem:[#allocation131_spill] sm:$0xff] %v6500_v19  ;;  %v6503_v36 = vld [vmem:[#allocation3 + $0xfa] sm:$0xff] }
 0x53c   : > { %3256 = vmatmul.f32.gmra.mxu1 %v3155_v16  ;;  %3644 = vmatmul.f32.gmra.mxu3 %v6494_v24  ;;  %v3495_v57 = vadd.f32 %v3403_v48, %v3301_v8 }
 0x53e   : > { %v3406_v5 = vpop.f32.mrf.mxu2 }
 0x53f   : > { %v3597_v63 = vpop.f32.mrf.mxu3 }
 0x540   : > { %v6497_v49 = vadd.f32 %v3597_v63, %v3495_v57  ;;  %v4144_v57 = vld [vmem:[#allocation6 + $0x418] sm:$0xff] }
 0x541   : > { %v3212_v2 = vpop.f32.mrf.mxu1  ;;  %4169 = vmatpush.msra.mxu2 %v4144_v57 }
 0x542   : > { %7306 = vst [vmem:[#allocation56_spill] sm:$0xff] %v6497_v49  ;;  %v3302_v38 = vadd.f32 %v3212_v2, %v6085_v51  ;;  %v6509_v2 = vld [vmem:[#allocation3 + $0x111] sm:$0xff]  ;;  %v3157_v49 = vld [vmem:[#allocation3 + $0x108] sm:$0xff] }
 0x543   : > { %3456 = vmatmul.f32.gmra.mxu2 %v6500_v19  ;;  %7309 = vst [vmem:[#allocation72_spill] sm:$0xff] %v6509_v2  ;;  %v6512_v19 = vld [vmem:[#allocation3 + $0x10a] sm:$0xff] }
 0x544   : > { %3259 = vmatmul.f32.gmra.mxu1 %v3156_v41  ;;  %3647 = vmatmul.f32.gmra.mxu3 %v6503_v36  ;;  %v3496_v48 = vadd.f32 %v3406_v5, %v3302_v38  ;;  %v3950_v5 = vld [vmem:[#allocation6 + $0x398] sm:$0xff] }
 0x545   : > { %3975 = vmatpush.msra.mxu1 %v3950_v5 }
 0x546   : > { %v3409_v8 = vpop.f32.mrf.mxu2 }
 0x547   : > { %v3600_v16 = vpop.f32.mrf.mxu3 }
 0x548   : > { %v6506_v26 = vadd.f32 %v3600_v16, %v3496_v48 }
 0x549   : > { %v3215_v63 = vpop.f32.mrf.mxu1 }
 0x54a   : > { %7308 = vst [vmem:[#allocation132_spill] sm:$0xff] %v6506_v26  ;;  %v3303_v51 = vadd.f32 %v3215_v63, %v6100_v23  ;;  %v6518_v63 = vld [vmem:[#allocation3 + $0x121] sm:$0xff]  ;;  %v3158_v26 = vld [vmem:[#allocation3 + $0x110] sm:$0xff] }
 0x54b   : > { %3459 = vmatmul.f32.gmra.mxu2 %v6509_v2  ;;  %7311 = vst [vmem:[#allocation12_spill] sm:$0xff] %v6518_v63  ;;  %v6521_v2 = vld [vmem:[#allocation3 + $0x112] sm:$0xff] }
 0x54c   : > { %3262 = vmatmul.f32.gmra.mxu1 %v3157_v49  ;;  %3650 = vmatmul.f32.gmra.mxu3 %v6512_v19  ;;  %v3497_v41 = vadd.f32 %v3409_v8, %v3303_v51  ;;  %7312 = vst [vmem:[#allocation129_spill] sm:$0xff] %v6521_v2 }
 0x54e   : > { %v3412_v38 = vpop.f32.mrf.mxu2 }
 0x54f   : > { %v3603_v48 = vpop.f32.mrf.mxu3 }
 0x550   : > { %v6515_v16 = vadd.f32 %v3603_v48, %v3497_v41  ;;  %v4143_v41 = vld [vmem:[#allocation6 + $0x410] sm:$0xff] }
 0x551   : > { %v3218_v57 = vpop.f32.mrf.mxu1  ;;  %4170 = vmatpush.msra.mxu2 %v4143_v41 }
 0x552   : > { %7310 = vst [vmem:[#allocation35_spill] sm:$0xff] %v6515_v16  ;;  %v3304_v23 = vadd.f32 %v3218_v57, %v6115_v20  ;;  %v6527_v57 = vld [vmem:[#allocation3 + $0x129] sm:$0xff]  ;;  %v3159_v16 = vld [vmem:[#allocation3 + $0x120] sm:$0xff] }
 0x553   : > { %3462 = vmatmul.f32.gmra.mxu2 %v6518_v63  ;;  %7314 = vst [vmem:[#allocation60_spill] sm:$0xff] %v6527_v57  ;;  %v6530_v63 = vld [vmem:[#allocation3 + $0x122] sm:$0xff] }
 0x554   : > { %3265 = vmatmul.f32.gmra.mxu1 %v3158_v26  ;;  %3653 = vmatmul.f32.gmra.mxu3 %v6521_v2  ;;  %v3498_v49 = vadd.f32 %v3412_v38, %v3304_v23  ;;  %7315 = vst [vmem:[#allocation134_spill] sm:$0xff] %v6530_v63  ;;  %v3949_v38 = vld [vmem:[#allocation6 + $0x390] sm:$0xff]  ;;  %v3160_v2 = vld [vmem:[#allocation3 + $0x128] sm:$0xff] }
 0x555   : > { %3976 = vmatpush.msra.mxu1 %v3949_v38 }
 0x556   : > { %v3415_v8 = vpop.f32.mrf.mxu2 }
 0x557   : > { %v3606_v51 = vpop.f32.mrf.mxu3 }
 0x558   : > { %v6524_v5 = vadd.f32 %v3606_v51, %v3498_v49 }
 0x559   : > { %v3221_v48 = vpop.f32.mrf.mxu1 }
 0x55a   : > { %7313 = vst [vmem:[#allocation108_spill] sm:$0xff] %v6524_v5  ;;  %v3305_v20 = vadd.f32 %v3221_v48, %v6135_v59  ;;  %v7317_v5 = vld [vmem:[#allocation44_spill] sm:$0xff] }
 0x55b   : > { %3465 = vmatmul.f32.gmra.mxu2 %v6527_v57  ;;  %v6536_v48 = vld [vmem:[#allocation3 + $0x139] sm:$0xff]  ;;  %v6539_v57 = vld [vmem:[#allocation3 + $0x12a] sm:$0xff] }
 0x55c   : > { %3268 = vmatmul.f32.gmra.mxu1 %v3159_v16  ;;  %3656 = vmatmul.f32.gmra.mxu3 %v6530_v63  ;;  %v3499_v26 = vadd.f32 %v3415_v8, %v3305_v20  ;;  %7318 = vst [vmem:[#allocation36_spill] sm:$0xff] %v6536_v48  ;;  %v3161_v63 = vld [vmem:[#allocation3 + $0x138] sm:$0xff] }
 0x55e   : > { %v3418_v23 = vpop.f32.mrf.mxu2 }
 0x55f   : > { %v3609_v49 = vpop.f32.mrf.mxu3 }
 0x560   : > { %v6533_v51 = vadd.f32 %v3609_v49, %v3499_v26  ;;  %v4142_v26 = vld [vmem:[#allocation6 + $0x408] sm:$0xff] }
 0x561   : > { %v3224_v41 = vpop.f32.mrf.mxu1  ;;  %4171 = vmatpush.msra.mxu2 %v4142_v26 }
 0x562   : > { %7316 = vst [vmem:[#allocation74_spill] sm:$0xff] %v6533_v51  ;;  %v3306_v59 = vadd.f32 %v3224_v41, %v7317_v5  ;;  %v7320_v51 = vld [vmem:[#allocation64_spill] sm:$0xff] }
 0x563   : > { %3468 = vmatmul.f32.gmra.mxu2 %v6536_v48  ;;  %v6545_v41 = vld [vmem:[#allocation3 + $0x141] sm:$0xff] }
 0x564   : > { %3271 = vmatmul.f32.gmra.mxu1 %v3160_v2  ;;  %3659 = vmatmul.f32.gmra.mxu3 %v6539_v57  ;;  %v3500_v16 = vadd.f32 %v3418_v23, %v3306_v59  ;;  %7321 = vst [vmem:[#allocation133_spill] sm:$0xff] %v6545_v41  ;;  %v6548_v48 = vld [vmem:[#allocation3 + $0x13a] sm:$0xff] }
 0x565   : > { %v3948_v23 = vld [vmem:[#allocation6 + $0x388] sm:$0xff] }
 0x566   : > { %v3421_v8 = vpop.f32.mrf.mxu2  ;;  %3977 = vmatpush.msra.mxu1 %v3948_v23 }
 0x567   : > { %v3612_v20 = vpop.f32.mrf.mxu3 }
 0x568   : > { %v6542_v38 = vadd.f32 %v3612_v20, %v3500_v16 }
 0x569   : > { %v3227_v49 = vpop.f32.mrf.mxu1 }
 0x56a   : > { %7319 = vst [vmem:[#allocation13_spill] sm:$0xff] %v6542_v38  ;;  %v3307_v5 = vadd.f32 %v3227_v49, %v7320_v51  ;;  %v6554_v49 = vld [vmem:[#allocation3 + $0x151] sm:$0xff]  ;;  %v3162_v38 = vld [vmem:[#allocation3 + $0x140] sm:$0xff] }
 0x56b   : > { %3471 = vmatmul.f32.gmra.mxu2 %v6545_v41  ;;  %7323 = vst [vmem:[#allocation63_spill] sm:$0xff] %v6554_v49  ;;  %v6557_v41 = vld [vmem:[#allocation3 + $0x142] sm:$0xff] }
 0x56c   : > { %3274 = vmatmul.f32.gmra.mxu1 %v3161_v63  ;;  %3662 = vmatmul.f32.gmra.mxu3 %v6548_v48  ;;  %v3501_v2 = vadd.f32 %v3421_v8, %v3307_v5 }
 0x56e   : > { %v3424_v59 = vpop.f32.mrf.mxu2 }
 0x56f   : > { %v3615_v16 = vpop.f32.mrf.mxu3 }
 0x570   : > { %v6551_v20 = vadd.f32 %v3615_v16, %v3501_v2  ;;  %v4141_v2 = vld [vmem:[#allocation6 + $0x400] sm:$0xff] }
 0x571   : > { %v3230_v26 = vpop.f32.mrf.mxu1  ;;  %4172 = vmatpush.msra.mxu2 %v4141_v2  ;;  %v6572_v2 = vld [vmem:[#allocation3 + $0x169] sm:$0xff] }
 0x572   : > { %7322 = vst [vmem:[#allocation109_spill] sm:$0xff] %v6551_v20  ;;  %v3308_v51 = vadd.f32 %v3230_v26, %v6188_v27  ;;  %v6563_v26 = vld [vmem:[#allocation3 + $0x159] sm:$0xff]  ;;  %v3163_v20 = vld [vmem:[#allocation3 + $0x150] sm:$0xff] }
 0x573   : > { %3474 = vmatmul.f32.gmra.mxu2 %v6554_v49  ;;  %7324 = vst [vmem:[#allocation136_spill] sm:$0xff] %v6563_v26  ;;  %v6566_v49 = vld [vmem:[#allocation3 + $0x152] sm:$0xff] }
 0x574   : > { %3277 = vmatmul.f32.gmra.mxu1 %v3162_v38  ;;  %3665 = vmatmul.f32.gmra.mxu3 %v6557_v41  ;;  %v3502_v63 = vadd.f32 %v3424_v59, %v3308_v51  ;;  %v3947_v59 = vld [vmem:[#allocation6 + $0x380] sm:$0xff] }
 0x575   : > { %3978 = vmatpush.msra.mxu1 %v3947_v59  ;;  %v3165_v59 = vld [vmem:[#allocation3 + $0x168] sm:$0xff] }
 0x576   : > { %v3427_v8 = vpop.f32.mrf.mxu2 }
 0x577   : > { %v3618_v5 = vpop.f32.mrf.mxu3 }
 0x578   : > { %v6560_v23 = vadd.f32 %v3618_v5, %v3502_v63 }
 0x579   : > { %v3233_v16 = vpop.f32.mrf.mxu1 }
 0x57a   : > { %v3309_v27 = vadd.f32 %v3233_v16, %v6207_v40  ;;  %v3164_v40 = vld [vmem:[#allocation3 + $0x158] sm:$0xff] }
 0x57b   : > { %3477 = vmatmul.f32.gmra.mxu2 %v6563_v26 }
 0x57c   : > { %3280 = vmatmul.f32.gmra.mxu1 %v3163_v20  ;;  %3668 = vmatmul.f32.gmra.mxu3 %v6566_v49  ;;  %v6569_v38 = vadd.f32 %v3427_v8, %v3309_v27  ;;  %v6579_v27 = vld [vmem:[#allocation3 + $0x171] sm:$0xff] }
 0x57e   : > { %v3430_v51 = vpop.f32.mrf.mxu2 }
 0x581   : > { %v3236_v63 = vpop.f32.mrf.mxu1 }
 0x582   : > { %v3310_v5 = vadd.f32 %v3236_v63, %v6226_v31 }
 0x583   : > { %3480 = vmatmul.f32.gmra.mxu2 %v6572_v2 }
 0x584   : > { %3283 = vmatmul.f32.gmra.mxu1 %v3164_v40  ;;  %3671 = vmatmul.f32.gmra.mxu3 %v6255_v42  ;;  %v6576_v16 = vadd.f32 %v3430_v51, %v3310_v5  ;;  %v6586_v51 = vld [vmem:[#allocation3 + $0x181] sm:$0xff] }
 0x586   : > { %v3433_v20 = vpop.f32.mrf.mxu2 }
 0x589   : > { %v3239_v26 = vpop.f32.mrf.mxu1 }
 0x58a   : > { %v3311_v8 = vadd.f32 %v3239_v26, %v6245_v39 }
 0x58b   : > { %3483 = vmatmul.f32.gmra.mxu2 %v6579_v27 }
 0x58c   : > { %3286 = vmatmul.f32.gmra.mxu1 %v3165_v59  ;;  %3674 = vmatmul.f32.gmra.mxu3 %v6275_v46  ;;  %v6583_v31 = vadd.f32 %v3433_v20, %v3311_v8  ;;  %v6594_v20 = vld [vmem:[#allocation3 + $0x189] sm:$0xff] }
 0x58d   : > { %v6597_v8 = vld [vmem:[#allocation3 + $0x182] sm:$0xff] }
 0x58e   : > { %v3436_v63 = vpop.f32.mrf.mxu2 }
 0x591   : > { %v3242_v40 = vpop.f32.mrf.mxu1 }
 0x592   : > { %v3312_v42 = vadd.f32 %v3242_v40, %v6267_v17 }
 0x593   : > { %3486 = vmatmul.f32.gmra.mxu2 %v6586_v51 }
 0x594   : > { %3289 = vmatmul.f32.gmra.mxu1 %v6273_v7  ;;  %3677 = vmatmul.f32.gmra.mxu3 %v6294_v58  ;;  %v6591_v39 = vadd.f32 %v3436_v63, %v3312_v42  ;;  %v6604_v63 = vld [vmem:[#allocation3 + $0x18a] sm:$0xff] }
 0x596   : > { %v3439_v26 = vpop.f32.mrf.mxu2 }
 0x599   : > { %v3245_v5 = vpop.f32.mrf.mxu1 }
 0x59a   : > { %v3313_v46 = vadd.f32 %v3245_v5, %v6287_v47 }
 0x59b   : > { %3489 = vmatmul.f32.gmra.mxu2 %v6594_v20 }
 0x59c   : > { %3292 = vmatmul.f32.gmra.mxu1 %v6446_v1  ;;  %3680 = vmatmul.f32.gmra.mxu3 %v6597_v8  ;;  %v6601_v17 = vadd.f32 %v3439_v26, %v3313_v46 }
 0x59e   : > { %v3442_v7 = vpop.f32.mrf.mxu2 }
 0x5a1   : > { %v3248_v58 = vpop.f32.mrf.mxu1 }
 0x5a2   : > { %v3314_v59 = vadd.f32 %v3248_v58, %v6302_v54 }
 0x5a3   : > { %4173 = vmatmul.f32.vlgmr.msra.gmra.mxu2 %v6332_v62 }
 0x5a4   : > { %3295 = vmatmul.f32.gmra.mxu1 %v6457_v15  ;;  %3683 = vmatmul.f32.gmra.mxu3 %v6604_v63  ;;  %v6609_v47 = vadd.f32 %v3442_v7, %v3314_v59 }
 0x5a6   : > { %v3445_v40 = vpop.f32.mrf.mxu2 }
 0x5a9   : > { %v3251_v1 = vpop.f32.mrf.mxu1 }
 0x5aa   : > { %v3315_v42 = vadd.f32 %v3251_v1, %v6314_v14 }
 0x5ab   : > { %4176 = vmatmul.f32.gmra.mxu2 %v6341_v22 }
 0x5ac   : > { %3875 = vmatmul.f32.vlgmr.msrb.gmra.mxu3 %v6308_v6  ;;  %3979 = vmatmul.f32.vlgmr.msra.gmra.mxu1 %v6319_v44  ;;  %v6615_v54 = vadd.f32 %v3445_v40, %v3315_v42 }
 0x5ae   : > { %v3448_v26 = vpop.f32.mrf.mxu2 }
 0x5b1   : > { %v3254_v62 = vpop.f32.mrf.mxu1 }
 0x5b2   : > { %v3316_v15 = vadd.f32 %v3254_v62, %v6326_v35 }
 0x5b3   : > { %4179 = vmatmul.f32.gmra.mxu2 %v6350_v61 }
 0x5b4   : > { %3878 = vmatmul.f32.gmra.mxu3 %v6308_v6  ;;  %3982 = vmatmul.f32.gmra.mxu1 %v6329_v10  ;;  %v6621_v5 = vadd.f32 %v3448_v26, %v3316_v15  ;;  %v7325_v26 = vld [vmem:[#allocation104_spill] sm:$0xff] }
 0x5b6   : > { %v3451_v14 = vpop.f32.mrf.mxu2 }
 0x5b9   : > { %v3257_v22 = vpop.f32.mrf.mxu1 }
 0x5ba   : > { %v3317_v46 = vadd.f32 %v3257_v22, %v6335_v53  ;;  %v7328_v22 = vld [vmem:[#allocation122_spill] sm:$0xff] }
 0x5bb   : > { %4182 = vmatmul.f32.gmra.mxu2 %v6359_v45 }
 0x5bc   : > { %3985 = vmatmul.f32.gmra.mxu1 %v6338_v34  ;;  %v6626_v44 = vadd.f32 %v3451_v14, %v3317_v46  ;;  %v7327_v14 = vld [vmem:[#allocation47_spill] sm:$0xff] }
 0x5be   : > { %v3454_v7 = vpop.f32.mrf.mxu2 }
 0x5c1   : > { %v3260_v35 = vpop.f32.mrf.mxu1 }
 0x5c2   : > { %v3318_v61 = vadd.f32 %v3260_v35, %v6344_v30  ;;  %v7330_v35 = vld [vmem:[#allocation32_spill] sm:$0xff] }
 0x5c3   : > { %4185 = vmatmul.f32.gmra.mxu2 %v6368_v56 }
 0x5c4   : > { %3988 = vmatmul.f32.gmra.mxu1 %v6347_v37  ;;  %v6631_v6 = vadd.f32 %v3454_v7, %v3318_v61  ;;  %v7331_v61 = vld [vmem:[#allocation10_spill] sm:$0xff] }
 0x5c6   : > { %v3457_v10 = vpop.f32.mrf.mxu2 }
 0x5c9   : > { %v3263_v58 = vpop.f32.mrf.mxu1 }
 0x5ca   : > { %v3319_v53 = vadd.f32 %v3263_v58, %v6353_v0 }
 0x5cb   : > { %4188 = vmatmul.f32.gmra.mxu2 %v6377_v4 }
 0x5cc   : > { %3991 = vmatmul.f32.gmra.mxu1 %v6356_v43  ;;  %v6636_v34 = vadd.f32 %v3457_v10, %v3319_v53  ;;  %v7332_v10 = vld [vmem:[#allocation96_spill] sm:$0xff] }
 0x5ce   : > { %v3460_v45 = vpop.f32.mrf.mxu2 }
 0x5d1   : > { %v3266_v59 = vpop.f32.mrf.mxu1 }
 0x5d2   : > { %v3320_v30 = vadd.f32 %v3266_v59, %v6362_v33  ;;  %v7333_v59 = vld [vmem:[#allocation105_spill] sm:$0xff] }
 0x5d3   : > { %4191 = vmatmul.f32.gmra.mxu2 %v6386_v3 }
 0x5d4   : > { %3994 = vmatmul.f32.gmra.mxu1 %v6365_v9  ;;  %v6641_v37 = vadd.f32 %v3460_v45, %v3320_v30 }
 0x5d6   : > { %v3463_v56 = vpop.f32.mrf.mxu2 }
 0x5d9   : > { %v3269_v40 = vpop.f32.mrf.mxu1 }
 0x5da   : > { %v3321_v0 = vadd.f32 %v3269_v40, %v6371_v12  ;;  %v7335_v40 = vld [vmem:[#allocation50_spill] sm:$0xff] }
 0x5db   : > { %4194 = vmatmul.f32.gmra.mxu2 %v6397_v29  ;;  %v7326_v29 = vld [vmem:[#allocation92_spill] sm:$0xff] }
 0x5dc   : > { %3997 = vmatmul.f32.gmra.mxu1 %v6374_v55  ;;  %v6646_v43 = vadd.f32 %v3463_v56, %v3321_v0  ;;  %v7334_v56 = vld [vmem:[#allocation127_spill] sm:$0xff] }
 0x5de   : > { %v3466_v4 = vpop.f32.mrf.mxu2 }
 0x5e1   : > { %v3272_v1 = vpop.f32.mrf.mxu1 }
 0x5e2   : > { %v3322_v33 = vadd.f32 %v3272_v1, %v6380_v13 }
 0x5e3   : > { %4197 = vmatmul.f32.gmra.mxu2 %v6408_v52  ;;  %v7329_v52 = vld [vmem:[#allocation66_spill] sm:$0xff] }
 0x5e4   : > { %4000 = vmatmul.f32.gmra.mxu1 %v6383_v60  ;;  %v6651_v9 = vadd.f32 %v3466_v4, %v3322_v33  ;;  %v7336_v33 = vld [vmem:[#allocation68_spill] sm:$0xff] }
 0x5e6   : > { %v3469_v3 = vpop.f32.mrf.mxu2 }
 0x5e9   : > { %v3275_v42 = vpop.f32.mrf.mxu1 }
 0x5ea   : > { %v3323_v12 = vadd.f32 %v3275_v42, %v6391_v25  ;;  %v7337_v42 = vld [vmem:[#allocation33_spill] sm:$0xff] }
 0x5eb   : > { %4200 = vmatmul.f32.gmra.mxu2 %v7325_v26 }
 0x5ec   : > { %4003 = vmatmul.f32.gmra.mxu1 %v7326_v29  ;;  %v6656_v55 = vadd.f32 %v3469_v3, %v3323_v12 }
 0x5ee   : > { %v3472_v62 = vpop.f32.mrf.mxu2 }
 0x5f1   : > { %v3278_v15 = vpop.f32.mrf.mxu1 }
 0x5f2   : > { %v3324_v13 = vadd.f32 %v3278_v15, %v7327_v14  ;;  %v7339_v14 = vld [vmem:[#allocation53_spill] sm:$0xff] }
 0x5f3   : > { %4203 = vmatmul.f32.gmra.mxu2 %v7328_v22 }
 0x5f4   : > { %4006 = vmatmul.f32.gmra.mxu1 %v7329_v52  ;;  %v6661_v60 = vadd.f32 %v3472_v62, %v3324_v13  ;;  %v7338_v62 = vld [vmem:[#allocation106_spill] sm:$0xff] }
 0x5f6   : > { %v3475_v46 = vpop.f32.mrf.mxu2 }
 0x5f9   : > { %v3281_v7 = vpop.f32.mrf.mxu1 }
 0x5fa   : > { %v3325_v25 = vadd.f32 %v3281_v7, %v7330_v35 }
 0x5fb   : > { %4206 = vmatmul.f32.gmra.mxu2 %v7331_v61 }
 0x5fc   : > { %4009 = vmatmul.f32.gmra.mxu1 %v7332_v10  ;;  %v6666_v58 = vadd.f32 %v3475_v46, %v3325_v25  ;;  %v7340_v46 = vld [vmem:[#allocation128_spill] sm:$0xff] }
 0x5fe   : > { %v3478_v53 = vpop.f32.mrf.mxu2 }
 0x601   : > { %v3284_v45 = vpop.f32.mrf.mxu1 }
 0x602   : > { %v3326_v30 = vadd.f32 %v3284_v45, %v7333_v59  ;;  %v7342_v45 = vld [vmem:[#allocation31_spill] sm:$0xff] }
 0x603   : > { %4209 = vmatmul.f32.gmra.mxu2 %v7334_v56  ;;  %v3882_v59 = vadd.f32 %v7342_v45, %v6479_v21 }
 0x604   : > { %4012 = vmatmul.f32.gmra.mxu1 %v7335_v40  ;;  %v6671_v0 = vadd.f32 %v3478_v53, %v3326_v30  ;;  %v6700_v40 = vld [vmem:[%s6908_s6] ss:$0 sm:$0xff] }
 0x606   : > { %v3481_v4 = vpop.f32.mrf.mxu2 }
 0x609   : > { %v3287_v1 = vpop.f32.mrf.mxu1 }
 0x60a   : > { %v3327_v3 = vadd.f32 %v3287_v1, %v7336_v33  ;;  %v7345_v1 = vld [vmem:[#allocation120_spill] sm:$0xff] }
 0x60b   : > { %4212 = vmatmul.f32.gmra.mxu2 %v6465_v28  ;;  %v7341_v28 = vld [vmem:[#allocation34_spill] sm:$0xff] }
 0x60c   : > { %4015 = vmatmul.f32.gmra.mxu1 %v7337_v42  ;;  %v6676_v12 = vadd.f32 %v3481_v4, %v3327_v3  ;;  %v7344_v4 = vld [vmem:[#allocation125_spill] sm:$0xff] }
 0x60d   : > { %v3883_v33 = vadd.f32 %v7345_v1, %v7344_v4  ;;  %v7354_v1 = vld [vmem:[#allocation72_spill] sm:$0xff] }
 0x60e   : > { %v3484_v26 = vpop.f32.mrf.mxu2 }
 0x611   : > { %v3290_v29 = vpop.f32.mrf.mxu1 }
 0x612   : > { %v3328_v15 = vadd.f32 %v3290_v29, %v7338_v62  ;;  %v7346_v29 = vld [vmem:[#allocation107_spill] sm:$0xff] }
 0x613   : > { %4215 = vmatmul.f32.gmra.mxu2 %v6476_v50 }
 0x614   : > { %4018 = vmatmul.f32.gmra.mxu1 %v7339_v14  ;;  %v6681_v13 = vadd.f32 %v3484_v26, %v3328_v15  ;;  %v6719_v14 = vpop.f32.mrf.mxu3 }
 0x616   : > { %v3487_v22 = vpop.f32.mrf.mxu2 }
 0x619   : > { %v3293_v52 = vpop.f32.mrf.mxu1 }
 0x61a   : > { %v3329_v7 = vadd.f32 %v3293_v52, %v7340_v46  ;;  %v7348_v52 = vld [vmem:[#allocation118_spill] sm:$0xff] }
 0x61b   : > { %4218 = vmatmul.f32.gmra.mxu2 %v6485_v11  ;;  %v6695_v11 = vpop.f32.mrf.mxu0 }
 0x61c   : > { %4021 = vmatmul.f32.gmra.mxu1 %v7341_v28  ;;  %v6686_v35 = vadd.f32 %v3487_v22, %v3329_v7  ;;  %v7347_v22 = vld [vmem:[#allocation56_spill] sm:$0xff] }
 0x61d   : > { %v3884_v46 = vadd.f32 %v7348_v52, %v7347_v22 }
 0x61e   : > { %v3490_v25 = vpop.f32.mrf.mxu2 }
 0x621   : > { %v3296_v61 = vpop.f32.mrf.mxu1 }
 0x622   : > { %v3330_v10 = vadd.f32 %v3296_v61, %v6471_v18 }
 0x623   : > { %4221 = vmatmul.f32.gmra.mxu2 %v6494_v24  ;;  %v7343_v24 = vld [vmem:[#allocation11_spill] sm:$0xff]  ;;  %v3807_v42 = vpop.f32.mrf.mxu0 }
 0x624   : > { %4024 = vmatmul.f32.gmra.mxu1 %v6473_v32  ;;  %v6691_v50 = vadd.f32 %v3490_v25, %v3330_v10  ;;  %v7349_v25 = vld [vmem:[#allocation129_spill] sm:$0xff] }
 0x626   : > { %v4174_v53 = vpop.f32.mrf.mxu2 }
 0x629   : > { %v3980_v30 = vpop.f32.mrf.mxu1 }
 0x62a   : > { %v4076_v56 = vadd.f32 %v3980_v30, %v3882_v59  ;;  %v7351_v59 = vld [vmem:[#allocation132_spill] sm:$0xff] }
 0x62b   : > { %4224 = vmatmul.f32.gmra.mxu2 %v6503_v36  ;;  %v3810_v10 = vpop.f32.mrf.mxu0  ;;  %v7352_v30 = vld [vmem:[#allocation124_spill] sm:$0xff] }
 0x62c   : > { %v4270_v18 = vadd.f32 %v4174_v53, %v4076_v56  ;;  %4027 = vmatmul.f32.gmra.mxu1 %v7343_v24  ;;  %v3885_v56 = vadd.f32 %v7352_v30, %v7351_v59 }
 0x62e   : > { %v4306_v32 = vadd.f32 %v6700_v40, %v4270_v18  ;;  %v4177_v21 = vpop.f32.mrf.mxu2  ;;  %v6732_v18 = vpop.f32.mrf.mxu3 }
 0x630   : > { %4338 = vst.msk [vmem:[%s6709_s9] sm:$0xff] %vm584_vm0, %v4306_v32 }
 0x631   : > { %v3983_v36 = vpop.f32.mrf.mxu1 }
 0x632   : > { %v4077_v3 = vadd.f32 %v3983_v36, %v3883_v33 }
 0x633   : > { %4227 = vmatmul.f32.gmra.mxu2 %v6512_v19  ;;  %v7350_v19 = vld [vmem:[#allocation131_spill] sm:$0xff] }
 0x634   : > { %v4271_v26 = vadd.f32 %v4177_v21, %v4077_v3  ;;  %4030 = vmatmul.f32.gmra.mxu1 %v7346_v29  ;;  %v7353_v21 = vld [vmem:[#allocation134_spill] sm:$0xff]  ;;  %v3813_v3 = vpop.f32.mrf.mxu0  ;;  %v7356_v29 = vld [vmem:[#allocation121_spill] sm:$0xff] }
 0x636   : > { %v4307_v62 = vadd.f32 %v6700_v40, %v4271_v26  ;;  %v4180_v15 = vpop.f32.mrf.mxu2  ;;  %v7355_v26 = vld [vmem:[#allocation35_spill] sm:$0xff]  ;;  %v6741_v52 = vpop.f32.mrf.mxu3 }
 0x638   : > { %4339 = vst.msk [vmem:[%s6709_s9 + $0x8] sm:$0xff] %vm584_vm0, %v4307_v62  ;;  %v3886_v62 = vadd.f32 %v7356_v29, %v7355_v26  ;;  %v7362_v29 = vld [vmem:[#allocation36_spill] sm:$0xff] }
 0x639   : > { %v3986_v7 = vpop.f32.mrf.mxu1 }
 0x63a   : > { %v4078_v28 = vadd.f32 %v3986_v7, %v3884_v46  ;;  %v7357_v7 = vld [vmem:[#allocation12_spill] sm:$0xff] }
 0x63b   : > { %4230 = vmatmul.f32.gmra.mxu2 %v7349_v25 }
 0x63c   : > { %v4272_v61 = vadd.f32 %v4180_v15, %v4078_v28  ;;  %4033 = vmatmul.f32.gmra.mxu1 %v7350_v19  ;;  %v7359_v19 = vld [vmem:[#allocation70_spill] sm:$0xff] }
 0x63e   : > { %v4308_v53 = vadd.f32 %v6700_v40, %v4272_v61  ;;  %v4183_v45 = vpop.f32.mrf.mxu2  ;;  %v7358_v61 = vld [vmem:[#allocation108_spill] sm:$0xff] }
 0x640   : > { %4340 = vst.msk [vmem:[%s6709_s9 + $0x10] sm:$0xff] %vm584_vm0, %v4308_v53  ;;  %v3887_v53 = vadd.f32 %v7359_v19, %v7358_v61  ;;  %v7364_v61 = vld [vmem:[#allocation133_spill] sm:$0xff] }
 0x641   : > { %v3989_v24 = vpop.f32.mrf.mxu1 }
 0x642   : > { %v4079_v32 = vadd.f32 %v3989_v24, %v3885_v56  ;;  %v7360_v24 = vld [vmem:[#allocation60_spill] sm:$0xff] }
 0x643   : > { %4233 = vmatmul.f32.gmra.mxu2 %v7353_v21 }
 0x644   : > { %v4273_v4 = vadd.f32 %v4183_v45, %v4079_v32  ;;  %4036 = vmatmul.f32.gmra.mxu1 %v7354_v1  ;;  %v3816_v45 = vpop.f32.mrf.mxu0 }
 0x646   : > { %v4309_v33 = vadd.f32 %v6700_v40, %v4273_v4  ;;  %v4186_v36 = vpop.f32.mrf.mxu2  ;;  %v7361_v4 = vld [vmem:[#allocation74_spill] sm:$0xff] }
 0x647   : > { %v3888_v1 = vadd.f32 %v6695_v11, %v7361_v4 }
 0x648   : > { %4341 = vst.msk [vmem:[%s6709_s9 + $0x18] sm:$0xff] %vm584_vm0, %v4309_v33 }
 0x649   : > { %v3992_v15 = vpop.f32.mrf.mxu1 }
 0x64a   : > { %v4080_v22 = vadd.f32 %v3992_v15, %v3886_v62 }
 0x64b   : > { %4236 = vmatmul.f32.gmra.mxu2 %v6539_v57  ;;  %v6752_v57 = vpop.f32.mrf.mxu3 }
 0x64c   : > { %v4274_v46 = vadd.f32 %v4186_v36, %v4080_v22  ;;  %4039 = vmatmul.f32.gmra.mxu1 %v7357_v7  ;;  %v3819_v26 = vpop.f32.mrf.mxu0 }
 0x64e   : > { %v4310_v28 = vadd.f32 %v6700_v40, %v4274_v46  ;;  %v4189_v25 = vpop.f32.mrf.mxu2  ;;  %v7363_v46 = vld [vmem:[#allocation13_spill] sm:$0xff] }
 0x64f   : > { %v3889_v7 = vadd.f32 %v3807_v42, %v7363_v46 }
 0x650   : > { %4342 = vst.msk [vmem:[%s6709_s9 + $0x20] sm:$0xff] %vm584_vm0, %v4310_v28 }
 0x651   : > { %v3995_v59 = vpop.f32.mrf.mxu1 }
 0x652   : > { %v4081_v30 = vadd.f32 %v3995_v59, %v3887_v53  ;;  %v7365_v59 = vld [vmem:[#allocation109_spill] sm:$0xff] }
 0x653   : > { %4239 = vmatmul.f32.gmra.mxu2 %v6548_v48  ;;  %v6762_v22 = vpop.f32.mrf.mxu3 }
 0x654   : > { %v4275_v56 = vadd.f32 %v4189_v25, %v4081_v30  ;;  %4042 = vmatmul.f32.gmra.mxu1 %v7360_v24  ;;  %v3890_v30 = vadd.f32 %v3810_v10, %v7365_v59 }
 0x656   : > { %v4311_v32 = vadd.f32 %v6700_v40, %v4275_v56  ;;  %v4192_v21 = vpop.f32.mrf.mxu2 }
 0x658   : > { %4343 = vst.msk [vmem:[%s6709_s9 + $0x28] sm:$0xff] %vm584_vm0, %v4311_v32  ;;  %v4133_v32 = vld [vmem:[#allocation3 + $0x15a] sm:$0xff] }
 0x659   : > { %v3998_v33 = vpop.f32.mrf.mxu1 }
 0x65a   : > { %v4082_v36 = vadd.f32 %v3998_v33, %v3888_v1 }
 0x65b   : > { %4242 = vmatmul.f32.gmra.mxu2 %v6557_v41  ;;  %v3822_v41 = vpop.f32.mrf.mxu0  ;;  %v6773_v56 = vpop.f32.mrf.mxu3 }
 0x65c   : > { %v4276_v48 = vadd.f32 %v4192_v21, %v4082_v36  ;;  %4045 = vmatmul.f32.gmra.mxu1 %v7362_v29  ;;  %v3891_v36 = vadd.f32 %v3813_v3, %v6560_v23  ;;  %v4134_v29 = vld [vmem:[#allocation3 + $0x16a] sm:$0xff] }
 0x65e   : > { %v4312_v62 = vadd.f32 %v6700_v40, %v4276_v48  ;;  %v4195_v15 = vpop.f32.mrf.mxu2 }
 0x660   : > { %4344 = vst.msk [vmem:[%s6709_s9 + $0x30] sm:$0xff] %vm584_vm0, %v4312_v62 }
 0x661   : > { %v4001_v28 = vpop.f32.mrf.mxu1 }
 0x662   : > { %v4083_v11 = vadd.f32 %v4001_v28, %v3889_v7  ;;  %v7367_v7 = vld [vmem:[#allocation136_spill] sm:$0xff] }
 0x663   : > { %4245 = vmatmul.f32.gmra.mxu2 %v6566_v49  ;;  %v7366_v49 = vld [vmem:[#allocation63_spill] sm:$0xff]  ;;  %v3825_v33 = vpop.f32.mrf.mxu0  ;;  %v6780_v62 = vpop.f32.mrf.mxu3 }
 0x664   : > { %v4277_v25 = vadd.f32 %v4195_v15, %v4083_v11  ;;  %4048 = vmatmul.f32.gmra.mxu1 %v7364_v61  ;;  %v3697_v15 = vadd.f32 %v6719_v14, %v6569_v38 }
 0x666   : > { %v4313_v19 = vadd.f32 %v6700_v40, %v4277_v25  ;;  %v4198_v53 = vpop.f32.mrf.mxu2  ;;  %v3892_v25 = vadd.f32 %v3816_v45, %v3697_v15 }
 0x668   : > { %4345 = vst.msk [vmem:[%s6709_s9 + $0x38] sm:$0xff] %vm584_vm0, %v4313_v19  ;;  %v4135_v19 = vld [vmem:[#allocation3 + $0x172] sm:$0xff] }
 0x669   : > { %v4004_v24 = vpop.f32.mrf.mxu1 }
 0x66a   : > { %v4084_v42 = vadd.f32 %v4004_v24, %v3890_v30 }
 0x66b   : > { %4248 = vmatmul.f32.gmra.mxu2 %v4133_v32  ;;  %v3828_v23 = vpop.f32.mrf.mxu0  ;;  %v6791_v38 = vpop.f32.mrf.mxu3 }
 0x66c   : > { %v4278_v21 = vadd.f32 %v4198_v53, %v4084_v42  ;;  %4051 = vmatmul.f32.gmra.mxu1 %v7366_v49  ;;  %v3698_v53 = vadd.f32 %v6732_v18, %v6576_v16  ;;  %v3699_v16 = vadd.f32 %v6741_v52, %v6583_v31 }
 0x66e   : > { %v4314_v4 = vadd.f32 %v6700_v40, %v4278_v21  ;;  %v4201_v1 = vpop.f32.mrf.mxu2  ;;  %v3893_v45 = vadd.f32 %v3819_v26, %v3698_v53  ;;  %v3894_v26 = vadd.f32 %v3822_v41, %v3699_v16 }
 0x670   : > { %4346 = vst.msk [vmem:[%s6709_s9 + $0x40] sm:$0xff] %vm584_vm0, %v4314_v4 }
 0x671   : > { %v4007_v48 = vpop.f32.mrf.mxu1 }
 0x672   : > { %v4085_v10 = vadd.f32 %v4007_v48, %v3891_v36 }
 0x673   : > { %4251 = vmatmul.f32.gmra.mxu2 %v4134_v29  ;;  %v3831_v32 = vpop.f32.mrf.mxu0  ;;  %v6801_v49 = vpop.f32.mrf.mxu3 }
 0x674   : > { %v4279_v46 = vadd.f32 %v4201_v1, %v4085_v10  ;;  %4054 = vmatmul.f32.gmra.mxu1 %v7367_v7  ;;  %v4138_v10 = vld [vmem:[#allocation3 + $0x19a] sm:$0xff] }
 0x676   : > { %v4315_v28 = vadd.f32 %v6700_v40, %v4279_v46  ;;  %v4204_v11 = vpop.f32.mrf.mxu2 }
 0x678   : > { %4347 = vst.msk [vmem:[%s6709_s9 + $0x48] sm:$0xff] %vm584_vm0, %v4315_v28 }
 0x679   : > { %v4010_v3 = vpop.f32.mrf.mxu1 }
 0x67a   : > { %v4086_v61 = vadd.f32 %v4010_v3, %v3892_v25 }
 0x67b   : > { %4254 = vmatmul.f32.gmra.mxu2 %v4135_v19  ;;  %v3834_v52 = vpop.f32.mrf.mxu0  ;;  %v3648_v41 = vpop.f32.mrf.mxu3 }
 0x67c   : > { %v4280_v59 = vadd.f32 %v4204_v11, %v4086_v61  ;;  %4057 = vmatmul.f32.gmra.mxu1 %v6572_v2  ;;  %v3944_v11 = vld [vmem:[#allocation3 + $0x199] sm:$0xff] }
 0x67e   : > { %v4316_v14 = vadd.f32 %v6700_v40, %v4280_v59  ;;  %v4207_v30 = vpop.f32.mrf.mxu2  ;;  %v3945_v59 = vld [vmem:[#allocation3 + $0x1a1] sm:$0xff] }
 0x680   : > { %4348 = vst.msk [vmem:[%s6709_s9 + $0x50] sm:$0xff] %vm584_vm0, %v4316_v14 }
 0x681   : > { %v4013_v24 = vpop.f32.mrf.mxu1 }
 0x682   : > { %v4087_v42 = vadd.f32 %v4013_v24, %v3893_v45 }
 0x683   : > { %4257 = vmatmul.f32.gmra.mxu2 %v6597_v8  ;;  %v3700_v8 = vadd.f32 %v6752_v57, %v6591_v39  ;;  %v3837_v46 = vpop.f32.mrf.mxu0  ;;  %v3651_v3 = vpop.f32.mrf.mxu3 }
 0x684   : > { %v4281_v18 = vadd.f32 %v4207_v30, %v4087_v42  ;;  %4060 = vmatmul.f32.gmra.mxu1 %v6579_v27  ;;  %v3703_v30 = vadd.f32 %v6780_v62, %v6615_v54 }
 0x685   : > { %v3895_v48 = vadd.f32 %v3825_v33, %v3700_v8  ;;  %v4139_v33 = vld [vmem:[#allocation3 + $0x1a2] sm:$0xff] }
 0x686   : > { %v4317_v2 = vadd.f32 %v6700_v40, %v4281_v18  ;;  %v4210_v21 = vpop.f32.mrf.mxu2  ;;  %v3898_v42 = vadd.f32 %v3834_v52, %v3703_v30 }
 0x688   : > { %4349 = vst.msk [vmem:[%s6709_s9 + $0x58] sm:$0xff] %vm584_vm0, %v4317_v2  ;;  %v3704_v2 = vadd.f32 %v6791_v38, %v6621_v5 }
 0x689   : > { %v4016_v4 = vpop.f32.mrf.mxu1 }
 0x68a   : > { %v4088_v1 = vadd.f32 %v4016_v4, %v3894_v26  ;;  %v3899_v4 = vadd.f32 %v3837_v46, %v3704_v2 }
 0x68b   : > { %4260 = vmatmul.f32.gmra.mxu2 %v6604_v63  ;;  %v3701_v63 = vadd.f32 %v6762_v22, %v6601_v17  ;;  %v3702_v17 = vadd.f32 %v6773_v56, %v6609_v47  ;;  %v3840_v53 = vpop.f32.mrf.mxu0  ;;  %v3654_v47 = vpop.f32.mrf.mxu3 }
 0x68c   : > { %v4282_v31 = vadd.f32 %v4210_v21, %v4088_v1  ;;  %4063 = vmatmul.f32.gmra.mxu1 %v6586_v51 }
 0x68d   : > { %v3896_v7 = vadd.f32 %v3828_v23, %v3701_v63  ;;  %v3897_v19 = vadd.f32 %v3831_v32, %v3702_v17 }
 0x68e   : > { %v4318_v27 = vadd.f32 %v6700_v40, %v4282_v31  ;;  %v4213_v36 = vpop.f32.mrf.mxu2  ;;  %v3705_v31 = vadd.f32 %v6801_v49, %v6626_v44 }
 0x690   : > { %4350 = vst.msk [vmem:[%s6709_s9 + $0x60] sm:$0xff] %vm584_vm0, %v4318_v27  ;;  %v3900_v5 = vadd.f32 %v3840_v53, %v3705_v31 }
 0x691   : > { %v4019_v29 = vpop.f32.mrf.mxu1 }
 0x692   : > { %v4089_v15 = vadd.f32 %v4019_v29, %v3895_v48 }
 0x693   : > { %4263 = vmatmul.f32.gmra.mxu2 %v4138_v10  ;;  %v3843_v32 = vpop.f32.mrf.mxu0  ;;  %v3657_v26 = vpop.f32.mrf.mxu3 }
 0x694   : > { %v4283_v39 = vadd.f32 %v4213_v36, %v4089_v15  ;;  %4066 = vmatmul.f32.gmra.mxu1 %v6594_v20  ;;  %v3706_v15 = vadd.f32 %v3648_v41, %v6631_v6  ;;  %v3709_v30 = vadd.f32 %v3657_v26, %v6646_v43 }
 0x696   : > { %v4319_v51 = vadd.f32 %v6700_v40, %v4283_v39  ;;  %v4216_v57 = vpop.f32.mrf.mxu2  ;;  %v3901_v44 = vadd.f32 %v3843_v32, %v3706_v15 }
 0x698   : > { %4351 = vst.msk [vmem:[%s6709_s9 + $0x68] sm:$0xff] %vm584_vm0, %v4319_v51 }
 0x699   : > { %v4022_v28 = vpop.f32.mrf.mxu1 }
 0x69a   : > { %v4090_v25 = vadd.f32 %v4022_v28, %v3896_v7 }
 0x69b   : > { %4266 = vmatmul.f32.gmra.mxu2 %v4139_v33  ;;  %v3846_v27 = vpop.f32.mrf.mxu0  ;;  %v3660_v38 = vpop.f32.mrf.mxu3  ;;  %v3707_v33 = vadd.f32 %v3651_v3, %v6636_v34 }
 0x69c   : > { %v4284_v22 = vadd.f32 %v4216_v57, %v4090_v25  ;;  %4069 = vmatmul.f32.gmra.mxu1 %v3944_v11 }
 0x69d   : > { %v3902_v6 = vadd.f32 %v3846_v27, %v3707_v33 }
 0x69e   : > { %v4320_v20 = vadd.f32 %v6700_v40, %v4284_v22  ;;  %v4219_v61 = vpop.f32.mrf.mxu2 }
 0x6a0   : > { %4352 = vst.msk [vmem:[%s6709_s9 + $0x70] sm:$0xff] %vm584_vm0, %v4320_v20  ;;  %v3708_v20 = vadd.f32 %v3654_v47, %v6641_v37 }
 0x6a1   : > { %v4025_v23 = vpop.f32.mrf.mxu1 }
 0x6a2   : > { %v4091_v14 = vadd.f32 %v4025_v23, %v3897_v19 }
 0x6a3   : > { %v3849_v57 = vpop.f32.mrf.mxu0  ;;  %v3663_v7 = vpop.f32.mrf.mxu3 }
 0x6a4   : > { %v4285_v45 = vadd.f32 %v4219_v61, %v4091_v14  ;;  %4072 = vmatmul.f32.gmra.mxu1 %v3945_v59  ;;  %v3903_v34 = vadd.f32 %v3849_v57, %v3708_v20 }
 0x6a6   : > { %v4321_v56 = vadd.f32 %v6700_v40, %v4285_v45  ;;  %v4222_v24 = vpop.f32.mrf.mxu2 }
 0x6a8   : > { %4353 = vst.msk [vmem:[%s6709_s9 + $0x78] sm:$0xff] %vm584_vm0, %v4321_v56 }
 0x6a9   : > { %v4028_v16 = vpop.f32.mrf.mxu1 }
 0x6aa   : > { %v4092_v18 = vadd.f32 %v4028_v16, %v3898_v42 }
 0x6ab   : > { %v3852_v41 = vpop.f32.mrf.mxu0  ;;  %v3666_v19 = vpop.f32.mrf.mxu3 }
 0x6ac   : > { %v4286_v21 = vadd.f32 %v4222_v24, %v4092_v18  ;;  %v3904_v37 = vadd.f32 %v3852_v41, %v3709_v30  ;;  %v3710_v18 = vadd.f32 %v3660_v38, %v6651_v9  ;;  %v3712_v38 = vadd.f32 %v3666_v19, %v6661_v60 }
 0x6ae   : > { %v4322_v54 = vadd.f32 %v6700_v40, %v4286_v21  ;;  %v4225_v62 = vpop.f32.mrf.mxu2 }
 0x6b0   : > { %4354 = vst.msk [vmem:[%s6709_s9 + $0x80] sm:$0xff] %vm584_vm0, %v4322_v54 }
 0x6b1   : > { %v4031_v1 = vpop.f32.mrf.mxu1 }
 0x6b2   : > { %v4093_v8 = vadd.f32 %v4031_v1, %v3899_v4  ;;  %v3711_v1 = vadd.f32 %v3663_v7, %v6656_v55 }
 0x6b3   : > { %v3855_v14 = vpop.f32.mrf.mxu0  ;;  %v3669_v42 = vpop.f32.mrf.mxu3 }
 0x6b4   : > { %v4287_v52 = vadd.f32 %v4225_v62, %v4093_v8  ;;  %v3905_v43 = vadd.f32 %v3855_v14, %v3710_v18  ;;  %v3713_v57 = vadd.f32 %v3669_v42, %v6666_v58 }
 0x6b6   : > { %v4323_v36 = vadd.f32 %v6700_v40, %v4287_v52  ;;  %v4228_v48 = vpop.f32.mrf.mxu2 }
 0x6b8   : > { %4355 = vst.msk [vmem:[%s6709_s9 + $0x88] sm:$0xff] %vm584_vm0, %v4323_v36 }
 0x6b9   : > { %v4034_v10 = vpop.f32.mrf.mxu1 }
 0x6ba   : > { %v4094_v29 = vadd.f32 %v4034_v10, %v3900_v5 }
 0x6bb   : > { %v3858_v2 = vpop.f32.mrf.mxu0  ;;  %v3672_v62 = vpop.f32.mrf.mxu3 }
 0x6bc   : > { %v4288_v63 = vadd.f32 %v4228_v48, %v4094_v29  ;;  %v3906_v9 = vadd.f32 %v3858_v2, %v3711_v1 }
 0x6be   : > { %v4324_v39 = vadd.f32 %v6700_v40, %v4288_v63  ;;  %v4231_v51 = vpop.f32.mrf.mxu2 }
 0x6c0   : > { %4356 = vst.msk [vmem:[%s6709_s9 + $0x90] sm:$0xff] %vm584_vm0, %v4324_v39 }
 0x6c1   : > { %v4037_v49 = vpop.f32.mrf.mxu1 }
 0x6c2   : > { %v4095_v46 = vadd.f32 %v4037_v49, %v3901_v44 }
 0x6c3   : > { %v3861_v27 = vpop.f32.mrf.mxu0  ;;  %v3675_v5 = vpop.f32.mrf.mxu3 }
 0x6c4   : > { %v4289_v28 = vadd.f32 %v4231_v51, %v4095_v46  ;;  %v3907_v55 = vadd.f32 %v3861_v27, %v3712_v38  ;;  %v3715_v19 = vadd.f32 %v3675_v5, %v6676_v12 }
 0x6c6   : > { %v4325_v11 = vadd.f32 %v6700_v40, %v4289_v28  ;;  %v4234_v25 = vpop.f32.mrf.mxu2 }
 0x6c8   : > { %4357 = vst.msk [vmem:[%s6709_s9 + $0x98] sm:$0xff] %vm584_vm0, %v4325_v11 }
 0x6c9   : > { %v4040_v17 = vpop.f32.mrf.mxu1 }
 0x6ca   : > { %v4096_v22 = vadd.f32 %v4040_v17, %v3902_v6 }
 0x6cb   : > { %v3864_v63 = vpop.f32.mrf.mxu0  ;;  %v3678_v49 = vpop.f32.mrf.mxu3 }
 0x6cc   : > { %v4290_v61 = vadd.f32 %v4234_v25, %v4096_v22  ;;  %v3908_v60 = vadd.f32 %v3864_v63, %v3713_v57  ;;  %v3714_v25 = vadd.f32 %v3672_v62, %v6671_v0 }
 0x6ce   : > { %v4326_v53 = vadd.f32 %v6700_v40, %v4290_v61  ;;  %v4237_v23 = vpop.f32.mrf.mxu2 }
 0x6d0   : > { %4358 = vst.msk [vmem:[%s6709_s9 + $0xa0] sm:$0xff] %vm584_vm0, %v4326_v53 }
 0x6d1   : > { %v4043_v3 = vpop.f32.mrf.mxu1 }
 0x6d2   : > { %v4097_v59 = vadd.f32 %v4043_v3, %v3903_v34 }
 0x6d3   : > { %v3867_v11 = vpop.f32.mrf.mxu0  ;;  %v3681_v22 = vpop.f32.mrf.mxu3 }
 0x6d4   : > { %v4291_v45 = vadd.f32 %v4237_v23, %v4097_v59  ;;  %v3909_v58 = vadd.f32 %v3867_v11, %v3714_v25  ;;  %v3717_v2 = vadd.f32 %v3681_v22, %v6686_v35 }
 0x6d6   : > { %v4327_v56 = vadd.f32 %v6700_v40, %v4291_v45  ;;  %v4240_v24 = vpop.f32.mrf.mxu2  ;;  %v3716_v45 = vadd.f32 %v3678_v49, %v6681_v13 }
 0x6d8   : > { %4359 = vst.msk [vmem:[%s6709_s9 + $0xa8] sm:$0xff] %vm584_vm0, %v4327_v56 }
 0x6d9   : > { %v4046_v47 = vpop.f32.mrf.mxu1 }
 0x6da   : > { %v4098_v16 = vadd.f32 %v4046_v47, %v3904_v37 }
 0x6db   : > { %v3870_v23 = vpop.f32.mrf.mxu0  ;;  %v3684_v59 = vpop.f32.mrf.mxu3 }
 0x6dc   : > { %v4292_v32 = vadd.f32 %v4240_v24, %v4098_v16  ;;  %v3910_v0 = vadd.f32 %v3870_v23, %v3715_v19  ;;  %v3718_v1 = vadd.f32 %v3684_v59, %v6691_v50 }
 0x6de   : > { %v4328_v21 = vadd.f32 %v6700_v40, %v4292_v32  ;;  %v4243_v54 = vpop.f32.mrf.mxu2 }
 0x6e0   : > { %4360 = vst.msk [vmem:[%s6709_s9 + $0xb0] sm:$0xff] %vm584_vm0, %v4328_v21 }
 0x6e1   : > { %v4049_v26 = vpop.f32.mrf.mxu1 }
 0x6e2   : > { %v4099_v4 = vadd.f32 %v4049_v26, %v3905_v43 }
 0x6e3   : > { %v3873_v42 = vpop.f32.mrf.mxu0  ;;  %v3876_v18 = vpop.f32.mrf.mxu3 }
 0x6e4   : > { %v4293_v8 = vadd.f32 %v4243_v54, %v4099_v4  ;;  %v3911_v12 = vadd.f32 %v3873_v42, %v3716_v45  ;;  %v3912_v13 = vadd.f32 %v3876_v18, %v3717_v2 }
 0x6e6   : > { %v4329_v31 = vadd.f32 %v6700_v40, %v4293_v8  ;;  %v4246_v52 = vpop.f32.mrf.mxu2 }
 0x6e8   : > { %4361 = vst.msk [vmem:[%s6709_s9 + $0xb8] sm:$0xff] %vm584_vm0, %v4329_v31 }
 0x6e9   : > { %v4052_v36 = vpop.f32.mrf.mxu1 }
 0x6ea   : > { %v4100_v48 = vadd.f32 %v4052_v36, %v3906_v9 }
 0x6eb   : > { %v3879_v4 = vpop.f32.mrf.mxu3 }
 0x6ec   : > { %v4294_v10 = vadd.f32 %v4246_v52, %v4100_v48  ;;  %v3913_v31 = vadd.f32 %v3879_v4, %v3718_v1 }
 0x6ee   : > { %v4330_v29 = vadd.f32 %v6700_v40, %v4294_v10  ;;  %v4249_v15 = vpop.f32.mrf.mxu2 }
 0x6f0   : > { %4362 = vst.msk [vmem:[%s6709_s9 + $0xc0] sm:$0xff] %vm584_vm0, %v4330_v29 }
 0x6f1   : > { %v4055_v39 = vpop.f32.mrf.mxu1 }
 0x6f2   : > { %v4101_v51 = vadd.f32 %v4055_v39, %v3907_v55 }
 0x6f4   : > { %v4295_v44 = vadd.f32 %v4249_v15, %v4101_v51 }
 0x6f6   : > { %v4331_v46 = vadd.f32 %v6700_v40, %v4295_v44  ;;  %v4252_v7 = vpop.f32.mrf.mxu2 }
 0x6f8   : > { %4363 = vst.msk [vmem:[%s6709_s9 + $0xc8] sm:$0xff] %vm584_vm0, %v4331_v46 }
 0x6f9   : > { %v4058_v33 = vpop.f32.mrf.mxu1 }
 0x6fa   : > { %v4102_v28 = vadd.f32 %v4058_v33, %v3908_v60 }
 0x6fc   : > { %v4296_v6 = vadd.f32 %v4252_v7, %v4102_v28 }
 0x6fe   : > { %v4332_v41 = vadd.f32 %v6700_v40, %v4296_v6  ;;  %v4255_v17 = vpop.f32.mrf.mxu2 }
 0x700   : > { %4364 = vst.msk [vmem:[%s6709_s9 + $0xd0] sm:$0xff] %vm584_vm0, %v4332_v41 }
 0x701   : > { %v4061_v20 = vpop.f32.mrf.mxu1 }
 0x702   : > { %v4103_v61 = vadd.f32 %v4061_v20, %v3909_v58 }
 0x704   : > { %v4297_v53 = vadd.f32 %v4255_v17, %v4103_v61 }
 0x706   : > { %v4333_v34 = vadd.f32 %v6700_v40, %v4297_v53  ;;  %v4258_v3 = vpop.f32.mrf.mxu2 }
 0x708   : > { %4365 = vst.msk [vmem:[%s6709_s9 + $0xd8] sm:$0xff] %vm584_vm0, %v4333_v34 }
 0x709   : > { %v4064_v14 = vpop.f32.mrf.mxu1 }
 0x70a   : > { %v4104_v30 = vadd.f32 %v4064_v14, %v3910_v0 }
 0x70c   : > { %v4298_v56 = vadd.f32 %v4258_v3, %v4104_v30 }
 0x70e   : > { %v4334_v24 = vadd.f32 %v6700_v40, %v4298_v56  ;;  %v4261_v37 = vpop.f32.mrf.mxu2 }
 0x710   : > { %4366 = vst.msk [vmem:[%s6709_s9 + $0xe0] sm:$0xff] %vm584_vm0, %v4334_v24 }
 0x711   : > { %v4067_v47 = vpop.f32.mrf.mxu1 }
 0x712   : > { %v4105_v16 = vadd.f32 %v4067_v47, %v3911_v12 }
 0x714   : > { %v4299_v32 = vadd.f32 %v4261_v37, %v4105_v16 }
 0x716   : > { %v4335_v21 = vadd.f32 %v6700_v40, %v4299_v32  ;;  %v4264_v54 = vpop.f32.mrf.mxu2 }
 0x718   : > { %4367 = vst.msk [vmem:[%s6709_s9 + $0xe8] sm:$0xff] %vm584_vm0, %v4335_v21 }
 0x719   : > { %v4070_v43 = vpop.f32.mrf.mxu1 }
 0x71a   : > { %v4106_v62 = vadd.f32 %v4070_v43, %v3912_v13 }
 0x71c   : > { %v4300_v26 = vadd.f32 %v4264_v54, %v4106_v62 }
 0x71e   : > { %v4336_v8 = vadd.f32 %v6700_v40, %v4300_v26  ;;  %v4267_v35 = vpop.f32.mrf.mxu2 }
 0x720   : > { %4368 = vst.msk [vmem:[%s6709_s9 + $0xf0] sm:$0xff] %vm584_vm0, %v4336_v8 }
 0x721   : > { %v4073_v52 = vpop.f32.mrf.mxu1 }
 0x722   : > { %v4107_v27 = vadd.f32 %v4073_v52, %v3913_v31 }
 0x724   : > { %v4301_v9 = vadd.f32 %v4267_v35, %v4107_v27 }
 0x726   : > { %v4337_v36 = vadd.f32 %v6700_v40, %v4301_v9 }
 0x728   : > { %4369 = vst.msk [vmem:[%s6709_s9 + $0xf8] sm:$0xff] %vm584_vm0, %v4337_v36 }
 0x729 PF: > { %s19_s24 = sadd.s32 1, %s4746_s24   ;;  %s7368_s1 = smov %s4742_s2 }
 0x72a   : > { %p16_p8 = scmp.ge.s32.totalorder %s19_s24, 4   ;;  %s7369_s2 = smov %s7371_s26 }
 0x72c   :  { %18 = sbr.rel (!%p16_p8) target bundleno = 3 (0x3), region = 127 }
 0x731   :  { %4402 = vsyncpa [#allocation5], 1 }
 0x732   :  { %4404 = vsyncpa [#allocation5 + $0x1], 1 }
 0x733   :  { %4405 = vsyncpa [#allocation7], 1 }

</bundles_post_ra>
